<compile_context>
chip_gen: v7x
topology: tpu7x:2x2x1
jax: 0.10.0
libtpu: 0.0.40
codegen_flags: <defaults>
</compile_context>

<pallas_src>
import functools

import jax
import jax.numpy as jnp
from jax.experimental import pallas as pl
from jax.experimental.pallas import tpu as pltpu

_LANE = 128
_SUBLANE = 8


def _round_up(x, m):
    return ((x + m - 1) // m) * m


# ----------------------------------------------------------------------------
# Kernel
# ----------------------------------------------------------------------------
def _autoencoder_kernel(x_ref,
                        we1_ref, be1_ref, we2_ref, be2_ref,
                        wd1_ref, bd1_ref, wd2_ref, bd2_ref,
                        out_ref):
    # bf16 matmul operands for MXU throughput; f32 accumulation + f32 epilogue.
    x = x_ref[...].astype(jnp.bfloat16)

    # ---- encoder ----
    h = jnp.dot(x, we1_ref[...], preferred_element_type=jnp.float32)
    h = jnp.maximum(h + be1_ref[...], 0.0)                       # ReLU in f32

    z = jnp.dot(h.astype(jnp.bfloat16), we2_ref[...],
                preferred_element_type=jnp.float32)
    z = z + be2_ref[...]                                         # latent (TB, Lp)

    # ---- decoder ----
    g = jnp.dot(z.astype(jnp.bfloat16), wd1_ref[...],
                preferred_element_type=jnp.float32)
    g = jnp.maximum(g + bd1_ref[...], 0.0)                       # ReLU in f32

    y = jnp.dot(g.astype(jnp.bfloat16), wd2_ref[...],
                preferred_element_type=jnp.float32)
    y = y + bd2_ref[...]

    out_ref[...] = y.astype(out_ref.dtype)


# ----------------------------------------------------------------------------
# Wrapper
# ----------------------------------------------------------------------------
def _vmem_limit_bytes():
    # ~75% of this generation's physical VMEM (v5e/v6e: 128 MiB, v7x: 64 MiB).
    # If the query fails, return None and let the compiler use its default
    # rather than forcing a wrong (possibly too large / too small) cap.
    try:
        return int(pltpu.get_tpu_info().vmem_capacity_bytes * 3 // 4)
    except Exception:
        return None


def prepare_params(params):
    """One-time parameter prep (hoisted out of the per-call wrapper).

    Pads every feature dim (D_in, H, L) to a multiple of 128 lanes and casts
    weights to bf16 (biases stay f32).  Zero padding is exact: zero rows/cols
    contribute nothing and ReLU(0) = 0.  Doing this once means the per-forward
    weight DMA is truly bf16-only and lane-dense.
    """
    we1, be1 = params["we1"], params["be1"]
    we2, be2 = params["we2"], params["be2"]
    wd1, bd1 = params["wd1"], params["bd1"]
    wd2, bd2 = params["wd2"], params["bd2"]
    d_in, h = we1.shape
    latent = we2.shape[1]
    dp, hp, lp = (_round_up(v, _LANE) for v in (d_in, h, latent))

    def pad2(a, rows, cols):
        return jnp.pad(a, ((0, rows - a.shape[0]), (0, cols - a.shape[1])))

    prep = {
        "we1": pad2(we1, dp, hp).astype(jnp.bfloat16),
        "be1": pad2(be1, 1, hp).astype(jnp.float32),
        "we2": pad2(we2, hp, lp).astype(jnp.bfloat16),
        "be2": pad2(be2, 1, lp).astype(jnp.float32),
        "wd1": pad2(wd1, lp, hp).astype(jnp.bfloat16),
        "bd1": pad2(bd1, 1, hp).astype(jnp.float32),
        "wd2": pad2(wd2, hp, dp).astype(jnp.bfloat16),
        "bd2": pad2(bd2, 1, dp).astype(jnp.float32),
    }
    # Materialize now so the cast/pad never reruns per forward call.
    return {k: jax.block_until_ready(v) for k, v in prep.items()}


def autoencoder_forward(x, prep, *, batch_tile=1024, out_dtype=None,
                        single_buffer_weights=True):
    """x: (B, D_in), ideally bf16 (the kernel is HBM-bandwidth bound).

    prep: output of prepare_params (padded, bf16 weights / f32 biases).
    Returns (B, D_in) in `out_dtype` (defaults to x.dtype).
    """
    B, D_in = x.shape
    Dp, Hp = prep["we1"].shape
    Lp = prep["we2"].shape[1]
    if out_dtype is None:
        out_dtype = x.dtype

    if Dp != D_in:
        x = jnp.pad(x, ((0, 0), (0, Dp - D_in)))

    # Batch tiling: big tiles amortize per-grid-step overhead and get close to
    # the HBM roofline (this kernel is DMA-bound at small layer widths), but
    # keep >= 2 grid steps when the batch allows so the BlockSpec pipeline has
    # something to overlap and v7x can shard the "parallel" axis across both
    # TensorCores.
    TB = min(batch_tile, _round_up(B, _SUBLANE))
    if _round_up(B, TB) // TB < 2 and B > _SUBLANE:
        TB = _round_up((B + 1) // 2, _SUBLANE)
    Bp = _round_up(B, TB)
    if Bp != B:
        x = jnp.pad(x, ((0, Bp - B), (0, 0)))
    grid = (Bp // TB,)

    # Activations tiled over the batch grid; weights/biases VMEM-resident
    # (constant index_map -> never re-DMA'd; Buffered(1) -> single buffer).
    act_spec = pl.BlockSpec((TB, Dp), lambda i: (i, 0))
    if single_buffer_weights:
        resident = lambda a: pl.BlockSpec(a.shape, lambda i: (0,) * a.ndim,
                                          pipeline_mode=pl.Buffered(1))
    else:
        resident = lambda a: pl.BlockSpec(a.shape, lambda i: (0,) * a.ndim)

    w_and_b = (prep["we1"], prep["be1"], prep["we2"], prep["be2"],
               prep["wd1"], prep["bd1"], prep["wd2"], prep["bd2"])

    flops = 2 * Bp * (Dp * Hp + Hp * Lp + Lp * Hp + Hp * Dp)
    bytes_accessed = (
        Bp * Dp * (x.dtype.itemsize + jnp.dtype(out_dtype).itemsize)
        + sum(int(a.size) * a.dtype.itemsize for a in w_and_b))

    cp_kwargs = dict(dimension_semantics=("parallel",))  # megacore on v7x
    vmem = _vmem_limit_bytes()
    if vmem is not None:
        cp_kwargs["vmem_limit_bytes"] = vmem

    out = pl.pallas_call(
        _autoencoder_kernel,
        out_shape=jax.ShapeDtypeStruct((Bp, Dp), out_dtype),
        grid=grid,
        in_specs=[act_spec] + [resident(a) for a in w_and_b],
        out_specs=pl.BlockSpec((TB, Dp), lambda i: (i, 0)),
        compiler_params=pltpu.CompilerParams(**cp_kwargs),
        cost_estimate=pl.CostEstimate(flops=flops, transcendentals=0,
                                      bytes_accessed=bytes_accessed),
    )(x, *w_and_b)

    if Bp != B or Dp != D_in:
        out = out[:B, :D_in]
    return out


# ----------------------------------------------------------------------------
# Parameters + reference
# ----------------------------------------------------------------------------
def init_params(key, d_in, hidden, latent):
    """Deterministic synthetic f32 parameters (not a checkpoint load)."""
    ks = jax.random.split(key, 8)
    scale = lambda fan_in: 1.0 / jnp.sqrt(jnp.float32(fan_in))
    return {
        "we1": jax.random.normal(ks[0], (d_in, hidden), jnp.float32) * scale(d_in),
        "be1": jax.random.normal(ks[1], (1, hidden), jnp.float32) * 0.01,
        "we2": jax.random.normal(ks[2], (hidden, latent), jnp.float32) * scale(hidden),
        "be2": jax.random.normal(ks[3], (1, latent), jnp.float32) * 0.01,
        "wd1": jax.random.normal(ks[4], (latent, hidden), jnp.float32) * scale(latent),
        "bd1": jax.random.normal(ks[5], (1, hidden), jnp.float32) * 0.01,
        "wd2": jax.random.normal(ks[6], (hidden, d_in), jnp.float32) * scale(hidden),
        "bd2": jax.random.normal(ks[7], (1, d_in), jnp.float32) * 0.01,
    }


def _reference(x, p, *, emulate_bf16):
    cast = (lambda a: a.astype(jnp.bfloat16)) if emulate_bf16 else (lambda a: a)
    dot = functools.partial(jnp.dot, preferred_element_type=jnp.float32)
    h = jnp.maximum(dot(cast(x), cast(p["we1"])) + p["be1"], 0.0)
    z = dot(cast(h), cast(p["we2"])) + p["be2"]
    g = jnp.maximum(dot(cast(z), cast(p["wd1"])) + p["bd1"], 0.0)
    return dot(cast(g), cast(p["wd2"])) + p["bd2"]


# ----------------------------------------------------------------------------
# Demo / correctness check
# ----------------------------------------------------------------------------
if __name__ == "__main__":
    key = jax.random.PRNGKey(0)
    k_x, k_p = jax.random.split(key)

    # Small, grid-exercising shapes: two batch tiles of 256 rows.
    B, D_IN, HIDDEN, LATENT = 512, 256, 256, 64
    x_f32 = jax.random.normal(k_x, (B, D_IN), jnp.float32)
    params = init_params(k_p, D_IN, HIDDEN, LATENT)

    prep = prepare_params(params)            # one-time: pad + cast to bf16
    x = x_f32.astype(jnp.bfloat16)           # bf16 activation input

    try:
        out = jax.block_until_ready(autoencoder_forward(x, prep))
    except Exception:
        # This jax/libtpu build rejected pipeline_mode=pl.Buffered(1);
        # fall back to default (double) buffering for the resident weights.
        out = jax.block_until_ready(
            autoencoder_forward(x, prep, single_buffer_weights=False))

    ref_bf16 = _reference(x_f32, params, emulate_bf16=True).astype(jnp.bfloat16)
    ref_f32 = _reference(x_f32, params, emulate_bf16=False)

    assert out.shape == (B, D_IN), out.shape
    assert out.dtype == jnp.bfloat16, out.dtype
    out_f32 = out.astype(jnp.float32)
    assert jnp.allclose(out_f32, ref_bf16.astype(jnp.float32),
                        atol=3e-2, rtol=3e-2), "mismatch vs bf16 reference"
    assert jnp.allclose(out_f32, ref_f32,
                        atol=1.5e-1, rtol=1.5e-1), "mismatch vs f32 reference"

    print("KERNEL_OK")
</pallas_src>

<mosaic_0001>
module attributes {stable_mosaic.version = 11 : i64} {
  func.func @_autoencoder_kernel(%arg0: i32, %arg1: memref<256x256xbf16, #tpu.memory_space<vmem>>, %arg2: memref<256x256xbf16, #tpu.memory_space<vmem>>, %arg3: memref<1x256xf32, #tpu.memory_space<vmem>>, %arg4: memref<256x128xbf16, #tpu.memory_space<vmem>>, %arg5: memref<1x128xf32, #tpu.memory_space<vmem>>, %arg6: memref<128x256xbf16, #tpu.memory_space<vmem>>, %arg7: memref<1x256xf32, #tpu.memory_space<vmem>>, %arg8: memref<256x256xbf16, #tpu.memory_space<vmem>>, %arg9: memref<1x256xf32, #tpu.memory_space<vmem>>, %arg10: memref<256x256xbf16, #tpu.memory_space<vmem>>) attributes {dimension_semantics = [#tpu.dimension_semantics<parallel>], iteration_bounds = array<i64: 2>, scalar_prefetch = 0 : i64, scratch_operands = 0 : i64, tpu.core_type = #tpu.core_type<tc>, window_params = [{transform_indices = @transform_0, window_bounds = array<i64: 256, 256>}, {pipeline_mode = #tpu.pipeline_mode<synchronous>, transform_indices = @transform_1, window_bounds = array<i64: 256, 256>}, {pipeline_mode = #tpu.pipeline_mode<synchronous>, transform_indices = @transform_2, window_bounds = array<i64: 1, 256>}, {pipeline_mode = #tpu.pipeline_mode<synchronous>, transform_indices = @transform_3, window_bounds = array<i64: 256, 128>}, {pipeline_mode = #tpu.pipeline_mode<synchronous>, transform_indices = @transform_4, window_bounds = array<i64: 1, 128>}, {pipeline_mode = #tpu.pipeline_mode<synchronous>, transform_indices = @transform_5, window_bounds = array<i64: 128, 256>}, {pipeline_mode = #tpu.pipeline_mode<synchronous>, transform_indices = @transform_6, window_bounds = array<i64: 1, 256>}, {pipeline_mode = #tpu.pipeline_mode<synchronous>, transform_indices = @transform_7, window_bounds = array<i64: 256, 256>}, {pipeline_mode = #tpu.pipeline_mode<synchronous>, transform_indices = @transform_8, window_bounds = array<i64: 1, 256>}, {transform_indices = @transform_9, window_bounds = array<i64: 256, 256>}]} {
    %c0 = arith.constant 0 : index
    %c0_0 = arith.constant 0 : index
    %0 = vector.load %arg1[%c0, %c0_0] : memref<256x256xbf16, #tpu.memory_space<vmem>>, vector<256x256xbf16>
    %c0_1 = arith.constant 0 : index
    %c0_2 = arith.constant 0 : index
    %1 = vector.load %arg2[%c0_1, %c0_2] : memref<256x256xbf16, #tpu.memory_space<vmem>>, vector<256x256xbf16>
    %cst = arith.constant dense<0.000000e+00> : vector<256x256xf32>
    %2 = tpu.matmul %0, %1, %cst {dimension_numbers = #tpu.dot_dimension_numbers<[1], [0], [0], [1], [0, 0, 1, 1], [], []>} : vector<256x256xbf16>, vector<256x256xbf16>, vector<256x256xf32> -> vector<256x256xf32>
    %c0_3 = arith.constant 0 : index
    %c0_4 = arith.constant 0 : index
    %3 = vector.load %arg3[%c0_3, %c0_4] : memref<1x256xf32, #tpu.memory_space<vmem>>, vector<1x256xf32>
    %4 = vector.broadcast %3 : vector<1x256xf32> to vector<256x256xf32>
    %5 = arith.addf %2, %4 : vector<256x256xf32>
    %cst_5 = arith.constant 0.000000e+00 : f32
    %6 = vector.broadcast %cst_5 : f32 to vector<256x256xf32>
    %7 = arith.maximumf %5, %6 : vector<256x256xf32>
    %8 = arith.truncf %7 : vector<256x256xf32> to vector<256x256xbf16>
    %c0_6 = arith.constant 0 : index
    %c0_7 = arith.constant 0 : index
    %9 = vector.load %arg4[%c0_6, %c0_7] : memref<256x128xbf16, #tpu.memory_space<vmem>>, vector<256x128xbf16>
    %cst_8 = arith.constant dense<0.000000e+00> : vector<256x128xf32>
    %10 = tpu.matmul %8, %9, %cst_8 {dimension_numbers = #tpu.dot_dimension_numbers<[1], [0], [0], [1], [0, 0, 1, 1], [], []>} : vector<256x256xbf16>, vector<256x128xbf16>, vector<256x128xf32> -> vector<256x128xf32>
    %c0_9 = arith.constant 0 : index
    %c0_10 = arith.constant 0 : index
    %11 = vector.load %arg5[%c0_9, %c0_10] : memref<1x128xf32, #tpu.memory_space<vmem>>, vector<1x128xf32>
    %12 = vector.broadcast %11 : vector<1x128xf32> to vector<256x128xf32>
    %13 = arith.addf %10, %12 : vector<256x128xf32>
    %14 = arith.truncf %13 : vector<256x128xf32> to vector<256x128xbf16>
    %c0_11 = arith.constant 0 : index
    %c0_12 = arith.constant 0 : index
    %15 = vector.load %arg6[%c0_11, %c0_12] : memref<128x256xbf16, #tpu.memory_space<vmem>>, vector<128x256xbf16>
    %cst_13 = arith.constant dense<0.000000e+00> : vector<256x256xf32>
    %16 = tpu.matmul %14, %15, %cst_13 {dimension_numbers = #tpu.dot_dimension_numbers<[1], [0], [0], [1], [0, 0, 1, 1], [], []>} : vector<256x128xbf16>, vector<128x256xbf16>, vector<256x256xf32> -> vector<256x256xf32>
    %c0_14 = arith.constant 0 : index
    %c0_15 = arith.constant 0 : index
    %17 = vector.load %arg7[%c0_14, %c0_15] : memref<1x256xf32, #tpu.memory_space<vmem>>, vector<1x256xf32>
    %18 = vector.broadcast %17 : vector<1x256xf32> to vector<256x256xf32>
    %19 = arith.addf %16, %18 : vector<256x256xf32>
    %cst_16 = arith.constant 0.000000e+00 : f32
    %20 = vector.broadcast %cst_16 : f32 to vector<256x256xf32>
    %21 = arith.maximumf %19, %20 : vector<256x256xf32>
    %22 = arith.truncf %21 : vector<256x256xf32> to vector<256x256xbf16>
    %c0_17 = arith.constant 0 : index
    %c0_18 = arith.constant 0 : index
    %23 = vector.load %arg8[%c0_17, %c0_18] : memref<256x256xbf16, #tpu.memory_space<vmem>>, vector<256x256xbf16>
    %cst_19 = arith.constant dense<0.000000e+00> : vector<256x256xf32>
    %24 = tpu.matmul %22, %23, %cst_19 {dimension_numbers = #tpu.dot_dimension_numbers<[1], [0], [0], [1], [0, 0, 1, 1], [], []>} : vector<256x256xbf16>, vector<256x256xbf16>, vector<256x256xf32> -> vector<256x256xf32>
    %c0_20 = arith.constant 0 : index
    %c0_21 = arith.constant 0 : index
    %25 = vector.load %arg9[%c0_20, %c0_21] : memref<1x256xf32, #tpu.memory_space<vmem>>, vector<1x256xf32>
    %26 = vector.broadcast %25 : vector<1x256xf32> to vector<256x256xf32>
    %27 = arith.addf %24, %26 : vector<256x256xf32>
    %28 = arith.truncf %27 : vector<256x256xf32> to vector<256x256xbf16>
    %c0_22 = arith.constant 0 : index
    %c0_23 = arith.constant 0 : index
    %29 = vector.load %arg10[%c0_22, %c0_23] : memref<256x256xbf16, #tpu.memory_space<vmem>>, vector<256x256xbf16>
    tpu.vector_store %arg10[%c0_22, %c0_23], %28 {strides = array<i32>} : memref<256x256xbf16, #tpu.memory_space<vmem>>, vector<256x256xbf16>,
    return
  }
  func.func @transform_0(%arg0: i32) -> (i32, i32) {
    %c0_i32 = arith.constant 0 : i32
    %c0_i32_0 = arith.constant 0 : i32
    return %arg0, %c0_i32 : i32, i32
  }
  func.func @transform_1(%arg0: i32) -> (i32, i32) {
    %c0_i32 = arith.constant 0 : i32
    %c0_i32_0 = arith.constant 0 : i32
    %c0_i32_1 = arith.constant 0 : i32
    return %c0_i32, %c0_i32_0 : i32, i32
  }
  func.func @transform_2(%arg0: i32) -> (i32, i32) {
    %c0_i32 = arith.constant 0 : i32
    %c0_i32_0 = arith.constant 0 : i32
    %c0_i32_1 = arith.constant 0 : i32
    return %c0_i32, %c0_i32_0 : i32, i32
  }
  func.func @transform_3(%arg0: i32) -> (i32, i32) {
    %c0_i32 = arith.constant 0 : i32
    %c0_i32_0 = arith.constant 0 : i32
    %c0_i32_1 = arith.constant 0 : i32
    return %c0_i32, %c0_i32_0 : i32, i32
  }
  func.func @transform_4(%arg0: i32) -> (i32, i32) {
    %c0_i32 = arith.constant 0 : i32
    %c0_i32_0 = arith.constant 0 : i32
    %c0_i32_1 = arith.constant 0 : i32
    return %c0_i32, %c0_i32_0 : i32, i32
  }
  func.func @transform_5(%arg0: i32) -> (i32, i32) {
    %c0_i32 = arith.constant 0 : i32
    %c0_i32_0 = arith.constant 0 : i32
    %c0_i32_1 = arith.constant 0 : i32
    return %c0_i32, %c0_i32_0 : i32, i32
  }
  func.func @transform_6(%arg0: i32) -> (i32, i32) {
    %c0_i32 = arith.constant 0 : i32
    %c0_i32_0 = arith.constant 0 : i32
    %c0_i32_1 = arith.constant 0 : i32
    return %c0_i32, %c0_i32_0 : i32, i32
  }
  func.func @transform_7(%arg0: i32) -> (i32, i32) {
    %c0_i32 = arith.constant 0 : i32
    %c0_i32_0 = arith.constant 0 : i32
    %c0_i32_1 = arith.constant 0 : i32
    return %c0_i32, %c0_i32_0 : i32, i32
  }
  func.func @transform_8(%arg0: i32) -> (i32, i32) {
    %c0_i32 = arith.constant 0 : i32
    %c0_i32_0 = arith.constant 0 : i32
    %c0_i32_1 = arith.constant 0 : i32
    return %c0_i32, %c0_i32_0 : i32, i32
  }
  func.func @transform_9(%arg0: i32) -> (i32, i32) {
    %c0_i32 = arith.constant 0 : i32
    %c0_i32_0 = arith.constant 0 : i32
    return %arg0, %c0_i32 : i32, i32
  }
}

module attributes {stable_mosaic.version = 11 : i64} {
  func.func @_autoencoder_kernel(%arg0: i32, %arg1: memref<256x256xbf16, #tpu.memory_space<vmem>>, %arg2: memref<256x256xbf16, #tpu.memory_space<vmem>>, %arg3: memref<1x256xf32, #tpu.memory_space<vmem>>, %arg4: memref<256x128xbf16, #tpu.memory_space<vmem>>, %arg5: memref<1x128xf32, #tpu.memory_space<vmem>>, %arg6: memref<128x256xbf16, #tpu.memory_space<vmem>>, %arg7: memref<1x256xf32, #tpu.memory_space<vmem>>, %arg8: memref<256x256xbf16, #tpu.memory_space<vmem>>, %arg9: memref<1x256xf32, #tpu.memory_space<vmem>>, %arg10: memref<256x256xbf16, #tpu.memory_space<vmem>>) attributes {dimension_semantics = [#tpu.dimension_semantics<parallel>], iteration_bounds = array<i64: 2>, scalar_prefetch = 0 : i64, scratch_operands = 0 : i64, tpu.core_type = #tpu.core_type<tc>, window_params = [{transform_indices = @transform_0, window_bounds = array<i64: 256, 256>}, {pipeline_mode = #tpu.pipeline_mode<synchronous>, transform_indices = @transform_1, window_bounds = array<i64: 256, 256>}, {pipeline_mode = #tpu.pipeline_mode<synchronous>, transform_indices = @transform_2, window_bounds = array<i64: 1, 256>}, {pipeline_mode = #tpu.pipeline_mode<synchronous>, transform_indices = @transform_3, window_bounds = array<i64: 256, 128>}, {pipeline_mode = #tpu.pipeline_mode<synchronous>, transform_indices = @transform_4, window_bounds = array<i64: 1, 128>}, {pipeline_mode = #tpu.pipeline_mode<synchronous>, transform_indices = @transform_5, window_bounds = array<i64: 128, 256>}, {pipeline_mode = #tpu.pipeline_mode<synchronous>, transform_indices = @transform_6, window_bounds = array<i64: 1, 256>}, {pipeline_mode = #tpu.pipeline_mode<synchronous>, transform_indices = @transform_7, window_bounds = array<i64: 256, 256>}, {pipeline_mode = #tpu.pipeline_mode<synchronous>, transform_indices = @transform_8, window_bounds = array<i64: 1, 256>}, {transform_indices = @transform_9, window_bounds = array<i64: 256, 256>}]} {
    %c0 = arith.constant 0 : index
    %c0_0 = arith.constant 0 : index
    %0 = vector.load %arg1[%c0, %c0_0] : memref<256x256xbf16, #tpu.memory_space<vmem>>, vector<256x256xbf16>
    %c0_1 = arith.constant 0 : index
    %c0_2 = arith.constant 0 : index
    %1 = vector.load %arg2[%c0_1, %c0_2] : memref<256x256xbf16, #tpu.memory_space<vmem>>, vector<256x256xbf16>
    %cst = arith.constant dense<0.000000e+00> : vector<256x256xf32>
    %2 = tpu.matmul %0, %1, %cst {dimension_numbers = #tpu.dot_dimension_numbers<[1], [0], [0], [1], [0, 0, 1, 1], [], []>} : vector<256x256xbf16>, vector<256x256xbf16>, vector<256x256xf32> -> vector<256x256xf32>
    %c0_3 = arith.constant 0 : index
    %c0_4 = arith.constant 0 : index
    %3 = vector.load %arg3[%c0_3, %c0_4] : memref<1x256xf32, #tpu.memory_space<vmem>>, vector<1x256xf32>
    %4 = vector.broadcast %3 : vector<1x256xf32> to vector<256x256xf32>
    %5 = arith.addf %2, %4 : vector<256x256xf32>
    %cst_5 = arith.constant 0.000000e+00 : f32
    %6 = vector.broadcast %cst_5 : f32 to vector<256x256xf32>
    %7 = arith.maximumf %5, %6 : vector<256x256xf32>
    %8 = arith.truncf %7 : vector<256x256xf32> to vector<256x256xbf16>
    %c0_6 = arith.constant 0 : index
    %c0_7 = arith.constant 0 : index
    %9 = vector.load %arg4[%c0_6, %c0_7] : memref<256x128xbf16, #tpu.memory_space<vmem>>, vector<256x128xbf16>
    %cst_8 = arith.constant dense<0.000000e+00> : vector<256x128xf32>
    %10 = tpu.matmul %8, %9, %cst_8 {dimension_numbers = #tpu.dot_dimension_numbers<[1], [0], [0], [1], [0, 0, 1, 1], [], []>} : vector<256x256xbf16>, vector<256x128xbf16>, vector<256x128xf32> -> vector<256x128xf32>
    %c0_9 = arith.constant 0 : index
    %c0_10 = arith.constant 0 : index
    %11 = vector.load %arg5[%c0_9, %c0_10] : memref<1x128xf32, #tpu.memory_space<vmem>>, vector<1x128xf32>
    %12 = vector.broadcast %11 : vector<1x128xf32> to vector<256x128xf32>
    %13 = arith.addf %10, %12 : vector<256x128xf32>
    %14 = arith.truncf %13 : vector<256x128xf32> to vector<256x128xbf16>
    %c0_11 = arith.constant 0 : index
    %c0_12 = arith.constant 0 : index
    %15 = vector.load %arg6[%c0_11, %c0_12] : memref<128x256xbf16, #tpu.memory_space<vmem>>, vector<128x256xbf16>
    %cst_13 = arith.constant dense<0.000000e+00> : vector<256x256xf32>
    %16 = tpu.matmul %14, %15, %cst_13 {dimension_numbers = #tpu.dot_dimension_numbers<[1], [0], [0], [1], [0, 0, 1, 1], [], []>} : vector<256x128xbf16>, vector<128x256xbf16>, vector<256x256xf32> -> vector<256x256xf32>
    %c0_14 = arith.constant 0 : index
    %c0_15 = arith.constant 0 : index
    %17 = vector.load %arg7[%c0_14, %c0_15] : memref<1x256xf32, #tpu.memory_space<vmem>>, vector<1x256xf32>
    %18 = vector.broadcast %17 : vector<1x256xf32> to vector<256x256xf32>
    %19 = arith.addf %16, %18 : vector<256x256xf32>
    %cst_16 = arith.constant 0.000000e+00 : f32
    %20 = vector.broadcast %cst_16 : f32 to vector<256x256xf32>
    %21 = arith.maximumf %19, %20 : vector<256x256xf32>
    %22 = arith.truncf %21 : vector<256x256xf32> to vector<256x256xbf16>
    %c0_17 = arith.constant 0 : index
    %c0_18 = arith.constant 0 : index
    %23 = vector.load %arg8[%c0_17, %c0_18] : memref<256x256xbf16, #tpu.memory_space<vmem>>, vector<256x256xbf16>
    %cst_19 = arith.constant dense<0.000000e+00> : vector<256x256xf32>
    %24 = tpu.matmul %22, %23, %cst_19 {dimension_numbers = #tpu.dot_dimension_numbers<[1], [0], [0], [1], [0, 0, 1, 1], [], []>} : vector<256x256xbf16>, vector<256x256xbf16>, vector<256x256xf32> -> vector<256x256xf32>
    %c0_20 = arith.constant 0 : index
    %c0_21 = arith.constant 0 : index
    %25 = vector.load %arg9[%c0_20, %c0_21] : memref<1x256xf32, #tpu.memory_space<vmem>>, vector<1x256xf32>
    %26 = vector.broadcast %25 : vector<1x256xf32> to vector<256x256xf32>
    %27 = arith.addf %24, %26 : vector<256x256xf32>
    %28 = arith.truncf %27 : vector<256x256xf32> to vector<256x256xbf16>
    %c0_22 = arith.constant 0 : index
    %c0_23 = arith.constant 0 : index
    %29 = vector.load %arg10[%c0_22, %c0_23] : memref<256x256xbf16, #tpu.memory_space<vmem>>, vector<256x256xbf16>
    tpu.vector_store %arg10[%c0_22, %c0_23], %28 {strides = array<i32>} : memref<256x256xbf16, #tpu.memory_space<vmem>>, vector<256x256xbf16>,
    return
  }
  func.func @transform_0(%arg0: i32) -> (i32, i32) {
    %c0_i32 = arith.constant 0 : i32
    %c0_i32_0 = arith.constant 0 : i32
    return %arg0, %c0_i32 : i32, i32
  }
  func.func @transform_1(%arg0: i32) -> (i32, i32) {
    %c0_i32 = arith.constant 0 : i32
    %c0_i32_0 = arith.constant 0 : i32
    %c0_i32_1 = arith.constant 0 : i32
    return %c0_i32, %c0_i32_0 : i32, i32
  }
  func.func @transform_2(%arg0: i32) -> (i32, i32) {
    %c0_i32 = arith.constant 0 : i32
    %c0_i32_0 = arith.constant 0 : i32
    %c0_i32_1 = arith.constant 0 : i32
    return %c0_i32, %c0_i32_0 : i32, i32
  }
  func.func @transform_3(%arg0: i32) -> (i32, i32) {
    %c0_i32 = arith.constant 0 : i32
    %c0_i32_0 = arith.constant 0 : i32
    %c0_i32_1 = arith.constant 0 : i32
    return %c0_i32, %c0_i32_0 : i32, i32
  }
  func.func @transform_4(%arg0: i32) -> (i32, i32) {
    %c0_i32 = arith.constant 0 : i32
    %c0_i32_0 = arith.constant 0 : i32
    %c0_i32_1 = arith.constant 0 : i32
    return %c0_i32, %c0_i32_0 : i32, i32
  }
  func.func @transform_5(%arg0: i32) -> (i32, i32) {
    %c0_i32 = arith.constant 0 : i32
    %c0_i32_0 = arith.constant 0 : i32
    %c0_i32_1 = arith.constant 0 : i32
    return %c0_i32, %c0_i32_0 : i32, i32
  }
  func.func @transform_6(%arg0: i32) -> (i32, i32) {
    %c0_i32 = arith.constant 0 : i32
    %c0_i32_0 = arith.constant 0 : i32
    %c0_i32_1 = arith.constant 0 : i32
    return %c0_i32, %c0_i32_0 : i32, i32
  }
  func.func @transform_7(%arg0: i32) -> (i32, i32) {
    %c0_i32 = arith.constant 0 : i32
    %c0_i32_0 = arith.constant 0 : i32
    %c0_i32_1 = arith.constant 0 : i32
    return %c0_i32, %c0_i32_0 : i32, i32
  }
  func.func @transform_8(%arg0: i32) -> (i32, i32) {
    %c0_i32 = arith.constant 0 : i32
    %c0_i32_0 = arith.constant 0 : i32
    %c0_i32_1 = arith.constant 0 : i32
    return %c0_i32, %c0_i32_0 : i32, i32
  }
  func.func @transform_9(%arg0: i32) -> (i32, i32) {
    %c0_i32 = arith.constant 0 : i32
    %c0_i32_0 = arith.constant 0 : i32
    return %arg0, %c0_i32 : i32, i32
  }
}

</mosaic_0001>

<bundles_post_ra>
// kernel: tpu_custom_call.1
= control target key start
LH: loop header
LB: loop body
LE: loop exit
PB: predicated region body
PF: predicated region fallthrough
CT: control target
= control target key end

     0   :  { %s4116_s0 = inlined_call_operand.hbm [shape: bf16[512,256], index: 0, kind: input, shape index: {}]   ;;  %s4117_s1 = inlined_call_operand.hbm [shape: bf16[256,256], index: 1, kind: input, shape index: {}]   ;;  %s4118_s2 = inlined_call_operand.vmem [shape: f32[1,256], index: 2, kind: input, shape index: {}]   ;;  %s4119_s3 = inlined_call_operand.hbm [shape: bf16[256,128], index: 3, kind: input, shape index: {}]   ;;  %s4120_s4 = inlined_call_operand.vmem [shape: f32[1,128], index: 4, kind: input, shape index: {}]   ;;  %s4121_s5 = inlined_call_operand.hbm [shape: bf16[128,256], index: 5, kind: input, shape index: {}]   ;;  %s4122_s6 = inlined_call_operand.vmem [shape: f32[1,256], index: 6, kind: input, shape index: {}]   ;;  %s4123_s7 = inlined_call_operand.hbm [shape: bf16[256,256], index: 7, kind: input, shape index: {}]   ;;  %s4124_s8 = inlined_call_operand.vmem [shape: f32[1,256], index: 8, kind: input, shape index: {}]   ;;  %s4125_s9 = inlined_call_operand.hbm [shape: bf16[512,256], index: 9, kind: output, shape index: {}]  }
   0x1   :  { %4136 = sst [smem:[#allocation18_spill]] %s4125_s9 }
   0x2   :  { %14 = vsyncpa [#allocation3], 0 }
   0x3   :  { %16 = vsyncpa [#allocation3 + $0x1], 0 }
   0x4   :  { %17 = vsyncpa [#allocation6], 0 }
   0x5   :  { %18 = vsyncpa [#allocation9], 0 }
   0x6   :  { %19 = vsyncpa [#allocation4], 0 }
   0x7   :  { %21 = vsyncpa [#allocation4 + $0x1], 0  ;;  %s3478_s30 = smov 0   ;;  %s3480_s10 = smov 0  }
   0x8   :  { %s3482_s11 = smov 0   ;;  %s3484_s12 = smov 0  }
   0x9 LB: > { %4137 = sst [smem:[#allocation16_spill]] %s3401_s30  ;;  %s3499_s13 = sadd.s32 4294967295, %s3413_s12   ;;  %s3413_s12 = sphi %s3484_s12, %s4163_s12   ;;  %s3409_s11 = sphi %s3482_s11, %s4162_s11   ;;  %s3405_s10 = sphi %s3480_s10, %s4161_s10   ;;  %s3401_s30 = sphi %s3478_s30, %s4160_s30  }
   0xa   : > { %s2554_s14 = sadd.s32 4294967294, %s3413_s12   ;;  %p47_p0 = scmp.ne.s32.totalorder %s3405_s10, %s3401_s30 }
   0xb   : > { %p4126_p1 = scmp.eq.s32.totalorder %s3499_s13, 0  ;;  %p245_p3 = scmp.eq.s32.totalorder %s2554_s14, 1 }
   0xc   : > { %p2555_p5 = scmp.ge.s32.totalorder %s3413_s12, 1  ;;  %p252_p7 = scmp.lt.s32.totalorder %s3413_s12, 3 }
   0xd   : > { %p3508_p4 = por %p4126_p1, %p47_p0  ;;  %p3513_p6 = por %p245_p3, %p47_p0 }
   0xe   : > { %p3518_p8 = pnand %p2555_p5, %p252_p7  ;;  %s3415_s18 = smov [#allocation5]  }
   0xf   : > { %s4138_s15 = scalar_select %p3508_p4, 1, 0 }
  0x10   : > { %s4139_s16 = scalar_select %p3513_p6, 1, 0 }
  0x11   : > { %s4141_s17 = scalar_select %p3518_p8, 1, 0 }
  0x12   : > { %4140 = sst [smem:[#allocation17_spill]] %s4139_s16  ;;  %s264_s19 = sshll.u32 %s3415_s18, 4  ;;  %s3522_s19 = int_to_ptr.vmem [resolvable:$true] %s264_s19 }
  0x13   : > { %p2939_p9 = pneg %p3518_p8  ;;  %s3416_s21 = smov [#allocation8]  }
  0x14   : > { %s296_s22 = sshll.u32 %s3416_s21, 4  ;;  %s3417_s23 = smov [#allocation7]   ;;  %s3533_s22 = int_to_ptr.vmem [resolvable:$true] %s296_s22 }
  0x15   : > { %p3529_p11 = pnand %p2939_p9, %p4126_p1  ;;  %s3535_s24 = sshll.u32 %s3417_s23, 4  ;;  %s281_s24 = int_to_ptr.vmem [resolvable:$true] %s3535_s24 }
  0x16   : > { %s3197_s27 = scalar_lea.hbm %s4117_s1, 4096 }
  0x17   : > { %p3198_p12 = scmp.ne.s32.totalorder %s4117_s1, %s3197_s27  ;;  %p3545_p13 = pneg %p3529_p11 }
  0x18   : > { %p3204_p5 = scmp.lt.u32.totalorder %s3197_s27, %s4117_s1 }
  0x19   : > { %p3200_p0 = pnand %p3545_p13, %p3198_p12 }
  0x1b   : > { %p3201_p3 = pneg %p3200_p0 }
  0x1d   : > { %p3206_p7 = pnand %p3204_p5, %p3201_p3 }
  0x1f   : > { %3209 = shalt.err (!%p3206_p7)
}
  0x20   : > { %s3210_s23 = scalar_lea.vmem %s3522_s19, 4096  ;;  %p3218_p2 = scmp.lt.s32.totalorder %s3522_s19, %s3522_s19 }
  0x21   : > { %p3211_p9 = scmp.ne.s32.totalorder %s3522_s19, %s3210_s23  ;;  %p3219_p6 = scmp.lt.s32.totalorder %s3210_s23, %s3210_s23 }
  0x23   : > { %p3213_p10 = pnand %p3211_p9, %p3545_p13  ;;  %p3220_p12 = por %p3219_p6, %p3218_p2 }
  0x25   : > { %p3214_p1 = pneg %p3213_p10 }
  0x27   : > { %p3221_p0 = pnand %p3220_p12, %p3214_p1 }
  0x29   : > { %3224 = shalt.err (!%p3221_p0)
}
  0x2a   : > { %s4132_s25 = smov 128   ;;  %s4134_s26 = smov 8  }
  0x2b   : > { %2942 = dma.hbm_to_vmem [thread:$0]  (!%p3529_p11), %s4117_s1, 4096, %s3522_s19, [#allocation6], %s4132_s25, %s4132_s25, %s4134_s26  }
  0x2c   : > { %s3225_s21 = scalar_lea.hbm %s4121_s5, 2048 }
  0x2d   : > { %p3226_p1 = scmp.ne.s32.totalorder %s4121_s5, %s3225_s21  ;;  %p3232_p10 = scmp.lt.u32.totalorder %s3225_s21, %s4121_s5 }
  0x2f   : > { %p3228_p2 = pnand %p3226_p1, %p3545_p13 }
  0x31   : > { %p3229_p6 = pneg %p3228_p2 }
  0x33   : > { %p3234_p3 = pnand %p3232_p10, %p3229_p6 }
  0x35   : > { %3237 = shalt.err (!%p3234_p3)
}
  0x36   : > { %s3238_s19 = scalar_lea.vmem %s3533_s22, 2048  ;;  %p3246_p12 = scmp.lt.s32.totalorder %s3533_s22, %s3533_s22 }
  0x37   : > { %p3239_p5 = scmp.ne.s32.totalorder %s3533_s22, %s3238_s19  ;;  %p3247_p0 = scmp.lt.s32.totalorder %s3238_s19, %s3238_s19 }
  0x39   : > { %p3241_p7 = pnand %p3239_p5, %p3545_p13  ;;  %p3248_p1 = por %p3247_p0, %p3246_p12 }
  0x3b   : > { %p3242_p9 = pneg %p3241_p7 }
  0x3d   : > { %p3249_p2 = pnand %p3248_p1, %p3242_p9 }
  0x3f   : > { %3252 = shalt.err (!%p3249_p2)
}
  0x40   : > { %2948 = dma.hbm_to_vmem [thread:$0]  (!%p3529_p11), %s4121_s5, 2048, %s3533_s22, [#allocation9], %s4132_s25, %s4132_s25, %s4134_s26  }
  0x41   : > { %s3253_s28 = scalar_lea.hbm %s4119_s3, 2048 }
  0x42   : > { %p3254_p6 = scmp.ne.s32.totalorder %s4119_s3, %s3253_s28  ;;  %p3260_p5 = scmp.lt.u32.totalorder %s3253_s28, %s4119_s3 }
  0x44   : > { %p3256_p10 = pnand %p3254_p6, %p3545_p13 }
  0x46   : > { %p3257_p3 = pneg %p3256_p10 }
  0x48   : > { %p3262_p7 = pnand %p3260_p5, %p3257_p3 }
  0x4a   : > { %3265 = shalt.err (!%p3262_p7)
}
  0x4b   : > { %s3266_s19 = scalar_lea.vmem %s281_s24, 2048  ;;  %p3274_p1 = scmp.lt.s32.totalorder %s281_s24, %s281_s24 }
  0x4c   : > { %p3267_p9 = scmp.ne.s32.totalorder %s281_s24, %s3266_s19  ;;  %p3275_p2 = scmp.lt.s32.totalorder %s3266_s19, %s3266_s19 }
  0x4e   : > { %p3269_p12 = pnand %p3267_p9, %p3545_p13  ;;  %p3276_p4 = por %p3275_p2, %p3274_p1 }
  0x50   : > { %p3270_p0 = pneg %p3269_p12 }
  0x52   : > { %p3277_p8 = pnand %p3276_p4, %p3270_p0 }
  0x54   : > { %3280 = shalt.err (!%p3277_p8)
}
  0x55   : > { %s3420_s22 = smov 64   ;;  %s3421_s9 = smov 4  }
  0x56   : > { %2945 = dma.hbm_to_vmem [thread:$0]  (!%p3529_p11), %s4119_s3, 2048, %s281_s24, [#allocation6], %s3420_s22, %s3420_s22, %s3421_s9  }
  0x57   : > { %s3422_s27 = smov [#allocation10]   ;;  %s3281_s21 = scalar_lea.hbm %s4123_s7, 4096 }
  0x58   : > { %s312_s28 = sshll.u32 %s3422_s27, 4  ;;  %p3282_p4 = scmp.ne.s32.totalorder %s4123_s7, %s3281_s21  ;;  %s313_s28 = int_to_ptr.vmem [resolvable:$true] %s312_s28 }
  0x59   : > { %p3288_p10 = scmp.lt.u32.totalorder %s3281_s21, %s4123_s7 }
  0x5a   : > { %p3284_p8 = pnand %p3282_p4, %p3545_p13 }
  0x5c   : > { %p3285_p6 = pneg %p3284_p8 }
  0x5e   : > { %p3290_p3 = pnand %p3288_p10, %p3285_p6 }
  0x60   : > { %3293 = shalt.err (!%p3290_p3)
}
  0x61   : > { %s3294_s24 = scalar_lea.vmem %s313_s28, 4096  ;;  %p3302_p12 = scmp.lt.s32.totalorder %s313_s28, %s313_s28 }
  0x62   : > { %p3295_p5 = scmp.ne.s32.totalorder %s313_s28, %s3294_s24  ;;  %p3303_p0 = scmp.lt.s32.totalorder %s3294_s24, %s3294_s24 }
  0x64   : > { %p3297_p7 = pnand %p3295_p5, %p3545_p13  ;;  %p3304_p1 = por %p3303_p0, %p3302_p12 }
  0x66   : > { %p3298_p9 = pneg %p3297_p7 }
  0x68   : > { %p3305_p2 = pnand %p3304_p1, %p3298_p9 }
  0x6a   : > { %3308 = shalt.err (!%p3305_p2)
}
  0x6b   : > { %s4144_s22 = smov 8   ;;  %s4145_s9 = smov 128  }
  0x6c   : > { %2951 = dma.hbm_to_vmem [thread:$0]  (!%p3529_p11), %s4123_s7, 4096, %s313_s28, [#allocation9], %s4145_s9, %s4145_s9, %s4144_s22  }
  0x6d   : > { %s3636_s14 = sadd.s32 1, %s3413_s12   ;;  %s34_s20 = sadd.s32 1, %s3409_s11 }
  0x6e   : > { %s31_s30 = ssub.s32 %s3413_s12, %s3636_s14  ;;  %p41_p13 = scmp.ne.s32.totalorder %s3409_s11, %s3405_s10 }
  0x6f   : > { %p32_p4 = scmp.eq.s32.totalorder %s31_s30, 0  ;;  %p42_p8 = scmp.eq.s32.totalorder %s3413_s12, 0 }
  0x70   : > { %p4146_p6 = scmp.eq.s32.totalorder %s3499_s13, 1  ;;  %p2964_p3 = scmp.lt.s32.totalorder %s3413_s12, 2 }
  0x71   : > { %s3652_s27 = scalar_select %p32_p4, %s3409_s11, %s34_s20  }
  0x72   : > { %p3646_p10 = por %p4146_p6, %p41_p13  ;;  %p43_p5 = por %p42_p8, %p41_p13 }
  0x73   : > { %s329_s29 = sand.u32 1, %s3409_s11   ;;  %s2740_s28 = sshll.u32 %s3413_s12, 12 }
  0x74   : > { %s2561_s18 = sshll.u32 %s329_s29, 8  ;;  %s3659_s19 = scalar_lea.hbm %s4116_s0, %s2740_s28 }
  0x75   : > { %s333_s24 = scalar_lea.vmem [#allocation2], %s2561_s18  ;;  %p3663_p11 = pnand %p2964_p3, %p43_p5 }
  0x76   : > { %s341_s25 = sshll.u32 %s333_s24, 4  ;;  %s3667_s20 = scalar_lea.sflag [#allocation3], %s329_s29  ;;  %s3661_s25 = int_to_ptr.vmem [resolvable:$true] %s341_s25 }
  0x77   : > { %s3309_s30 = scalar_lea.hbm %s3659_s19, 4096  ;;  %p3311_p9 = pneg %p3663_p11 }
  0x78   : > { %p3310_p7 = scmp.ne.s32.totalorder %s3659_s19, %s3309_s30  ;;  %s3314_s21 = scalar_lea.hbm %s4116_s0, 8192 }
  0x79   : > { %p3315_p1 = scmp.lt.u32.totalorder %s3659_s19, %s4116_s0  ;;  %p3316_p2 = scmp.lt.u32.totalorder %s3314_s21, %s3309_s30 }
  0x7a   : > { %p3312_p12 = pnand %p3311_p9, %p3310_p7  ;;  %p3318_p4 = scmp.lt.u32.totalorder %s3309_s30, %s3659_s19 }
  0x7b   : > { %p3317_p13 = por %p3316_p2, %p3315_p1 }
  0x7c   : > { %p3313_p0 = pneg %p3312_p12 }
  0x7d   : > { %p3319_p8 = por %p3318_p4, %p3317_p13 }
  0x7f   : > { %p3320_p6 = pnand %p3319_p8, %p3313_p0 }
  0x81   : > { %3323 = shalt.err (!%p3320_p6)
}
  0x82   : > { %s3324_s29 = scalar_lea.vmem %s3661_s25, 4096  ;;  %s3423_s18 = smov [#allocation2]  }
  0x83   : > { %p3325_p3 = scmp.ne.s32.totalorder %s3661_s25, %s3324_s29  ;;  %s3329_s28 = sshll.u32 %s3423_s18, 4  ;;  %s3330_s28 = int_to_ptr.vmem [resolvable:$false] %s3329_s28 }
  0x84   : > { %s3331_s23 = scalar_lea.vmem %s3330_s28, 8192  ;;  %p3332_p12 = scmp.lt.s32.totalorder %s3661_s25, %s3330_s28 }
  0x85   : > { %p3327_p5 = pnand %p3325_p3, %p3311_p9  ;;  %p3333_p1 = scmp.lt.s32.totalorder %s3331_s23, %s3324_s29 }
  0x87   : > { %p3328_p7 = pneg %p3327_p5  ;;  %p3334_p2 = por %p3333_p1, %p3332_p12 }
  0x89   : > { %p3335_p13 = pnand %p3334_p2, %p3328_p7 }
  0x8b   : > { %3338 = shalt.err (!%p3335_p13)
}
  0x8c   : > { %2955 = dma.hbm_to_vmem [thread:$0]  (!%p3663_p11), %s3659_s19, 4096, %s3661_s25, %s3667_s20, %s4145_s9, %s4145_s9, %s4144_s22  }
  0x8d   : > { %p4149_p9 = scmp.ne.s32.totalorder %s4141_s17, 0 }
  0x8e   : > { %s3701_s30 = sand.u32 (!%p4149_p9), 1, %s3405_s10   ;;  %p4150_p0 = scmp.ne.s32.totalorder (!%p4149_p9), %s4138_s15, 0 }
  0x8f   : > { %353 = sbr.rel (%p4149_p9) target bundleno = 1242 (0x4da), region = 56  ;;  %s2566_s21 = sshll.u32 (!%p4149_p9), %s3701_s30, 8 }
  0x90   : > { %s356_s24 = scalar_lea.sflag (!%p4149_p9), [#allocation3], %s3701_s30  ;;  %s3707_s26 = scalar_lea.vmem (!%p4149_p9), [#allocation2], %s2566_s21 }
  0x96   : > { %3384 = dma.done.wait (%p4150_p0), %s356_s24, 4096  }
  0x97   : > { %3386 = vsyncadd (%p4150_p0), %s356_s24, 4294963200  ;;  %p4151_p11 = scmp.eq.s32.totalorder %s3499_s13, 0 }
  0x99   : > { %3388 = dma.done.wait (%p4151_p11), [#allocation6], 6144   ;;  %p4152_p4 = pmov %p4151_p11 }
  0x9b   : > { %3390 = vsyncadd (%p4152_p4), [#allocation6], 4294961152  ;;  %p4153_p8 = pmov %p4152_p4 }
  0x9c   : > { %p4154_p6 = pmov %p4152_p4 }
  0x9d   : > { %3392 = dma.done.wait (%p4153_p8), [#allocation9], 6144  }
  0x9e   : > { %3394 = vsyncadd (%p4154_p6), [#allocation9], 4294961152  ;;  %v3013_v0 = vld [vmem:[#allocation5 + $0x4] ss:$8 sps:$4 sm:$0xff]   ;;  %v3015_v1 = vld [vmem:[#allocation5] ss:$8 sps:$4 sm:$0xff]  }
  0x9f   : > { %809 = vmatprep.subr.bf16.mxu0 %v3013_v0  ;;  %v3016_v2 = vld [vmem:[#allocation5 + $0x14] ss:$8 sps:$4 sm:$0xff]   ;;  %v3018_v3 = vld [vmem:[#allocation5 + $0x10] ss:$8 sps:$4 sm:$0xff]   ;;  %v3019_v4 = vld [vmem:[#allocation5 + $0x24] ss:$8 sps:$4 sm:$0xff]  }
  0xa0   : > { %810 = vmatpush1.bf16.msra.mxu0 %v3015_v1  ;;  %v3021_v5 = vld [vmem:[#allocation5 + $0x20] ss:$8 sps:$4 sm:$0xff]   ;;  %v3022_v6 = vld [vmem:[#allocation5 + $0x34] ss:$8 sps:$4 sm:$0xff]   ;;  %v3024_v7 = vld [vmem:[#allocation5 + $0x30] ss:$8 sps:$4 sm:$0xff]  }
  0xa1   : > { %811 = vmatprep.subr.bf16.mxu0 %v3016_v2  ;;  %v3025_v8 = vld [vmem:[#allocation5 + $0x44] ss:$8 sps:$4 sm:$0xff]   ;;  %v3027_v9 = vld [vmem:[#allocation5 + $0x40] ss:$8 sps:$4 sm:$0xff]   ;;  %v3028_v10 = vld [vmem:[#allocation5 + $0x54] ss:$8 sps:$4 sm:$0xff]  }
  0xa2   : > { %v3030_v11 = vld [vmem:[#allocation5 + $0x50] ss:$8 sps:$4 sm:$0xff]   ;;  %v3031_v12 = vld [vmem:[#allocation5 + $0x64] ss:$8 sps:$4 sm:$0xff]   ;;  %v3033_v14 = vld [vmem:[#allocation5 + $0x60] ss:$8 sps:$4 sm:$0xff]  }
  0xa3   : > { %v3063_v13 = vld [vmem:[%s3707_s26 + $0x4] ss:$8 sps:$4 sm:$0xff]   ;;  %v3034_v15 = vld [vmem:[#allocation5 + $0x74] ss:$8 sps:$4 sm:$0xff]   ;;  %v3036_v16 = vld [vmem:[#allocation5 + $0x70] ss:$8 sps:$4 sm:$0xff]  }
  0xa4   : > { %812 = vmatpush1.bf16.msra.mxu0 %v3018_v3  ;;  %841 = vmatprep.mubr.bf16.mxu0 %v3063_v13  ;;  %v3037_v17 = vld [vmem:[#allocation5 + $0x84] ss:$8 sps:$4 sm:$0xff]   ;;  %v3039_v18 = vld [vmem:[#allocation5 + $0x80] ss:$8 sps:$4 sm:$0xff]   ;;  %v3040_v19 = vld [vmem:[#allocation5 + $0x94] ss:$8 sps:$4 sm:$0xff]  }
  0xa5   : > { %813 = vmatprep.subr.bf16.mxu0 %v3019_v4  ;;  %v3042_v20 = vld [vmem:[#allocation5 + $0x90] ss:$8 sps:$4 sm:$0xff]   ;;  %v3043_v21 = vld [vmem:[#allocation5 + $0xa4] ss:$8 sps:$4 sm:$0xff]   ;;  %v3045_v22 = vld [vmem:[#allocation5 + $0xa0] ss:$8 sps:$4 sm:$0xff]  }
  0xa6   : > { %v3046_v23 = vld [vmem:[#allocation5 + $0xb4] ss:$8 sps:$4 sm:$0xff]   ;;  %v3048_v24 = vld [vmem:[#allocation5 + $0xb0] ss:$8 sps:$4 sm:$0xff]   ;;  %v3049_v25 = vld [vmem:[#allocation5 + $0xc4] ss:$8 sps:$4 sm:$0xff]  }
  0xa7   : > { %v3051_v26 = vld [vmem:[#allocation5 + $0xc0] ss:$8 sps:$4 sm:$0xff]   ;;  %v3052_v27 = vld [vmem:[#allocation5 + $0xd4] ss:$8 sps:$4 sm:$0xff]   ;;  %v3054_v28 = vld [vmem:[#allocation5 + $0xd0] ss:$8 sps:$4 sm:$0xff]  }
  0xa8   : > { %814 = vmatpush1.bf16.msra.mxu0 %v3021_v5  ;;  %v3055_v29 = vld [vmem:[#allocation5 + $0xe4] ss:$8 sps:$4 sm:$0xff]   ;;  %v3057_v30 = vld [vmem:[#allocation5 + $0xe0] ss:$8 sps:$4 sm:$0xff]   ;;  %v3058_v31 = vld [vmem:[#allocation5 + $0xf4] ss:$8 sps:$4 sm:$0xff]  }
  0xa9   : > { %815 = vmatprep.subr.bf16.mxu0 %v3022_v6  ;;  %v3109_v32 = vld [vmem:[#allocation7 + $0x40] sm:$0xff]   ;;  %v3111_v34 = vld [vmem:[#allocation7 + $0x48] sm:$0xff]   ;;  %v3060_v35 = vld [vmem:[#allocation5 + $0xf0] ss:$8 sps:$4 sm:$0xff]   ;;  %s3971_s18 = scalar_lea.vmem [#allocation11], %s2566_s21  ;;  %s2774_s28 = sshll.u32 %s3499_s13, 12 }
  0xaa   : > { %v3110_v33 = vld [vmem:[#allocation7] sm:$0xff]   ;;  %2775 = vmatprep.subr.bf16.mxu1 %v3109_v32  ;;  %v3064_v37 = vld [vmem:[%s3707_s26 + $0x14] ss:$8 sps:$4 sm:$0xff]   ;;  %v3112_v38 = vld [vmem:[#allocation7 + $0x8] sm:$0xff]   ;;  %s2443_s23 = sshll.u32 %s3971_s18, 4  ;;  %s2429_s13 = scalar_lea.sflag [#allocation4], %s3701_s30  ;;  %s4070_s23 = int_to_ptr.vmem [resolvable:$true] %s2443_s23 }
  0xab   : > { %v3061_v36 = vld [vmem:[%s3707_s26] ss:$8 sps:$4 sm:$0xff]   ;;  %2776 = vmatpush3.bf16.msra.mxu1 %v3110_v33  ;;  %v3113_v39 = vld [vmem:[#allocation7 + $0x50] sm:$0xff]   ;;  %v3115_v41 = vld [vmem:[#allocation7 + $0x58] sm:$0xff]   ;;  %s3339_s17 = scalar_lea.vmem %s4070_s23, 4096  ;;  %s3425_s22 = smov [#allocation11]  }
  0xac   : > { %816 = vmatpush1.bf16.msra.mxu0 %v3024_v7  ;;  %2777 = vmatprep.subr.bf16.mxu1 %v3111_v34  ;;  %v3114_v40 = vld [vmem:[#allocation7 + $0x10] sm:$0xff]   ;;  %v3116_v42 = vld [vmem:[#allocation7 + $0x18] sm:$0xff]   ;;  %v3117_v44 = vld [vmem:[#allocation7 + $0x60] sm:$0xff]   ;;  %p3340_p3 = scmp.ne.s32.totalorder %s4070_s23, %s3339_s17  ;;  %s3343_s9 = sshll.u32 %s3425_s22, 4  ;;  %s3344_s9 = int_to_ptr.vmem [resolvable:$false] %s3343_s9 }
  0xad   : > { %817 = vmatprep.subr.bf16.mxu0 %v3025_v8  ;;  %v3066_v43 = vld [vmem:[%s3707_s26 + $0x10] ss:$8 sps:$4 sm:$0xff]   ;;  %v3067_v45 = vld [vmem:[%s3707_s26 + $0x24] ss:$8 sps:$4 sm:$0xff]   ;;  %v3069_v48 = vld [vmem:[%s3707_s26 + $0x20] ss:$8 sps:$4 sm:$0xff]   ;;  %p3346_p12 = scmp.lt.s32.totalorder %s4070_s23, %s3344_s9 }
  0xae   : > { %v3118_v46 = vld [vmem:[#allocation7 + $0x20] sm:$0xff]   ;;  %v3119_v47 = vld [vmem:[#allocation7 + $0x68] sm:$0xff]   ;;  %v3070_v49 = vld [vmem:[%s3707_s26 + $0x34] ss:$8 sps:$4 sm:$0xff]   ;;  %p3341_p5 = pnand %p3340_p3, %p3646_p10  ;;  %s3345_s19 = scalar_lea.vmem %s3344_s9, 8192 }
  0xaf   : > { %2778 = vmatpush3.bf16.msra.mxu1 %v3112_v38  ;;  %v3072_v50 = vld [vmem:[%s3707_s26 + $0x30] ss:$8 sps:$4 sm:$0xff]   ;;  %v3073_v51 = vld [vmem:[%s3707_s26 + $0x44] ss:$8 sps:$4 sm:$0xff]   ;;  %v3075_v52 = vld [vmem:[%s3707_s26 + $0x40] ss:$8 sps:$4 sm:$0xff]   ;;  %p3347_p1 = scmp.lt.s32.totalorder %s3345_s19, %s3339_s17 }
  0xb0   : > { %818 = vmatpush1.bf16.msra.mxu0 %v3027_v9  ;;  %2779 = vmatprep.subr.bf16.mxu1 %v3113_v39  ;;  %v3076_v53 = vld [vmem:[%s3707_s26 + $0x54] ss:$8 sps:$4 sm:$0xff]   ;;  %v3078_v54 = vld [vmem:[%s3707_s26 + $0x50] ss:$8 sps:$4 sm:$0xff]   ;;  %v3079_v55 = vld [vmem:[%s3707_s26 + $0x64] ss:$8 sps:$4 sm:$0xff]   ;;  %p3342_p7 = pneg %p3341_p5 }
  0xb1   : > { %819 = vmatprep.subr.bf16.mxu0 %v3028_v10  ;;  %v3081_v56 = vld [vmem:[%s3707_s26 + $0x60] ss:$8 sps:$4 sm:$0xff]   ;;  %v3082_v57 = vld [vmem:[%s3707_s26 + $0x74] ss:$8 sps:$4 sm:$0xff]   ;;  %v3084_v58 = vld [vmem:[%s3707_s26 + $0x70] ss:$8 sps:$4 sm:$0xff]   ;;  %p3348_p2 = por %p3347_p1, %p3346_p12 }
  0xb2   : > { %v3085_v59 = vld [vmem:[%s3707_s26 + $0x84] ss:$8 sps:$4 sm:$0xff]   ;;  %v3087_v60 = vld [vmem:[%s3707_s26 + $0x80] ss:$8 sps:$4 sm:$0xff]   ;;  %v3088_v61 = vld [vmem:[%s3707_s26 + $0x94] ss:$8 sps:$4 sm:$0xff]  }
  0xb3   : > { %2780 = vmatpush3.bf16.msra.mxu1 %v3114_v40  ;;  %v3090_v62 = vld [vmem:[%s3707_s26 + $0x90] ss:$8 sps:$4 sm:$0xff]   ;;  %v3091_v63 = vld [vmem:[%s3707_s26 + $0xa4] ss:$8 sps:$4 sm:$0xff]   ;;  %v3093_v0 = vld [vmem:[%s3707_s26 + $0xa0] ss:$8 sps:$4 sm:$0xff]   ;;  %p3349_p13 = pnand %p3348_p2, %p3342_p7 }
  0xb4   : > { %820 = vmatpush1.bf16.msra.mxu0 %v3030_v11  ;;  %2781 = vmatprep.subr.bf16.mxu1 %v3115_v41  ;;  %v3094_v1 = vld [vmem:[%s3707_s26 + $0xb4] ss:$8 sps:$4 sm:$0xff]   ;;  %v3120_v2 = vld [vmem:[#allocation7 + $0x28] sm:$0xff]   ;;  %v3096_v3 = vld [vmem:[%s3707_s26 + $0xb0] ss:$8 sps:$4 sm:$0xff]  }
  0xb5   : > { %821 = vmatprep.subr.bf16.mxu0 %v3031_v12  ;;  %v3121_v4 = vld [vmem:[#allocation7 + $0x70] sm:$0xff]   ;;  %v3097_v5 = vld [vmem:[%s3707_s26 + $0xc4] ss:$8 sps:$4 sm:$0xff]   ;;  %v3123_v7 = vld [vmem:[#allocation7 + $0x78] sm:$0xff]  }
  0xb6   : > { %v3122_v6 = vld [vmem:[#allocation7 + $0x30] sm:$0xff]   ;;  %v3124_v8 = vld [vmem:[#allocation7 + $0x38] sm:$0xff]   ;;  %v3099_v9 = vld [vmem:[%s3707_s26 + $0xc0] ss:$8 sps:$4 sm:$0xff]  }
  0xb7   : > { %2782 = vmatpush3.bf16.msra.mxu1 %v3116_v42  ;;  %v3100_v10 = vld [vmem:[%s3707_s26 + $0xd4] ss:$8 sps:$4 sm:$0xff]   ;;  %v3102_v11 = vld [vmem:[%s3707_s26 + $0xd0] ss:$8 sps:$4 sm:$0xff]   ;;  %v3103_v12 = vld [vmem:[%s3707_s26 + $0xe4] ss:$8 sps:$4 sm:$0xff]  }
  0xb8   : > { %822 = vmatpush1.bf16.msra.mxu0 %v3033_v14  ;;  %2783 = vmatprep.subr.bf16.mxu1 %v3117_v44  ;;  %v3105_v13 = vld [vmem:[%s3707_s26 + $0xe0] ss:$8 sps:$4 sm:$0xff]   ;;  %v3106_v14 = vld [vmem:[%s3707_s26 + $0xf4] ss:$8 sps:$4 sm:$0xff]  }
  0xb9   : > { %823 = vmatprep.subr.bf16.mxu0 %v3034_v15  ;;  %v3108_v15 = vld [vmem:[%s3707_s26 + $0xf0] ss:$8 sps:$4 sm:$0xff]   ;;  %v3125_v39 = vld [vmem:[#allocation8] ss:$8 sps:$4 sm:$0xff]   ;;  %v3130_v42 = vld [vmem:[#allocation8 + $0x14] ss:$8 sps:$4 sm:$0xff]  }
  0xba   : > { %s4155_s26 = sld [smem:[#allocation18_spill]] }
  0xbb   : > { %2784 = vmatpush3.bf16.msra.mxu1 %v3118_v46 }
  0xbc   : > { %824 = vmatpush1.bf16.msra.mxu0 %v3036_v16  ;;  %2785 = vmatprep.subr.bf16.mxu1 %v3119_v47  ;;  %v3127_v16 = vld [vmem:[#allocation8 + $0x4] ss:$8 sps:$4 sm:$0xff]  }
  0xbd   : > { %825 = vmatprep.subr.bf16.mxu0 %v3037_v17  ;;  %v479_v17 = vlaneseq }
  0xbf   : > { %2786 = vmatpush3.bf16.msra.mxu1 %v3120_v2  ;;  %v3134_v2 = vld [vmem:[#allocation8 + $0x30] ss:$8 sps:$4 sm:$0xff]  }
  0xc0   : > { %826 = vmatpush1.bf16.msra.mxu0 %v3039_v18  ;;  %2787 = vmatprep.subr.bf16.mxu1 %v3121_v4  ;;  %v480_v18 = vshrl.u32 %v479_v17, 7  ;;  %s4068_s15 = scalar_lea.hbm %s4155_s26, %s2774_s28 }
  0xc1   : > { %827 = vmatprep.subr.bf16.mxu0 %v3040_v19 }
  0xc2   : > { %v3753_v19 = vsub.s32 0, %v480_v18 }
  0xc3   : > { %2788 = vmatpush3.bf16.msra.mxu1 %v3122_v6 }
  0xc4   : > { %828 = vmatpush1.bf16.msra.mxu0 %v3042_v20  ;;  %2789 = vmatprep.subr.bf16.mxu1 %v3123_v7  ;;  %v477_v20 = vld [vmem:[%s4118_s2] sm:$0x3] }
  0xc5   : > { %829 = vmatprep.subr.bf16.mxu0 %v3043_v21  ;;  %v3758_v21 = vsub.s32 1, %v480_v18 }
  0xc7   : > { %2790 = vmatpush3.bf16.msra.mxu1 %v3124_v8 }
  0xc8   : > { %830 = vmatpush1.bf16.msra.mxu0 %v3045_v22  ;;  %1518 = vmatprep.subr.bf16.mxu1 %v3127_v16  ;;  %v3761_v22 = vrot.slane %v477_v20, %v3753_v19 }
  0xc9   : > { %831 = vmatprep.subr.bf16.mxu0 %v3046_v23  ;;  %v3764_v23 = vrot.slane %v477_v20, %v3758_v21 }
  0xcc   : > { %832 = vmatpush1.bf16.msra.mxu0 %v3048_v24 }
  0xcd   : > { %833 = vmatprep.subr.bf16.mxu0 %v3049_v25 }
  0xd0   : > { %834 = vmatpush1.bf16.msra.mxu0 %v3051_v26 }
  0xd1   : > { %835 = vmatprep.subr.bf16.mxu0 %v3052_v27 }
  0xd4   : > { %836 = vmatpush1.bf16.msra.mxu0 %v3054_v28 }
  0xd5   : > { %837 = vmatprep.subr.bf16.mxu0 %v3055_v29 }
  0xd8   : > { %838 = vmatpush1.bf16.msra.mxu0 %v3057_v30 }
  0xd9   : > { %839 = vmatprep.subr.bf16.mxu0 %v3058_v31 }
  0xdc   : > { %840 = vmatpush1.bf16.msra.mxu0 %v3060_v35 }
  0xdf   : > { %842 = vmatmul.mubr.bf16.vlgmr.msra.gmra.mrb[0].mxu0 %v3061_v36 }
  0xe0   : > { %851 = vmatprep.mubr.bf16.mxu0 %v3064_v37 }
  0xe7   : > { %852 = vmatmul.mubr.bf16.gmra.mrb[4].mxu0 %v3066_v43 }
  0xe8   : > { %861 = vmatprep.mubr.bf16.mxu0 %v3067_v45 }
  0xef   : > { %862 = vmatmul.mubr.bf16.gmra.mrb[8].mxu0 %v3069_v48  ;;  %v3128_v48 = vld [vmem:[#allocation8 + $0x10] ss:$8 sps:$4 sm:$0xff]  }
  0xf0   : > { %871 = vmatprep.mubr.bf16.mxu0 %v3070_v49 }
  0xf7   : > { %872 = vmatmul.mubr.bf16.gmra.mrb[12].mxu0 %v3072_v50 }
  0xf8   : > { %881 = vmatprep.mubr.bf16.mxu0 %v3073_v51  ;;  %v3133_v51 = vld [vmem:[#allocation8 + $0x24] ss:$8 sps:$4 sm:$0xff]  }
  0xff   : > { %882 = vmatmul.mubr.bf16.gmra.mrb[16].mxu0 %v3075_v52 }
 0x100   : > { %891 = vmatprep.mubr.bf16.mxu0 %v3076_v53 }
 0x107   : > { %892 = vmatmul.mubr.bf16.gmra.mrb[20].mxu0 %v3078_v54 }
 0x108   : > { %901 = vmatprep.mubr.bf16.mxu0 %v3079_v55 }
 0x10f   : > { %902 = vmatmul.mubr.bf16.gmra.mrb[24].mxu0 %v3081_v56 }
 0x110   : > { %911 = vmatprep.mubr.bf16.mxu0 %v3082_v57  ;;  %v3131_v57 = vld [vmem:[#allocation8 + $0x20] ss:$8 sps:$4 sm:$0xff]  }
 0x117   : > { %912 = vmatmul.mubr.bf16.gmra.mrb[28].mxu0 %v3084_v58 }
 0x118   : > { %921 = vmatprep.mubr.bf16.mxu0 %v3085_v59 }
 0x11f   : > { %922 = vmatmul.mubr.bf16.gmra.mrb[32].mxu0 %v3087_v60  ;;  %v3136_v60 = vld [vmem:[#allocation8 + $0x34] ss:$8 sps:$4 sm:$0xff]  }
 0x120   : > { %931 = vmatprep.mubr.bf16.mxu0 %v3088_v61 }
 0x127   : > { %932 = vmatmul.mubr.bf16.gmra.mrb[36].mxu0 %v3090_v62 }
 0x128   : > { %941 = vmatprep.mubr.bf16.mxu0 %v3091_v63 }
 0x12f   : > { %942 = vmatmul.mubr.bf16.gmra.mrb[40].mxu0 %v3093_v0 }
 0x130   : > { %951 = vmatprep.mubr.bf16.mxu0 %v3094_v1 }
 0x137   : > { %952 = vmatmul.mubr.bf16.gmra.mrb[44].mxu0 %v3096_v3 }
 0x138   : > { %961 = vmatprep.mubr.bf16.mxu0 %v3097_v5  ;;  %v3139_v5 = vld [vmem:[#allocation8 + $0x44] ss:$8 sps:$4 sm:$0xff]  }
 0x13f   : > { %962 = vmatmul.mubr.bf16.gmra.mrb[48].mxu0 %v3099_v9 }
 0x140   : > { %971 = vmatprep.mubr.bf16.mxu0 %v3100_v10 }
 0x147   : > { %972 = vmatmul.mubr.bf16.gmra.mrb[52].mxu0 %v3102_v11  ;;  %v3137_v11 = vld [vmem:[#allocation8 + $0x40] ss:$8 sps:$4 sm:$0xff]  }
 0x148   : > { %981 = vmatprep.mubr.bf16.mxu0 %v3103_v12 }
 0x14f   : > { %982 = vmatmul.mubr.bf16.gmra.mrb[56].mxu0 %v3105_v13 }
 0x150   : > { %991 = vmatprep.mubr.bf16.mxu0 %v3106_v14  ;;  %v3142_v14 = vld [vmem:[#allocation8 + $0x54] ss:$8 sps:$4 sm:$0xff]  }
 0x157   : > { %992 = vmatmul.mubr.bf16.gmra.mrb[60].mxu0 %v3108_v15 }
 0x1b2   : > { %v843_v24 = vpop.f32.mrb[0].mxu0 }
 0x1b3   : > { %v844_v25 = vadd.f32 %v843_v24, %v3761_v22  ;;  %v845_v26 = vpop.f32.mrb[1].mxu0  ;;  %v3140_v24 = vld [vmem:[#allocation8 + $0x50] ss:$8 sps:$4 sm:$0xff]  }
 0x1b4   : > { %v846_v27 = vadd.f32 %v845_v26, %v3764_v23  ;;  %v847_v28 = vpop.f32.mrb[2].mxu0 }
 0x1b5   : > { %v848_v29 = vadd.f32 %v847_v28, %v3761_v22  ;;  %v849_v30 = vpop.f32.mrb[3].mxu0  ;;  %v1002_v32 = vmax.f32 %v844_v25, 0.0 }
 0x1b6   : > { %v850_v31 = vadd.f32 %v849_v30, %v3764_v23  ;;  %v1003_v34 = vmax.f32 %v846_v27, 0.0  ;;  %v3145_v27 = vld [vmem:[#allocation8 + $0x64] ss:$8 sps:$4 sm:$0xff]  }
 0x1b7   : > { %v1004_v33 = vmax.f32 %v848_v29, 0.0 }
 0x1b8   : > { %v1005_v35 = vmax.f32 %v850_v31, 0.0 }
 0x1b9   : > { %v1066_v36 = vpack.c.bf16 %v1004_v33, %v1002_v32  ;;  %v3143_v33 = vld [vmem:[#allocation8 + $0x60] ss:$8 sps:$4 sm:$0xff]  }
 0x1ba   : > { %v853_v37 = vpop.f32.mrb[4].mxu0  ;;  %v1067_v38 = vpack.c.bf16 %v1005_v35, %v1003_v34 }
 0x1bb   : > { %v854_v40 = vadd.f32 %v853_v37, %v3761_v22  ;;  %v855_v41 = vpop.f32.mrb[5].mxu0 }
 0x1bc   : > { %v856_v43 = vadd.f32 %v855_v41, %v3764_v23  ;;  %v857_v44 = vpop.f32.mrb[6].mxu0  ;;  %1265 = vmatprep.mubr.bf16.mxu1 %v1067_v38 }
 0x1bd   : > { %v858_v45 = vadd.f32 %v857_v44, %v3761_v22  ;;  %v859_v46 = vpop.f32.mrb[7].mxu0  ;;  %1266 = vmatmul.mubr.bf16.vlgmr.msra.gmra.mrb[0].mxu1 %v1066_v36  ;;  %v1006_v49 = vmax.f32 %v854_v40, 0.0  ;;  %v3148_v36 = vld [vmem:[#allocation8 + $0x74] ss:$8 sps:$4 sm:$0xff]  }
 0x1be   : > { %v860_v47 = vadd.f32 %v859_v46, %v3764_v23  ;;  %1519 = vmatpush1.bf16.msra.mxu1 %v3125_v39  ;;  %v1007_v52 = vmax.f32 %v856_v43, 0.0 }
 0x1bf   : > { %v1008_v50 = vmax.f32 %v858_v45, 0.0  ;;  %1520 = vmatprep.subr.bf16.mxu1 %v3130_v42  ;;  %v3146_v42 = vld [vmem:[#allocation8 + $0x70] ss:$8 sps:$4 sm:$0xff]  }
 0x1c0   : > { %v1009_v53 = vmax.f32 %v860_v47, 0.0 }
 0x1c1   : > { %v1068_v54 = vpack.c.bf16 %v1008_v50, %v1006_v49 }
 0x1c2   : > { %v1069_v55 = vpack.c.bf16 %v1009_v53, %v1007_v52  ;;  %v863_v56 = vpop.f32.mrb[8].mxu0  ;;  %1521 = vmatpush1.bf16.msra.mxu1 %v3128_v48 }
 0x1c3   : > { %v864_v58 = vadd.f32 %v863_v56, %v3761_v22  ;;  %v865_v59 = vpop.f32.mrb[9].mxu0  ;;  %1522 = vmatprep.subr.bf16.mxu1 %v3133_v51 }
 0x1c4   : > { %v866_v61 = vadd.f32 %v865_v59, %v3764_v23  ;;  %v867_v62 = vpop.f32.mrb[10].mxu0  ;;  %1273 = vmatprep.mubr.bf16.mxu1 %v1069_v55 }
 0x1c5   : > { %v868_v63 = vadd.f32 %v867_v62, %v3761_v22  ;;  %v869_v0 = vpop.f32.mrb[11].mxu0  ;;  %1274 = vmatmul.mubr.bf16.gmra.mrb[4].mxu1 %v1068_v54  ;;  %v1010_v3 = vmax.f32 %v864_v58, 0.0 }
 0x1c6   : > { %v870_v1 = vadd.f32 %v869_v0, %v3764_v23  ;;  %1523 = vmatpush1.bf16.msra.mxu1 %v3131_v57  ;;  %v1011_v6 = vmax.f32 %v866_v61, 0.0 }
 0x1c7   : > { %v1012_v4 = vmax.f32 %v868_v63, 0.0  ;;  %1524 = vmatprep.subr.bf16.mxu1 %v3136_v60 }
 0x1c8   : > { %v1013_v7 = vmax.f32 %v870_v1, 0.0 }
 0x1c9   : > { %v1070_v8 = vpack.c.bf16 %v1012_v4, %v1010_v3 }
 0x1ca   : > { %v1071_v9 = vpack.c.bf16 %v1013_v7, %v1011_v6  ;;  %v873_v10 = vpop.f32.mrb[12].mxu0  ;;  %1525 = vmatpush1.bf16.msra.mxu1 %v3134_v2 }
 0x1cb   : > { %v874_v12 = vadd.f32 %v873_v10, %v3761_v22  ;;  %v875_v13 = vpop.f32.mrb[13].mxu0  ;;  %1526 = vmatprep.subr.bf16.mxu1 %v3139_v5 }
 0x1cc   : > { %v876_v15 = vadd.f32 %v875_v13, %v3764_v23  ;;  %v877_v16 = vpop.f32.mrb[14].mxu0  ;;  %1281 = vmatprep.mubr.bf16.mxu1 %v1071_v9 }
 0x1cd   : > { %v878_v17 = vadd.f32 %v877_v16, %v3761_v22  ;;  %v879_v18 = vpop.f32.mrb[15].mxu0  ;;  %1282 = vmatmul.mubr.bf16.gmra.mrb[8].mxu1 %v1070_v8  ;;  %v1014_v25 = vmax.f32 %v874_v12, 0.0 }
 0x1ce   : > { %v880_v20 = vadd.f32 %v879_v18, %v3764_v23  ;;  %1527 = vmatpush1.bf16.msra.mxu1 %v3137_v11  ;;  %v1015_v28 = vmax.f32 %v876_v15, 0.0 }
 0x1cf   : > { %v1016_v26 = vmax.f32 %v878_v17, 0.0  ;;  %1528 = vmatprep.subr.bf16.mxu1 %v3142_v14 }
 0x1d0   : > { %v1017_v29 = vmax.f32 %v880_v20, 0.0 }
 0x1d1   : > { %v1072_v30 = vpack.c.bf16 %v1016_v26, %v1014_v25 }
 0x1d2   : > { %v1073_v31 = vpack.c.bf16 %v1017_v29, %v1015_v28  ;;  %v883_v32 = vpop.f32.mrb[16].mxu0  ;;  %1529 = vmatpush1.bf16.msra.mxu1 %v3140_v24 }
 0x1d3   : > { %v884_v34 = vadd.f32 %v883_v32, %v3761_v22  ;;  %v885_v35 = vpop.f32.mrb[17].mxu0  ;;  %1530 = vmatprep.subr.bf16.mxu1 %v3145_v27 }
 0x1d4   : > { %v886_v37 = vadd.f32 %v885_v35, %v3764_v23  ;;  %v887_v38 = vpop.f32.mrb[18].mxu0  ;;  %1289 = vmatprep.mubr.bf16.mxu1 %v1073_v31 }
 0x1d5   : > { %v888_v39 = vadd.f32 %v887_v38, %v3761_v22  ;;  %v889_v40 = vpop.f32.mrb[19].mxu0  ;;  %1290 = vmatmul.mubr.bf16.gmra.mrb[12].mxu1 %v1072_v30  ;;  %v1018_v43 = vmax.f32 %v884_v34, 0.0 }
 0x1d6   : > { %v890_v41 = vadd.f32 %v889_v40, %v3764_v23  ;;  %1531 = vmatpush1.bf16.msra.mxu1 %v3143_v33  ;;  %v1019_v45 = vmax.f32 %v886_v37, 0.0 }
 0x1d7   : > { %v1020_v44 = vmax.f32 %v888_v39, 0.0  ;;  %1532 = vmatprep.subr.bf16.mxu1 %v3148_v36 }
 0x1d8   : > { %v1021_v46 = vmax.f32 %v890_v41, 0.0 }
 0x1d9   : > { %v1074_v47 = vpack.c.bf16 %v1020_v44, %v1018_v43 }
 0x1da   : > { %v1075_v48 = vpack.c.bf16 %v1021_v46, %v1019_v45  ;;  %v893_v49 = vpop.f32.mrb[20].mxu0  ;;  %1533 = vmatpush1.bf16.msra.mxu1 %v3146_v42 }
 0x1db   : > { %v894_v50 = vadd.f32 %v893_v49, %v3761_v22  ;;  %v895_v51 = vpop.f32.mrb[21].mxu0 }
 0x1dc   : > { %v896_v52 = vadd.f32 %v895_v51, %v3764_v23  ;;  %v897_v53 = vpop.f32.mrb[22].mxu0  ;;  %1297 = vmatprep.mubr.bf16.mxu1 %v1075_v48 }
 0x1dd   : > { %v898_v54 = vadd.f32 %v897_v53, %v3761_v22  ;;  %v899_v55 = vpop.f32.mrb[23].mxu0  ;;  %1298 = vmatmul.mubr.bf16.gmra.mrb[16].mxu1 %v1074_v47  ;;  %v1022_v57 = vmax.f32 %v894_v50, 0.0 }
 0x1de   : > { %v900_v56 = vadd.f32 %v899_v55, %v3764_v23  ;;  %v1023_v59 = vmax.f32 %v896_v52, 0.0 }
 0x1df   : > { %v1024_v58 = vmax.f32 %v898_v54, 0.0 }
 0x1e0   : > { %v1025_v60 = vmax.f32 %v900_v56, 0.0 }
 0x1e1   : > { %v1076_v61 = vpack.c.bf16 %v1024_v58, %v1022_v57 }
 0x1e2   : > { %v1077_v62 = vpack.c.bf16 %v1025_v60, %v1023_v59  ;;  %v903_v63 = vpop.f32.mrb[24].mxu0 }
 0x1e3   : > { %v904_v0 = vadd.f32 %v903_v63, %v3761_v22  ;;  %v905_v1 = vpop.f32.mrb[25].mxu0 }
 0x1e4   : > { %v906_v2 = vadd.f32 %v905_v1, %v3764_v23  ;;  %v907_v3 = vpop.f32.mrb[26].mxu0  ;;  %1305 = vmatprep.mubr.bf16.mxu1 %v1077_v62 }
 0x1e5   : > { %v908_v4 = vadd.f32 %v907_v3, %v3761_v22  ;;  %v909_v5 = vpop.f32.mrb[27].mxu0  ;;  %1306 = vmatmul.mubr.bf16.gmra.mrb[20].mxu1 %v1076_v61  ;;  %v1026_v7 = vmax.f32 %v904_v0, 0.0 }
 0x1e6   : > { %v910_v6 = vadd.f32 %v909_v5, %v3764_v23  ;;  %v1027_v9 = vmax.f32 %v906_v2, 0.0 }
 0x1e7   : > { %v1028_v8 = vmax.f32 %v908_v4, 0.0 }
 0x1e8   : > { %v1029_v10 = vmax.f32 %v910_v6, 0.0 }
 0x1e9   : > { %v1078_v11 = vpack.c.bf16 %v1028_v8, %v1026_v7 }
 0x1ea   : > { %v1079_v12 = vpack.c.bf16 %v1029_v10, %v1027_v9  ;;  %v913_v13 = vpop.f32.mrb[28].mxu0 }
 0x1eb   : > { %v914_v14 = vadd.f32 %v913_v13, %v3761_v22  ;;  %v915_v15 = vpop.f32.mrb[29].mxu0 }
 0x1ec   : > { %v916_v16 = vadd.f32 %v915_v15, %v3764_v23  ;;  %v917_v17 = vpop.f32.mrb[30].mxu0  ;;  %1313 = vmatprep.mubr.bf16.mxu1 %v1079_v12 }
 0x1ed   : > { %v918_v18 = vadd.f32 %v917_v17, %v3761_v22  ;;  %v919_v20 = vpop.f32.mrb[31].mxu0  ;;  %1314 = vmatmul.mubr.bf16.gmra.mrb[24].mxu1 %v1078_v11  ;;  %v1030_v25 = vmax.f32 %v914_v14, 0.0 }
 0x1ee   : > { %v920_v24 = vadd.f32 %v919_v20, %v3764_v23  ;;  %v1031_v27 = vmax.f32 %v916_v16, 0.0 }
 0x1ef   : > { %v1032_v26 = vmax.f32 %v918_v18, 0.0 }
 0x1f0   : > { %v1033_v28 = vmax.f32 %v920_v24, 0.0 }
 0x1f1   : > { %v1080_v29 = vpack.c.bf16 %v1032_v26, %v1030_v25 }
 0x1f2   : > { %v1081_v30 = vpack.c.bf16 %v1033_v28, %v1031_v27  ;;  %v923_v31 = vpop.f32.mrb[32].mxu0 }
 0x1f3   : > { %v924_v32 = vadd.f32 %v923_v31, %v3761_v22  ;;  %v925_v33 = vpop.f32.mrb[33].mxu0 }
 0x1f4   : > { %v926_v34 = vadd.f32 %v925_v33, %v3764_v23  ;;  %v927_v35 = vpop.f32.mrb[34].mxu0  ;;  %1321 = vmatprep.mubr.bf16.mxu1 %v1081_v30 }
 0x1f5   : > { %v928_v36 = vadd.f32 %v927_v35, %v3761_v22  ;;  %v929_v37 = vpop.f32.mrb[35].mxu0  ;;  %1322 = vmatmul.mubr.bf16.gmra.mrb[28].mxu1 %v1080_v29  ;;  %v1034_v39 = vmax.f32 %v924_v32, 0.0 }
 0x1f6   : > { %v930_v38 = vadd.f32 %v929_v37, %v3764_v23  ;;  %v1035_v41 = vmax.f32 %v926_v34, 0.0 }
 0x1f7   : > { %v1036_v40 = vmax.f32 %v928_v36, 0.0 }
 0x1f8   : > { %v1037_v42 = vmax.f32 %v930_v38, 0.0 }
 0x1f9   : > { %v1082_v43 = vpack.c.bf16 %v1036_v40, %v1034_v39 }
 0x1fa   : > { %v1083_v44 = vpack.c.bf16 %v1037_v42, %v1035_v41  ;;  %v933_v45 = vpop.f32.mrb[36].mxu0 }
 0x1fb   : > { %v934_v46 = vadd.f32 %v933_v45, %v3761_v22  ;;  %v935_v47 = vpop.f32.mrb[37].mxu0 }
 0x1fc   : > { %v936_v48 = vadd.f32 %v935_v47, %v3764_v23  ;;  %v937_v49 = vpop.f32.mrb[38].mxu0  ;;  %1329 = vmatprep.mubr.bf16.mxu1 %v1083_v44 }
 0x1fd   : > { %v938_v50 = vadd.f32 %v937_v49, %v3761_v22  ;;  %v939_v51 = vpop.f32.mrb[39].mxu0  ;;  %1330 = vmatmul.mubr.bf16.gmra.mrb[32].mxu1 %v1082_v43  ;;  %v1038_v53 = vmax.f32 %v934_v46, 0.0 }
 0x1fe   : > { %v940_v52 = vadd.f32 %v939_v51, %v3764_v23  ;;  %v1039_v55 = vmax.f32 %v936_v48, 0.0 }
 0x1ff   : > { %v1040_v54 = vmax.f32 %v938_v50, 0.0 }
 0x200   : > { %v1041_v56 = vmax.f32 %v940_v52, 0.0 }
 0x201   : > { %v1084_v57 = vpack.c.bf16 %v1040_v54, %v1038_v53 }
 0x202   : > { %v1085_v58 = vpack.c.bf16 %v1041_v56, %v1039_v55  ;;  %v943_v59 = vpop.f32.mrb[40].mxu0 }
 0x203   : > { %v944_v60 = vadd.f32 %v943_v59, %v3761_v22  ;;  %v945_v61 = vpop.f32.mrb[41].mxu0 }
 0x204   : > { %v946_v62 = vadd.f32 %v945_v61, %v3764_v23  ;;  %v947_v63 = vpop.f32.mrb[42].mxu0  ;;  %1337 = vmatprep.mubr.bf16.mxu1 %v1085_v58 }
 0x205   : > { %v948_v0 = vadd.f32 %v947_v63, %v3761_v22  ;;  %v949_v1 = vpop.f32.mrb[43].mxu0  ;;  %1338 = vmatmul.mubr.bf16.gmra.mrb[36].mxu1 %v1084_v57  ;;  %v1042_v3 = vmax.f32 %v944_v60, 0.0 }
 0x206   : > { %v950_v2 = vadd.f32 %v949_v1, %v3764_v23  ;;  %v1043_v5 = vmax.f32 %v946_v62, 0.0 }
 0x207   : > { %v1044_v4 = vmax.f32 %v948_v0, 0.0 }
 0x208   : > { %v1045_v6 = vmax.f32 %v950_v2, 0.0 }
 0x209   : > { %v1086_v7 = vpack.c.bf16 %v1044_v4, %v1042_v3 }
 0x20a   : > { %v1087_v8 = vpack.c.bf16 %v1045_v6, %v1043_v5  ;;  %v953_v9 = vpop.f32.mrb[44].mxu0 }
 0x20b   : > { %v954_v10 = vadd.f32 %v953_v9, %v3761_v22  ;;  %v955_v11 = vpop.f32.mrb[45].mxu0 }
 0x20c   : > { %v956_v12 = vadd.f32 %v955_v11, %v3764_v23  ;;  %v957_v13 = vpop.f32.mrb[46].mxu0  ;;  %1345 = vmatprep.mubr.bf16.mxu1 %v1087_v8 }
 0x20d   : > { %v958_v14 = vadd.f32 %v957_v13, %v3761_v22  ;;  %v959_v15 = vpop.f32.mrb[47].mxu0  ;;  %1346 = vmatmul.mubr.bf16.gmra.mrb[40].mxu1 %v1086_v7  ;;  %v1046_v17 = vmax.f32 %v954_v10, 0.0 }
 0x20e   : > { %v960_v16 = vadd.f32 %v959_v15, %v3764_v23  ;;  %v1047_v20 = vmax.f32 %v956_v12, 0.0 }
 0x20f   : > { %v1048_v18 = vmax.f32 %v958_v14, 0.0 }
 0x210   : > { %v1049_v24 = vmax.f32 %v960_v16, 0.0 }
 0x211   : > { %v1088_v25 = vpack.c.bf16 %v1048_v18, %v1046_v17 }
 0x212   : > { %v1089_v26 = vpack.c.bf16 %v1049_v24, %v1047_v20  ;;  %v963_v27 = vpop.f32.mrb[48].mxu0  ;;  %v3424_v20 = vmov 0   ;;  %v3149_v24 = vld [vmem:[#allocation10] ss:$8 sps:$4 sm:$0xff]  }
 0x213   : > { %v964_v28 = vadd.f32 %v963_v27, %v3761_v22  ;;  %v965_v29 = vpop.f32.mrb[49].mxu0 }
 0x214   : > { %v966_v30 = vadd.f32 %v965_v29, %v3764_v23  ;;  %v967_v31 = vpop.f32.mrb[50].mxu0  ;;  %1353 = vmatprep.mubr.bf16.mxu1 %v1089_v26  ;;  %v3154_v26 = vld [vmem:[#allocation10 + $0x14] ss:$8 sps:$4 sm:$0xff]  }
 0x215   : > { %v968_v32 = vadd.f32 %v967_v31, %v3761_v22  ;;  %v969_v33 = vpop.f32.mrb[51].mxu0  ;;  %1354 = vmatmul.mubr.bf16.gmra.mrb[44].mxu1 %v1088_v25  ;;  %v1050_v35 = vmax.f32 %v964_v28, 0.0  ;;  %v3151_v25 = vld [vmem:[#allocation10 + $0x4] ss:$8 sps:$4 sm:$0xff]  }
 0x216   : > { %v970_v34 = vadd.f32 %v969_v33, %v3764_v23  ;;  %v1051_v37 = vmax.f32 %v966_v30, 0.0  ;;  %2011 = vmatprep.subr.bf16.mxu0 %v3151_v25  ;;  %2887 = vmatprep.subr.bf16.mxu1 %v3151_v25  ;;  %v3155_v30 = vld [vmem:[#allocation10 + $0x20] ss:$8 sps:$4 sm:$0xff]   ;;  %v3157_v31 = vld [vmem:[#allocation10 + $0x24] ss:$8 sps:$4 sm:$0xff]  }
 0x217   : > { %v1052_v36 = vmax.f32 %v968_v32, 0.0  ;;  %2012 = vmatpush1.bf16.msra.mxu0 %v3149_v24  ;;  %v3834_v32 = vld [vmem:[%s4120_s4] ss:$0 sm:$0xff] }
 0x218   : > { %v1053_v38 = vmax.f32 %v970_v34, 0.0  ;;  %2013 = vmatprep.subr.bf16.mxu0 %v3154_v26  ;;  %v3160_v34 = vld [vmem:[#allocation10 + $0x34] ss:$8 sps:$4 sm:$0xff]  }
 0x219   : > { %v1090_v39 = vpack.c.bf16 %v1052_v36, %v1050_v35  ;;  %v3158_v36 = vld [vmem:[#allocation10 + $0x30] ss:$8 sps:$4 sm:$0xff]  }
 0x21a   : > { %v1091_v40 = vpack.c.bf16 %v1053_v38, %v1051_v37  ;;  %v973_v41 = vpop.f32.mrb[52].mxu0 }
 0x21b   : > { %v974_v42 = vadd.f32 %v973_v41, %v3761_v22  ;;  %v975_v43 = vpop.f32.mrb[53].mxu0 }
 0x21c   : > { %v976_v44 = vadd.f32 %v975_v43, %v3764_v23  ;;  %v977_v45 = vpop.f32.mrb[54].mxu0  ;;  %1361 = vmatprep.mubr.bf16.mxu1 %v1091_v40  ;;  %v3161_v43 = vld [vmem:[#allocation10 + $0x40] ss:$8 sps:$4 sm:$0xff]  }
 0x21d   : > { %v978_v46 = vadd.f32 %v977_v45, %v3761_v22  ;;  %v979_v47 = vpop.f32.mrb[55].mxu0  ;;  %1362 = vmatmul.mubr.bf16.gmra.mrb[48].mxu1 %v1090_v39  ;;  %v1054_v49 = vmax.f32 %v974_v42, 0.0  ;;  %v3163_v39 = vld [vmem:[#allocation10 + $0x44] ss:$8 sps:$4 sm:$0xff]  }
 0x21e   : > { %v980_v48 = vadd.f32 %v979_v47, %v3764_v23  ;;  %v1055_v51 = vmax.f32 %v976_v44, 0.0 }
 0x21f   : > { %v1056_v50 = vmax.f32 %v978_v46, 0.0  ;;  %v3166_v46 = vld [vmem:[#allocation10 + $0x54] ss:$8 sps:$4 sm:$0xff]  }
 0x220   : > { %v1057_v52 = vmax.f32 %v980_v48, 0.0 }
 0x221   : > { %v1092_v53 = vpack.c.bf16 %v1056_v50, %v1054_v49  ;;  %v3164_v49 = vld [vmem:[#allocation10 + $0x50] ss:$8 sps:$4 sm:$0xff]  }
 0x222   : > { %v1093_v54 = vpack.c.bf16 %v1057_v52, %v1055_v51  ;;  %v983_v55 = vpop.f32.mrb[56].mxu0  ;;  %v3169_v52 = vld [vmem:[#allocation10 + $0x64] ss:$8 sps:$4 sm:$0xff]  }
 0x223   : > { %v984_v56 = vadd.f32 %v983_v55, %v3761_v22  ;;  %v985_v57 = vpop.f32.mrb[57].mxu0 }
 0x224   : > { %v986_v58 = vadd.f32 %v985_v57, %v3764_v23  ;;  %v987_v59 = vpop.f32.mrb[58].mxu0  ;;  %1369 = vmatprep.mubr.bf16.mxu1 %v1093_v54 }
 0x225   : > { %v988_v60 = vadd.f32 %v987_v59, %v3761_v22  ;;  %v989_v61 = vpop.f32.mrb[59].mxu0  ;;  %1370 = vmatmul.mubr.bf16.gmra.mrb[52].mxu1 %v1092_v53  ;;  %v1058_v63 = vmax.f32 %v984_v56, 0.0  ;;  %v3167_v56 = vld [vmem:[#allocation10 + $0x60] ss:$8 sps:$4 sm:$0xff]   ;;  %v3172_v59 = vld [vmem:[#allocation10 + $0x74] ss:$8 sps:$4 sm:$0xff]  }
 0x226   : > { %v990_v62 = vadd.f32 %v989_v61, %v3764_v23  ;;  %v1059_v1 = vmax.f32 %v986_v58, 0.0 }
 0x227   : > { %v1060_v0 = vmax.f32 %v988_v60, 0.0 }
 0x228   : > { %v1061_v2 = vmax.f32 %v990_v62, 0.0  ;;  %v3170_v62 = vld [vmem:[#allocation10 + $0x70] ss:$8 sps:$4 sm:$0xff]  }
 0x229   : > { %v1094_v3 = vpack.c.bf16 %v1060_v0, %v1058_v63 }
 0x22a   : > { %v1095_v4 = vpack.c.bf16 %v1061_v2, %v1059_v1  ;;  %v993_v5 = vpop.f32.mrb[60].mxu0  ;;  %v3175_v1 = vld [vmem:[#allocation10 + $0x84] ss:$8 sps:$4 sm:$0xff]  }
 0x22b   : > { %v994_v6 = vadd.f32 %v993_v5, %v3761_v22  ;;  %v995_v7 = vpop.f32.mrb[61].mxu0  ;;  %v3173_v5 = vld [vmem:[#allocation10 + $0x80] ss:$8 sps:$4 sm:$0xff]  }
 0x22c   : > { %v996_v8 = vadd.f32 %v995_v7, %v3764_v23  ;;  %v997_v9 = vpop.f32.mrb[62].mxu0  ;;  %1377 = vmatprep.mubr.bf16.mxu1 %v1095_v4 }
 0x22d   : > { %v998_v10 = vadd.f32 %v997_v9, %v3761_v22  ;;  %v999_v11 = vpop.f32.mrb[63].mxu0  ;;  %1378 = vmatmul.mubr.bf16.gmra.mrb[56].mxu1 %v1094_v3  ;;  %v1062_v13 = vmax.f32 %v994_v6, 0.0  ;;  %v3152_v22 = vld [vmem:[#allocation10 + $0x10] ss:$8 sps:$4 sm:$0xff]  }
 0x22e   : > { %v1000_v12 = vadd.f32 %v999_v11, %v3764_v23  ;;  %v1063_v15 = vmax.f32 %v996_v8, 0.0  ;;  %2014 = vmatpush1.bf16.msra.mxu0 %v3152_v22  ;;  %v3178_v8 = vld [vmem:[#allocation10 + $0x94] ss:$8 sps:$4 sm:$0xff]   ;;  %v3176_v11 = vld [vmem:[#allocation10 + $0x90] ss:$8 sps:$4 sm:$0xff]  }
 0x22f   : > { %v1064_v14 = vmax.f32 %v998_v10, 0.0  ;;  %2015 = vmatprep.subr.bf16.mxu0 %v3157_v31 }
 0x230   : > { %v1065_v16 = vmax.f32 %v1000_v12, 0.0 }
 0x231   : > { %v1096_v17 = vpack.c.bf16 %v1064_v14, %v1062_v13  ;;  %v3181_v14 = vld [vmem:[#allocation10 + $0xa4] ss:$8 sps:$4 sm:$0xff]  }
 0x232   : > { %v1097_v18 = vpack.c.bf16 %v1065_v16, %v1063_v15  ;;  %2016 = vmatpush1.bf16.msra.mxu0 %v3155_v30 }
 0x233   : > { %2017 = vmatprep.subr.bf16.mxu0 %v3160_v34 }
 0x234   : > { %1385 = vmatprep.mubr.bf16.mxu1 %v1097_v18  ;;  %v3179_v18 = vld [vmem:[#allocation10 + $0xa0] ss:$8 sps:$4 sm:$0xff]  }
 0x235   : > { %1386 = vmatmul.mubr.bf16.gmra.mrb[60].mxu1 %v1096_v17 }
 0x236   : > { %1550 = vmatprep.mubr.bf16.mxu1 %v3424_v20  ;;  %2018 = vmatpush1.bf16.msra.mxu0 %v3158_v36 }
 0x237   : > { %2019 = vmatprep.subr.bf16.mxu0 %v3163_v39 }
 0x23a   : > { %2020 = vmatpush1.bf16.msra.mxu0 %v3161_v43 }
 0x23b   : > { %2021 = vmatprep.subr.bf16.mxu0 %v3166_v46 }
 0x23e   : > { %2022 = vmatpush1.bf16.msra.mxu0 %v3164_v49 }
 0x23f   : > { %2023 = vmatprep.subr.bf16.mxu0 %v3169_v52 }
 0x242   : > { %2024 = vmatpush1.bf16.msra.mxu0 %v3167_v56 }
 0x243   : > { %2025 = vmatprep.subr.bf16.mxu0 %v3172_v59 }
 0x246   : > { %2026 = vmatpush1.bf16.msra.mxu0 %v3170_v62 }
 0x247   : > { %2027 = vmatprep.subr.bf16.mxu0 %v3175_v1 }
 0x24a   : > { %2028 = vmatpush1.bf16.msra.mxu0 %v3173_v5 }
 0x24b   : > { %2029 = vmatprep.subr.bf16.mxu0 %v3178_v8 }
 0x24e   : > { %2030 = vmatpush1.bf16.msra.mxu0 %v3176_v11 }
 0x24f   : > { %2031 = vmatprep.subr.bf16.mxu0 %v3181_v14 }
 0x252   : > { %2032 = vmatpush1.bf16.msra.mxu0 %v3179_v18 }
 0x290   : > { %v2791_v27 = vpop.f32.mrb[0].mxu1 }
 0x291   : > { %v2792_v23 = vpop.f32.mrb[1].mxu1 }
 0x292   : > { %v2793_v28 = vadd.f32 %v2792_v23, %v2791_v27  ;;  %v2794_v29 = vpop.f32.mrb[2].mxu1  ;;  %v3182_v23 = vld [vmem:[#allocation10 + $0xb0] ss:$8 sps:$4 sm:$0xff]  }
 0x293   : > { %v2795_v33 = vpop.f32.mrb[3].mxu1 }
 0x294   : > { %v2796_v35 = vadd.f32 %v2795_v33, %v2794_v29  ;;  %v1268_v37 = vadd.f32 %v2793_v28, %v3834_v32 }
 0x296   : > { %v1271_v38 = vadd.f32 %v2796_v35, %v3834_v32  ;;  %v3185_v35 = vld [vmem:[#allocation10 + $0xc0] ss:$8 sps:$4 sm:$0xff]  }
 0x298   : > { %v1394_v40 = vpack.c.bf16 %v1271_v38, %v1268_v37  ;;  %v2797_v41 = vpop.f32.mrb[4].mxu1  ;;  %v3190_v38 = vld [vmem:[#allocation10 + $0xd4] ss:$8 sps:$4 sm:$0xff]  }
 0x299   : > { %v2798_v42 = vpop.f32.mrb[5].mxu1 }
 0x29a   : > { %v2799_v44 = vadd.f32 %v2798_v42, %v2797_v41  ;;  %v2800_v45 = vpop.f32.mrb[6].mxu1  ;;  %1551 = vmatmul.mubr.bf16.vlgmr.msra.gmra.mrb[64].mxu1 %v1394_v40  ;;  %v3188_v41 = vld [vmem:[#allocation10 + $0xd0] ss:$8 sps:$4 sm:$0xff]  }
 0x29b   : > { %v2801_v47 = vpop.f32.mrb[7].mxu1  ;;  %1560 = vmatprep.mubr.bf16.mxu1 %v3424_v20  ;;  %2903 = vmatpush1.bf16.msra.mxu1 %v3149_v24 }
 0x29c   : > { %v2802_v48 = vadd.f32 %v2801_v47, %v2800_v45  ;;  %2888 = vmatprep.subr.bf16.mxu1 %v3154_v26  ;;  %v1276_v50 = vadd.f32 %v2799_v44, %v3834_v32 }
 0x29e   : > { %v1279_v51 = vadd.f32 %v2802_v48, %v3834_v32 }
 0x29f   : > { %2904 = vmatpush1.bf16.msra.mxu1 %v3152_v22  ;;  %v3184_v22 = vld [vmem:[#allocation10 + $0xb4] ss:$8 sps:$4 sm:$0xff]  }
 0x2a0   : > { %v2803_v53 = vpop.f32.mrb[8].mxu1  ;;  %v1395_v54 = vpack.c.bf16 %v1279_v51, %v1276_v50  ;;  %2889 = vmatprep.subr.bf16.mxu1 %v3157_v31  ;;  %2033 = vmatprep.subr.bf16.mxu0 %v3184_v22 }
 0x2a1   : > { %v2804_v55 = vpop.f32.mrb[9].mxu1  ;;  %2034 = vmatpush1.bf16.msra.mxu0 %v3182_v23 }
 0x2a2   : > { %v2805_v57 = vadd.f32 %v2804_v55, %v2803_v53  ;;  %v2806_v58 = vpop.f32.mrb[10].mxu1  ;;  %1561 = vmatmul.mubr.bf16.gmra.mrb[68].mxu1 %v1395_v54 }
 0x2a3   : > { %v2807_v60 = vpop.f32.mrb[11].mxu1  ;;  %1570 = vmatprep.mubr.bf16.mxu1 %v3424_v20  ;;  %2905 = vmatpush1.bf16.msra.mxu1 %v3155_v30  ;;  %v3187_v30 = vld [vmem:[#allocation10 + $0xc4] ss:$8 sps:$4 sm:$0xff]  }
 0x2a4   : > { %v2808_v61 = vadd.f32 %v2807_v60, %v2806_v58  ;;  %2890 = vmatprep.subr.bf16.mxu1 %v3160_v34  ;;  %v1284_v63 = vadd.f32 %v2805_v57, %v3834_v32  ;;  %2035 = vmatprep.subr.bf16.mxu0 %v3187_v30 }
 0x2a5   : > { %2036 = vmatpush1.bf16.msra.mxu0 %v3185_v35 }
 0x2a6   : > { %v1287_v0 = vadd.f32 %v2808_v61, %v3834_v32  ;;  %2037 = vmatprep.subr.bf16.mxu0 %v3190_v38 }
 0x2a7   : > { %2906 = vmatpush1.bf16.msra.mxu1 %v3158_v36 }
 0x2a8   : > { %v2809_v2 = vpop.f32.mrb[12].mxu1  ;;  %v1396_v3 = vpack.c.bf16 %v1287_v0, %v1284_v63  ;;  %2891 = vmatprep.subr.bf16.mxu1 %v3163_v39 }
 0x2a9   : > { %v2810_v4 = vpop.f32.mrb[13].mxu1  ;;  %2038 = vmatpush1.bf16.msra.mxu0 %v3188_v41 }
 0x2aa   : > { %v2811_v6 = vadd.f32 %v2810_v4, %v2809_v2  ;;  %v2812_v7 = vpop.f32.mrb[14].mxu1  ;;  %1571 = vmatmul.mubr.bf16.gmra.mrb[72].mxu1 %v1396_v3 }
 0x2ab   : > { %v2813_v9 = vpop.f32.mrb[15].mxu1  ;;  %1580 = vmatprep.mubr.bf16.mxu1 %v3424_v20  ;;  %2907 = vmatpush1.bf16.msra.mxu1 %v3161_v43 }
 0x2ac   : > { %v2814_v10 = vadd.f32 %v2813_v9, %v2812_v7  ;;  %2892 = vmatprep.subr.bf16.mxu1 %v3166_v46  ;;  %v1292_v12 = vadd.f32 %v2811_v6, %v3834_v32 }
 0x2ae   : > { %v1295_v13 = vadd.f32 %v2814_v10, %v3834_v32 }
 0x2af   : > { %2908 = vmatpush1.bf16.msra.mxu1 %v3164_v49 }
 0x2b0   : > { %v2815_v15 = vpop.f32.mrb[16].mxu1  ;;  %v1397_v16 = vpack.c.bf16 %v1295_v13, %v1292_v12  ;;  %2893 = vmatprep.subr.bf16.mxu1 %v3169_v52 }
 0x2b1   : > { %v2816_v17 = vpop.f32.mrb[17].mxu1 }
 0x2b2   : > { %v2817_v24 = vadd.f32 %v2816_v17, %v2815_v15  ;;  %v2818_v25 = vpop.f32.mrb[18].mxu1  ;;  %1581 = vmatmul.mubr.bf16.gmra.mrb[76].mxu1 %v1397_v16 }
 0x2b3   : > { %v2819_v26 = vpop.f32.mrb[19].mxu1  ;;  %1590 = vmatprep.mubr.bf16.mxu1 %v3424_v20  ;;  %2909 = vmatpush1.bf16.msra.mxu1 %v3167_v56 }
 0x2b4   : > { %v2820_v27 = vadd.f32 %v2819_v26, %v2818_v25  ;;  %2894 = vmatprep.subr.bf16.mxu1 %v3172_v59  ;;  %v1300_v28 = vadd.f32 %v2817_v24, %v3834_v32 }
 0x2b6   : > { %v1303_v29 = vadd.f32 %v2820_v27, %v3834_v32 }
 0x2b7   : > { %2910 = vmatpush1.bf16.msra.mxu1 %v3170_v62 }
 0x2b8   : > { %v2821_v31 = vpop.f32.mrb[20].mxu1  ;;  %v1398_v33 = vpack.c.bf16 %v1303_v29, %v1300_v28  ;;  %2895 = vmatprep.subr.bf16.mxu1 %v3175_v1 }
 0x2b9   : > { %v2822_v34 = vpop.f32.mrb[21].mxu1 }
 0x2ba   : > { %v2823_v36 = vadd.f32 %v2822_v34, %v2821_v31  ;;  %v2824_v37 = vpop.f32.mrb[22].mxu1  ;;  %1591 = vmatmul.mubr.bf16.gmra.mrb[80].mxu1 %v1398_v33 }
 0x2bb   : > { %v2825_v39 = vpop.f32.mrb[23].mxu1  ;;  %1600 = vmatprep.mubr.bf16.mxu1 %v3424_v20  ;;  %2911 = vmatpush1.bf16.msra.mxu1 %v3173_v5 }
 0x2bc   : > { %v2826_v40 = vadd.f32 %v2825_v39, %v2824_v37  ;;  %2896 = vmatprep.subr.bf16.mxu1 %v3178_v8  ;;  %v1308_v42 = vadd.f32 %v2823_v36, %v3834_v32  ;;  %v3191_v39 = vld [vmem:[#allocation10 + $0xe0] ss:$8 sps:$4 sm:$0xff]  }
 0x2be   : > { %v1311_v43 = vadd.f32 %v2826_v40, %v3834_v32 }
 0x2bf   : > { %2912 = vmatpush1.bf16.msra.mxu1 %v3176_v11 }
 0x2c0   : > { %v2827_v44 = vpop.f32.mrb[24].mxu1  ;;  %v1399_v45 = vpack.c.bf16 %v1311_v43, %v1308_v42  ;;  %2897 = vmatprep.subr.bf16.mxu1 %v3181_v14 }
 0x2c1   : > { %v2828_v46 = vpop.f32.mrb[25].mxu1 }
 0x2c2   : > { %v2829_v47 = vadd.f32 %v2828_v46, %v2827_v44  ;;  %v2830_v48 = vpop.f32.mrb[26].mxu1  ;;  %1601 = vmatmul.mubr.bf16.gmra.mrb[84].mxu1 %v1399_v45  ;;  %v3196_v45 = vld [vmem:[#allocation10 + $0xf4] ss:$8 sps:$4 sm:$0xff]  }
 0x2c3   : > { %v2831_v49 = vpop.f32.mrb[27].mxu1  ;;  %1610 = vmatprep.mubr.bf16.mxu1 %v3424_v20  ;;  %2913 = vmatpush1.bf16.msra.mxu1 %v3179_v18 }
 0x2c4   : > { %v2832_v50 = vadd.f32 %v2831_v49, %v2830_v48  ;;  %2898 = vmatprep.subr.bf16.mxu1 %v3184_v22  ;;  %v1316_v51 = vadd.f32 %v2829_v47, %v3834_v32  ;;  %v3194_v47 = vld [vmem:[#allocation10 + $0xf0] ss:$8 sps:$4 sm:$0xff]  }
 0x2c6   : > { %v1319_v52 = vadd.f32 %v2832_v50, %v3834_v32 }
 0x2c7   : > { %2914 = vmatpush1.bf16.msra.mxu1 %v3182_v23 }
 0x2c8   : > { %v2833_v53 = vpop.f32.mrb[28].mxu1  ;;  %v1400_v54 = vpack.c.bf16 %v1319_v52, %v1316_v51  ;;  %2899 = vmatprep.subr.bf16.mxu1 %v3187_v30 }
 0x2c9   : > { %v2834_v55 = vpop.f32.mrb[29].mxu1 }
 0x2ca   : > { %v2835_v56 = vadd.f32 %v2834_v55, %v2833_v53  ;;  %v2836_v57 = vpop.f32.mrb[30].mxu1  ;;  %1611 = vmatmul.mubr.bf16.gmra.mrb[88].mxu1 %v1400_v54 }
 0x2cb   : > { %v2837_v58 = vpop.f32.mrb[31].mxu1  ;;  %1620 = vmatprep.mubr.bf16.mxu1 %v3424_v20  ;;  %2915 = vmatpush1.bf16.msra.mxu1 %v3185_v35 }
 0x2cc   : > { %v2838_v59 = vadd.f32 %v2837_v58, %v2836_v57  ;;  %2900 = vmatprep.subr.bf16.mxu1 %v3190_v38  ;;  %v1324_v60 = vadd.f32 %v2835_v56, %v3834_v32  ;;  %v3193_v38 = vld [vmem:[#allocation10 + $0xe4] ss:$8 sps:$4 sm:$0xff]  }
 0x2cd   : > { %2039 = vmatprep.subr.bf16.mxu0 %v3193_v38 }
 0x2ce   : > { %v1327_v61 = vadd.f32 %v2838_v59, %v3834_v32  ;;  %2040 = vmatpush1.bf16.msra.mxu0 %v3191_v39 }
 0x2cf   : > { %2916 = vmatpush1.bf16.msra.mxu1 %v3188_v41  ;;  %2041 = vmatprep.subr.bf16.mxu0 %v3196_v45 }
 0x2d0   : > { %v2839_v62 = vpop.f32.mrb[32].mxu1  ;;  %v1401_v63 = vpack.c.bf16 %v1327_v61, %v1324_v60  ;;  %2901 = vmatprep.subr.bf16.mxu1 %v3193_v38 }
 0x2d1   : > { %v2840_v0 = vpop.f32.mrb[33].mxu1 }
 0x2d2   : > { %v2841_v1 = vadd.f32 %v2840_v0, %v2839_v62  ;;  %v2842_v2 = vpop.f32.mrb[34].mxu1  ;;  %1621 = vmatmul.mubr.bf16.gmra.mrb[92].mxu1 %v1401_v63  ;;  %2042 = vmatpush1.bf16.msra.mxu0 %v3194_v47 }
 0x2d3   : > { %v2843_v3 = vpop.f32.mrb[35].mxu1  ;;  %1630 = vmatprep.mubr.bf16.mxu1 %v3424_v20  ;;  %2917 = vmatpush1.bf16.msra.mxu1 %v3191_v39 }
 0x2d4   : > { %v2844_v4 = vadd.f32 %v2843_v3, %v2842_v2  ;;  %v1332_v5 = vadd.f32 %v2841_v1, %v3834_v32  ;;  %2902 = vmatprep.subr.bf16.mxu1 %v3196_v45 }
 0x2d6   : > { %v1335_v6 = vadd.f32 %v2844_v4, %v3834_v32 }
 0x2d7   : > { %2918 = vmatpush1.bf16.msra.mxu1 %v3194_v47 }
 0x2d8   : > { %v2845_v7 = vpop.f32.mrb[36].mxu1  ;;  %v1402_v8 = vpack.c.bf16 %v1335_v6, %v1332_v5 }
 0x2d9   : > { %v2846_v9 = vpop.f32.mrb[37].mxu1 }
 0x2da   : > { %v2847_v10 = vadd.f32 %v2846_v9, %v2845_v7  ;;  %v2848_v11 = vpop.f32.mrb[38].mxu1  ;;  %1631 = vmatmul.mubr.bf16.gmra.mrb[96].mxu1 %v1402_v8 }
 0x2db   : > { %v2849_v12 = vpop.f32.mrb[39].mxu1  ;;  %1640 = vmatprep.mubr.bf16.mxu1 %v3424_v20 }
 0x2dc   : > { %v2850_v13 = vadd.f32 %v2849_v12, %v2848_v11  ;;  %v1340_v14 = vadd.f32 %v2847_v10, %v3834_v32 }
 0x2de   : > { %v1343_v15 = vadd.f32 %v2850_v13, %v3834_v32 }
 0x2e0   : > { %v2851_v16 = vpop.f32.mrb[40].mxu1  ;;  %v1403_v17 = vpack.c.bf16 %v1343_v15, %v1340_v14  ;;  %v1426_v15 = vld [vmem:[%s4122_s6] sm:$0x3] }
 0x2e1   : > { %v2852_v18 = vpop.f32.mrb[41].mxu1 }
 0x2e2   : > { %v2853_v24 = vadd.f32 %v2852_v18, %v2851_v16  ;;  %v2854_v25 = vpop.f32.mrb[42].mxu1  ;;  %1641 = vmatmul.mubr.bf16.gmra.mrb[100].mxu1 %v1403_v17  ;;  %v3887_v16 = vrot.slane %v1426_v15, %v3753_v19  ;;  %v3890_v17 = vrot.slane %v1426_v15, %v3758_v21 }
 0x2e3   : > { %v2855_v22 = vpop.f32.mrb[43].mxu1  ;;  %1650 = vmatprep.mubr.bf16.mxu1 %v3424_v20 }
 0x2e4   : > { %v2856_v26 = vadd.f32 %v2855_v22, %v2854_v25  ;;  %v1348_v27 = vadd.f32 %v2853_v24, %v3834_v32 }
 0x2e6   : > { %v1351_v23 = vadd.f32 %v2856_v26, %v3834_v32 }
 0x2e8   : > { %v2857_v28 = vpop.f32.mrb[44].mxu1  ;;  %v1404_v29 = vpack.c.bf16 %v1351_v23, %v1348_v27 }
 0x2e9   : > { %v2858_v30 = vpop.f32.mrb[45].mxu1 }
 0x2ea   : > { %v2859_v31 = vadd.f32 %v2858_v30, %v2857_v28  ;;  %v2860_v33 = vpop.f32.mrb[46].mxu1  ;;  %1651 = vmatmul.mubr.bf16.gmra.mrb[104].mxu1 %v1404_v29 }
 0x2eb   : > { %v2861_v34 = vpop.f32.mrb[47].mxu1  ;;  %1660 = vmatprep.mubr.bf16.mxu1 %v3424_v20 }
 0x2ec   : > { %v2862_v35 = vadd.f32 %v2861_v34, %v2860_v33  ;;  %v1356_v36 = vadd.f32 %v2859_v31, %v3834_v32 }
 0x2ee   : > { %v1359_v37 = vadd.f32 %v2862_v35, %v3834_v32 }
 0x2f0   : > { %v2863_v40 = vpop.f32.mrb[48].mxu1  ;;  %v1405_v41 = vpack.c.bf16 %v1359_v37, %v1356_v36 }
 0x2f1   : > { %v2864_v42 = vpop.f32.mrb[49].mxu1 }
 0x2f2   : > { %v2865_v43 = vadd.f32 %v2864_v42, %v2863_v40  ;;  %v2866_v44 = vpop.f32.mrb[50].mxu1  ;;  %1661 = vmatmul.mubr.bf16.gmra.mrb[108].mxu1 %v1405_v41 }
 0x2f3   : > { %v2867_v46 = vpop.f32.mrb[51].mxu1  ;;  %1670 = vmatprep.mubr.bf16.mxu1 %v3424_v20 }
 0x2f4   : > { %v2868_v48 = vadd.f32 %v2867_v46, %v2866_v44  ;;  %v1364_v49 = vadd.f32 %v2865_v43, %v3834_v32 }
 0x2f6   : > { %v1367_v50 = vadd.f32 %v2868_v48, %v3834_v32 }
 0x2f8   : > { %v2869_v51 = vpop.f32.mrb[52].mxu1  ;;  %v1406_v52 = vpack.c.bf16 %v1367_v50, %v1364_v49 }
 0x2f9   : > { %v2870_v53 = vpop.f32.mrb[53].mxu1 }
 0x2fa   : > { %v2871_v54 = vadd.f32 %v2870_v53, %v2869_v51  ;;  %v2872_v55 = vpop.f32.mrb[54].mxu1  ;;  %1671 = vmatmul.mubr.bf16.gmra.mrb[112].mxu1 %v1406_v52 }
 0x2fb   : > { %v2873_v56 = vpop.f32.mrb[55].mxu1  ;;  %1680 = vmatprep.mubr.bf16.mxu1 %v3424_v20 }
 0x2fc   : > { %v2874_v57 = vadd.f32 %v2873_v56, %v2872_v55  ;;  %v1372_v58 = vadd.f32 %v2871_v54, %v3834_v32 }
 0x2fe   : > { %v1375_v59 = vadd.f32 %v2874_v57, %v3834_v32 }
 0x300   : > { %v2875_v60 = vpop.f32.mrb[56].mxu1  ;;  %v1407_v61 = vpack.c.bf16 %v1375_v59, %v1372_v58 }
 0x301   : > { %v2876_v62 = vpop.f32.mrb[57].mxu1 }
 0x302   : > { %v2877_v63 = vadd.f32 %v2876_v62, %v2875_v60  ;;  %v2878_v0 = vpop.f32.mrb[58].mxu1  ;;  %1681 = vmatmul.mubr.bf16.gmra.mrb[116].mxu1 %v1407_v61 }
 0x303   : > { %v2879_v1 = vpop.f32.mrb[59].mxu1  ;;  %1690 = vmatprep.mubr.bf16.mxu1 %v3424_v20 }
 0x304   : > { %v2880_v2 = vadd.f32 %v2879_v1, %v2878_v0  ;;  %v1380_v3 = vadd.f32 %v2877_v63, %v3834_v32 }
 0x306   : > { %v1383_v4 = vadd.f32 %v2880_v2, %v3834_v32 }
 0x308   : > { %v2881_v5 = vpop.f32.mrb[60].mxu1  ;;  %v1408_v6 = vpack.c.bf16 %v1383_v4, %v1380_v3 }
 0x309   : > { %v2882_v7 = vpop.f32.mrb[61].mxu1 }
 0x30a   : > { %v2883_v8 = vadd.f32 %v2882_v7, %v2881_v5  ;;  %v2884_v9 = vpop.f32.mrb[62].mxu1  ;;  %1691 = vmatmul.mubr.bf16.gmra.mrb[120].mxu1 %v1408_v6 }
 0x30b   : > { %v2885_v10 = vpop.f32.mrb[63].mxu1  ;;  %1700 = vmatprep.mubr.bf16.mxu1 %v3424_v20 }
 0x30c   : > { %v2886_v11 = vadd.f32 %v2885_v10, %v2884_v9  ;;  %v1388_v12 = vadd.f32 %v2883_v8, %v3834_v32 }
 0x30e   : > { %v1391_v13 = vadd.f32 %v2886_v11, %v3834_v32 }
 0x310   : > { %v1409_v14 = vpack.c.bf16 %v1391_v13, %v1388_v12 }
 0x312   : > { %1701 = vmatmul.mubr.bf16.gmra.mrb[124].mxu1 %v1409_v14 }
 0x36d   : > { %v1552_v18 = vpop.f32.mrb[64].mxu1 }
 0x36e   : > { %v1553_v20 = vadd.f32 %v1552_v18, %v3887_v16  ;;  %v1554_v24 = vpop.f32.mrb[65].mxu1 }
 0x36f   : > { %v1555_v25 = vadd.f32 %v1554_v24, %v3890_v17  ;;  %v1556_v22 = vpop.f32.mrb[66].mxu1 }
 0x370   : > { %v1557_v32 = vadd.f32 %v1556_v22, %v3887_v16  ;;  %v1558_v26 = vpop.f32.mrb[67].mxu1  ;;  %v1711_v23 = vmax.f32 %v1553_v20, 0.0 }
 0x371   : > { %v1559_v27 = vadd.f32 %v1558_v26, %v3890_v17  ;;  %v1712_v29 = vmax.f32 %v1555_v25, 0.0 }
 0x372   : > { %v1713_v28 = vmax.f32 %v1557_v32, 0.0 }
 0x373   : > { %v1714_v30 = vmax.f32 %v1559_v27, 0.0 }
 0x374   : > { %v1775_v31 = vpack.c.bf16 %v1713_v28, %v1711_v23 }
 0x375   : > { %v1776_v33 = vpack.c.bf16 %v1714_v30, %v1712_v29  ;;  %v1562_v34 = vpop.f32.mrb[68].mxu1 }
 0x376   : > { %v1563_v35 = vadd.f32 %v1562_v34, %v3887_v16  ;;  %v1564_v36 = vpop.f32.mrb[69].mxu1 }
 0x377   : > { %v1565_v37 = vadd.f32 %v1564_v36, %v3890_v17  ;;  %v1566_v38 = vpop.f32.mrb[70].mxu1  ;;  %2043 = vmatprep.mubr.bf16.mxu0 %v1776_v33 }
 0x378   : > { %v1567_v39 = vadd.f32 %v1566_v38, %v3887_v16  ;;  %v1568_v40 = vpop.f32.mrb[71].mxu1  ;;  %2044 = vmatmul.mubr.bf16.vlgmr.msra.gmra.mrb[64].mxu0 %v1775_v31  ;;  %v1715_v42 = vmax.f32 %v1563_v35, 0.0 }
 0x379   : > { %v1569_v41 = vadd.f32 %v1568_v40, %v3890_v17  ;;  %v1716_v44 = vmax.f32 %v1565_v37, 0.0 }
 0x37a   : > { %v1717_v43 = vmax.f32 %v1567_v39, 0.0 }
 0x37b   : > { %v1718_v45 = vmax.f32 %v1569_v41, 0.0 }
 0x37c   : > { %v1777_v46 = vpack.c.bf16 %v1717_v43, %v1715_v42 }
 0x37d   : > { %v1778_v47 = vpack.c.bf16 %v1718_v45, %v1716_v44  ;;  %v1572_v48 = vpop.f32.mrb[72].mxu1 }
 0x37e   : > { %v1573_v49 = vadd.f32 %v1572_v48, %v3887_v16  ;;  %v1574_v50 = vpop.f32.mrb[73].mxu1 }
 0x37f   : > { %v1575_v51 = vadd.f32 %v1574_v50, %v3890_v17  ;;  %v1576_v52 = vpop.f32.mrb[74].mxu1  ;;  %2053 = vmatprep.mubr.bf16.mxu0 %v1778_v47 }
 0x380   : > { %v1577_v53 = vadd.f32 %v1576_v52, %v3887_v16  ;;  %v1578_v54 = vpop.f32.mrb[75].mxu1  ;;  %2054 = vmatmul.mubr.bf16.gmra.mrb[68].mxu0 %v1777_v46  ;;  %v1719_v56 = vmax.f32 %v1573_v49, 0.0 }
 0x381   : > { %v1579_v55 = vadd.f32 %v1578_v54, %v3890_v17  ;;  %v1720_v58 = vmax.f32 %v1575_v51, 0.0 }
 0x382   : > { %v1721_v57 = vmax.f32 %v1577_v53, 0.0 }
 0x383   : > { %v1722_v59 = vmax.f32 %v1579_v55, 0.0 }
 0x384   : > { %v1779_v60 = vpack.c.bf16 %v1721_v57, %v1719_v56 }
 0x385   : > { %v1780_v61 = vpack.c.bf16 %v1722_v59, %v1720_v58  ;;  %v1582_v62 = vpop.f32.mrb[76].mxu1 }
 0x386   : > { %v1583_v63 = vadd.f32 %v1582_v62, %v3887_v16  ;;  %v1584_v0 = vpop.f32.mrb[77].mxu1 }
 0x387   : > { %v1585_v1 = vadd.f32 %v1584_v0, %v3890_v17  ;;  %v1586_v2 = vpop.f32.mrb[78].mxu1  ;;  %2063 = vmatprep.mubr.bf16.mxu0 %v1780_v61 }
 0x388   : > { %v1587_v3 = vadd.f32 %v1586_v2, %v3887_v16  ;;  %v1588_v4 = vpop.f32.mrb[79].mxu1  ;;  %2064 = vmatmul.mubr.bf16.gmra.mrb[72].mxu0 %v1779_v60  ;;  %v1723_v6 = vmax.f32 %v1583_v63, 0.0 }
 0x389   : > { %v1589_v5 = vadd.f32 %v1588_v4, %v3890_v17  ;;  %v1724_v8 = vmax.f32 %v1585_v1, 0.0 }
 0x38a   : > { %v1725_v7 = vmax.f32 %v1587_v3, 0.0 }
 0x38b   : > { %v1726_v9 = vmax.f32 %v1589_v5, 0.0 }
 0x38c   : > { %v1781_v10 = vpack.c.bf16 %v1725_v7, %v1723_v6 }
 0x38d   : > { %v1782_v11 = vpack.c.bf16 %v1726_v9, %v1724_v8  ;;  %v1592_v12 = vpop.f32.mrb[80].mxu1 }
 0x38e   : > { %v1593_v13 = vadd.f32 %v1592_v12, %v3887_v16  ;;  %v1594_v14 = vpop.f32.mrb[81].mxu1 }
 0x38f   : > { %v1595_v15 = vadd.f32 %v1594_v14, %v3890_v17  ;;  %v1596_v18 = vpop.f32.mrb[82].mxu1  ;;  %2073 = vmatprep.mubr.bf16.mxu0 %v1782_v11 }
 0x390   : > { %v1597_v20 = vadd.f32 %v1596_v18, %v3887_v16  ;;  %v1598_v24 = vpop.f32.mrb[83].mxu1  ;;  %2074 = vmatmul.mubr.bf16.gmra.mrb[76].mxu0 %v1781_v10  ;;  %v1727_v22 = vmax.f32 %v1593_v13, 0.0 }
 0x391   : > { %v1599_v25 = vadd.f32 %v1598_v24, %v3890_v17  ;;  %v1728_v26 = vmax.f32 %v1595_v15, 0.0 }
 0x392   : > { %v1729_v32 = vmax.f32 %v1597_v20, 0.0 }
 0x393   : > { %v1730_v27 = vmax.f32 %v1599_v25, 0.0 }
 0x394   : > { %v1783_v23 = vpack.c.bf16 %v1729_v32, %v1727_v22 }
 0x395   : > { %v1784_v28 = vpack.c.bf16 %v1730_v27, %v1728_v26  ;;  %v1602_v29 = vpop.f32.mrb[84].mxu1 }
 0x396   : > { %v1603_v30 = vadd.f32 %v1602_v29, %v3887_v16  ;;  %v1604_v31 = vpop.f32.mrb[85].mxu1 }
 0x397   : > { %v1605_v33 = vadd.f32 %v1604_v31, %v3890_v17  ;;  %v1606_v34 = vpop.f32.mrb[86].mxu1  ;;  %2083 = vmatprep.mubr.bf16.mxu0 %v1784_v28 }
 0x398   : > { %v1607_v35 = vadd.f32 %v1606_v34, %v3887_v16  ;;  %v1608_v36 = vpop.f32.mrb[87].mxu1  ;;  %2084 = vmatmul.mubr.bf16.gmra.mrb[80].mxu0 %v1783_v23  ;;  %v1731_v38 = vmax.f32 %v1603_v30, 0.0 }
 0x399   : > { %v1609_v37 = vadd.f32 %v1608_v36, %v3890_v17  ;;  %v1732_v40 = vmax.f32 %v1605_v33, 0.0 }
 0x39a   : > { %v1733_v39 = vmax.f32 %v1607_v35, 0.0 }
 0x39b   : > { %v1734_v41 = vmax.f32 %v1609_v37, 0.0 }
 0x39c   : > { %v1785_v42 = vpack.c.bf16 %v1733_v39, %v1731_v38 }
 0x39d   : > { %v1786_v43 = vpack.c.bf16 %v1734_v41, %v1732_v40  ;;  %v1612_v44 = vpop.f32.mrb[88].mxu1 }
 0x39e   : > { %v1613_v45 = vadd.f32 %v1612_v44, %v3887_v16  ;;  %v1614_v46 = vpop.f32.mrb[89].mxu1 }
 0x39f   : > { %v1615_v47 = vadd.f32 %v1614_v46, %v3890_v17  ;;  %v1616_v48 = vpop.f32.mrb[90].mxu1  ;;  %2093 = vmatprep.mubr.bf16.mxu0 %v1786_v43 }
 0x3a0   : > { %v1617_v49 = vadd.f32 %v1616_v48, %v3887_v16  ;;  %v1618_v50 = vpop.f32.mrb[91].mxu1  ;;  %2094 = vmatmul.mubr.bf16.gmra.mrb[84].mxu0 %v1785_v42  ;;  %v1735_v52 = vmax.f32 %v1613_v45, 0.0 }
 0x3a1   : > { %v1619_v51 = vadd.f32 %v1618_v50, %v3890_v17  ;;  %v1736_v54 = vmax.f32 %v1615_v47, 0.0 }
 0x3a2   : > { %v1737_v53 = vmax.f32 %v1617_v49, 0.0 }
 0x3a3   : > { %v1738_v55 = vmax.f32 %v1619_v51, 0.0 }
 0x3a4   : > { %v1787_v56 = vpack.c.bf16 %v1737_v53, %v1735_v52 }
 0x3a5   : > { %v1788_v57 = vpack.c.bf16 %v1738_v55, %v1736_v54  ;;  %v1622_v58 = vpop.f32.mrb[92].mxu1 }
 0x3a6   : > { %v1623_v59 = vadd.f32 %v1622_v58, %v3887_v16  ;;  %v1624_v60 = vpop.f32.mrb[93].mxu1 }
 0x3a7   : > { %v1625_v61 = vadd.f32 %v1624_v60, %v3890_v17  ;;  %v1626_v62 = vpop.f32.mrb[94].mxu1  ;;  %2103 = vmatprep.mubr.bf16.mxu0 %v1788_v57 }
 0x3a8   : > { %v1627_v63 = vadd.f32 %v1626_v62, %v3887_v16  ;;  %v1628_v0 = vpop.f32.mrb[95].mxu1  ;;  %2104 = vmatmul.mubr.bf16.gmra.mrb[88].mxu0 %v1787_v56  ;;  %v1739_v2 = vmax.f32 %v1623_v59, 0.0 }
 0x3a9   : > { %v1629_v1 = vadd.f32 %v1628_v0, %v3890_v17  ;;  %v1740_v4 = vmax.f32 %v1625_v61, 0.0 }
 0x3aa   : > { %v1741_v3 = vmax.f32 %v1627_v63, 0.0 }
 0x3ab   : > { %v1742_v5 = vmax.f32 %v1629_v1, 0.0 }
 0x3ac   : > { %v1789_v6 = vpack.c.bf16 %v1741_v3, %v1739_v2 }
 0x3ad   : > { %v1790_v7 = vpack.c.bf16 %v1742_v5, %v1740_v4  ;;  %v1632_v8 = vpop.f32.mrb[96].mxu1 }
 0x3ae   : > { %v1633_v9 = vadd.f32 %v1632_v8, %v3887_v16  ;;  %v1634_v10 = vpop.f32.mrb[97].mxu1 }
 0x3af   : > { %v1635_v11 = vadd.f32 %v1634_v10, %v3890_v17  ;;  %v1636_v12 = vpop.f32.mrb[98].mxu1  ;;  %2113 = vmatprep.mubr.bf16.mxu0 %v1790_v7 }
 0x3b0   : > { %v1637_v13 = vadd.f32 %v1636_v12, %v3887_v16  ;;  %v1638_v14 = vpop.f32.mrb[99].mxu1  ;;  %2114 = vmatmul.mubr.bf16.gmra.mrb[92].mxu0 %v1789_v6  ;;  %v1743_v18 = vmax.f32 %v1633_v9, 0.0 }
 0x3b1   : > { %v1639_v15 = vadd.f32 %v1638_v14, %v3890_v17  ;;  %v1744_v24 = vmax.f32 %v1635_v11, 0.0 }
 0x3b2   : > { %v1745_v20 = vmax.f32 %v1637_v13, 0.0 }
 0x3b3   : > { %v1746_v25 = vmax.f32 %v1639_v15, 0.0 }
 0x3b4   : > { %v1791_v22 = vpack.c.bf16 %v1745_v20, %v1743_v18 }
 0x3b5   : > { %v1792_v32 = vpack.c.bf16 %v1746_v25, %v1744_v24  ;;  %v1642_v26 = vpop.f32.mrb[100].mxu1 }
 0x3b6   : > { %v1643_v27 = vadd.f32 %v1642_v26, %v3887_v16  ;;  %v1644_v23 = vpop.f32.mrb[101].mxu1 }
 0x3b7   : > { %v1645_v28 = vadd.f32 %v1644_v23, %v3890_v17  ;;  %v1646_v29 = vpop.f32.mrb[102].mxu1  ;;  %2123 = vmatprep.mubr.bf16.mxu0 %v1792_v32 }
 0x3b8   : > { %v1647_v30 = vadd.f32 %v1646_v29, %v3887_v16  ;;  %v1648_v31 = vpop.f32.mrb[103].mxu1  ;;  %2124 = vmatmul.mubr.bf16.gmra.mrb[96].mxu0 %v1791_v22  ;;  %v1747_v34 = vmax.f32 %v1643_v27, 0.0 }
 0x3b9   : > { %v1649_v33 = vadd.f32 %v1648_v31, %v3890_v17  ;;  %v1748_v36 = vmax.f32 %v1645_v28, 0.0 }
 0x3ba   : > { %v1749_v35 = vmax.f32 %v1647_v30, 0.0 }
 0x3bb   : > { %v1750_v37 = vmax.f32 %v1649_v33, 0.0 }
 0x3bc   : > { %v1793_v38 = vpack.c.bf16 %v1749_v35, %v1747_v34 }
 0x3bd   : > { %v1794_v39 = vpack.c.bf16 %v1750_v37, %v1748_v36  ;;  %v1652_v40 = vpop.f32.mrb[104].mxu1 }
 0x3be   : > { %v1653_v41 = vadd.f32 %v1652_v40, %v3887_v16  ;;  %v1654_v42 = vpop.f32.mrb[105].mxu1 }
 0x3bf   : > { %v1655_v43 = vadd.f32 %v1654_v42, %v3890_v17  ;;  %v1656_v44 = vpop.f32.mrb[106].mxu1  ;;  %2133 = vmatprep.mubr.bf16.mxu0 %v1794_v39 }
 0x3c0   : > { %v1657_v45 = vadd.f32 %v1656_v44, %v3887_v16  ;;  %v1658_v46 = vpop.f32.mrb[107].mxu1  ;;  %2134 = vmatmul.mubr.bf16.gmra.mrb[100].mxu0 %v1793_v38  ;;  %v1751_v48 = vmax.f32 %v1653_v41, 0.0 }
 0x3c1   : > { %v1659_v47 = vadd.f32 %v1658_v46, %v3890_v17  ;;  %v1752_v50 = vmax.f32 %v1655_v43, 0.0 }
 0x3c2   : > { %v1753_v49 = vmax.f32 %v1657_v45, 0.0 }
 0x3c3   : > { %v1754_v51 = vmax.f32 %v1659_v47, 0.0 }
 0x3c4   : > { %v1795_v52 = vpack.c.bf16 %v1753_v49, %v1751_v48 }
 0x3c5   : > { %v1796_v53 = vpack.c.bf16 %v1754_v51, %v1752_v50  ;;  %v1662_v54 = vpop.f32.mrb[108].mxu1 }
 0x3c6   : > { %v1663_v55 = vadd.f32 %v1662_v54, %v3887_v16  ;;  %v1664_v56 = vpop.f32.mrb[109].mxu1 }
 0x3c7   : > { %v1665_v57 = vadd.f32 %v1664_v56, %v3890_v17  ;;  %v1666_v58 = vpop.f32.mrb[110].mxu1  ;;  %2143 = vmatprep.mubr.bf16.mxu0 %v1796_v53 }
 0x3c8   : > { %v1667_v59 = vadd.f32 %v1666_v58, %v3887_v16  ;;  %v1668_v60 = vpop.f32.mrb[111].mxu1  ;;  %2144 = vmatmul.mubr.bf16.gmra.mrb[104].mxu0 %v1795_v52  ;;  %v1755_v62 = vmax.f32 %v1663_v55, 0.0 }
 0x3c9   : > { %v1669_v61 = vadd.f32 %v1668_v60, %v3890_v17  ;;  %v1756_v0 = vmax.f32 %v1665_v57, 0.0 }
 0x3ca   : > { %v1757_v63 = vmax.f32 %v1667_v59, 0.0 }
 0x3cb   : > { %v1758_v1 = vmax.f32 %v1669_v61, 0.0 }
 0x3cc   : > { %v1797_v2 = vpack.c.bf16 %v1757_v63, %v1755_v62 }
 0x3cd   : > { %v1798_v3 = vpack.c.bf16 %v1758_v1, %v1756_v0  ;;  %v1672_v4 = vpop.f32.mrb[112].mxu1  ;;  %v1839_v0 = vld [vmem:[%s4124_s8] sm:$0x3] }
 0x3ce   : > { %v1673_v5 = vadd.f32 %v1672_v4, %v3887_v16  ;;  %v1674_v6 = vpop.f32.mrb[113].mxu1  ;;  %v3960_v1 = vrot.slane %v1839_v0, %v3753_v19 }
 0x3cf   : > { %v1675_v7 = vadd.f32 %v1674_v6, %v3890_v17  ;;  %v1676_v8 = vpop.f32.mrb[114].mxu1  ;;  %2153 = vmatprep.mubr.bf16.mxu0 %v1798_v3 }
 0x3d0   : > { %v1677_v9 = vadd.f32 %v1676_v8, %v3887_v16  ;;  %v1678_v10 = vpop.f32.mrb[115].mxu1  ;;  %2154 = vmatmul.mubr.bf16.gmra.mrb[108].mxu0 %v1797_v2  ;;  %v1759_v12 = vmax.f32 %v1673_v5, 0.0 }
 0x3d1   : > { %v1679_v11 = vadd.f32 %v1678_v10, %v3890_v17  ;;  %v1760_v14 = vmax.f32 %v1675_v7, 0.0 }
 0x3d2   : > { %v1761_v13 = vmax.f32 %v1677_v9, 0.0 }
 0x3d3   : > { %v1762_v15 = vmax.f32 %v1679_v11, 0.0 }
 0x3d4   : > { %v1799_v18 = vpack.c.bf16 %v1761_v13, %v1759_v12 }
 0x3d5   : > { %v1800_v20 = vpack.c.bf16 %v1762_v15, %v1760_v14  ;;  %v1682_v24 = vpop.f32.mrb[116].mxu1 }
 0x3d6   : > { %v1683_v25 = vadd.f32 %v1682_v24, %v3887_v16  ;;  %v1684_v22 = vpop.f32.mrb[117].mxu1 }
 0x3d7   : > { %v1685_v32 = vadd.f32 %v1684_v22, %v3890_v17  ;;  %v1686_v26 = vpop.f32.mrb[118].mxu1  ;;  %2163 = vmatprep.mubr.bf16.mxu0 %v1800_v20 }
 0x3d8   : > { %v1687_v27 = vadd.f32 %v1686_v26, %v3887_v16  ;;  %v1688_v23 = vpop.f32.mrb[119].mxu1  ;;  %2164 = vmatmul.mubr.bf16.gmra.mrb[112].mxu0 %v1799_v18  ;;  %v1763_v29 = vmax.f32 %v1683_v25, 0.0 }
 0x3d9   : > { %v1689_v28 = vadd.f32 %v1688_v23, %v3890_v17  ;;  %v1764_v31 = vmax.f32 %v1685_v32, 0.0 }
 0x3da   : > { %v1765_v30 = vmax.f32 %v1687_v27, 0.0 }
 0x3db   : > { %v1766_v33 = vmax.f32 %v1689_v28, 0.0 }
 0x3dc   : > { %v1801_v34 = vpack.c.bf16 %v1765_v30, %v1763_v29 }
 0x3dd   : > { %v1802_v35 = vpack.c.bf16 %v1766_v33, %v1764_v31  ;;  %v1692_v36 = vpop.f32.mrb[120].mxu1 }
 0x3de   : > { %v1693_v37 = vadd.f32 %v1692_v36, %v3887_v16  ;;  %v1694_v38 = vpop.f32.mrb[121].mxu1 }
 0x3df   : > { %v1695_v39 = vadd.f32 %v1694_v38, %v3890_v17  ;;  %v1696_v40 = vpop.f32.mrb[122].mxu1  ;;  %2173 = vmatprep.mubr.bf16.mxu0 %v1802_v35 }
 0x3e0   : > { %v1697_v41 = vadd.f32 %v1696_v40, %v3887_v16  ;;  %v1698_v42 = vpop.f32.mrb[123].mxu1  ;;  %2174 = vmatmul.mubr.bf16.gmra.mrb[116].mxu0 %v1801_v34  ;;  %v1767_v44 = vmax.f32 %v1693_v37, 0.0 }
 0x3e1   : > { %v1699_v43 = vadd.f32 %v1698_v42, %v3890_v17  ;;  %v1768_v46 = vmax.f32 %v1695_v39, 0.0 }
 0x3e2   : > { %v1769_v45 = vmax.f32 %v1697_v41, 0.0 }
 0x3e3   : > { %v1770_v47 = vmax.f32 %v1699_v43, 0.0 }
 0x3e4   : > { %v1803_v48 = vpack.c.bf16 %v1769_v45, %v1767_v44 }
 0x3e5   : > { %v1804_v49 = vpack.c.bf16 %v1770_v47, %v1768_v46  ;;  %v1702_v50 = vpop.f32.mrb[124].mxu1 }
 0x3e6   : > { %v1703_v51 = vadd.f32 %v1702_v50, %v3887_v16  ;;  %v1704_v52 = vpop.f32.mrb[125].mxu1 }
 0x3e7   : > { %v1705_v53 = vadd.f32 %v1704_v52, %v3890_v17  ;;  %v1706_v54 = vpop.f32.mrb[126].mxu1  ;;  %2183 = vmatprep.mubr.bf16.mxu1 %v1804_v49 }
 0x3e8   : > { %v1707_v55 = vadd.f32 %v1706_v54, %v3887_v16  ;;  %v1708_v56 = vpop.f32.mrb[127].mxu1  ;;  %2184 = vmatmul.mubr.bf16.vlgmr.msra.gmra.mrb[128].mxu1 %v1803_v48  ;;  %v1771_v58 = vmax.f32 %v1703_v51, 0.0  ;;  %v3963_v16 = vrot.slane %v1839_v0, %v3758_v21 }
 0x3e9   : > { %v1709_v57 = vadd.f32 %v1708_v56, %v3890_v17  ;;  %v1772_v60 = vmax.f32 %v1705_v53, 0.0 }
 0x3ea   : > { %v1773_v59 = vmax.f32 %v1707_v55, 0.0 }
 0x3eb   : > { %v1774_v61 = vmax.f32 %v1709_v57, 0.0 }
 0x3ec   : > { %v1805_v62 = vpack.c.bf16 %v1773_v59, %v1771_v58 }
 0x3ed   : > { %v1806_v63 = vpack.c.bf16 %v1774_v61, %v1772_v60 }
 0x3ef   : > { %2193 = vmatprep.mubr.bf16.mxu1 %v1806_v63 }
 0x3f0   : > { %2194 = vmatmul.mubr.bf16.gmra.mrb[132].mxu1 %v1805_v62 }
 0x44b   : > { %v2045_v17 = vpop.f32.mrb[64].mxu0 }
 0x44c   : > { %v2046_v2 = vadd.f32 %v2045_v17, %v3960_v1  ;;  %v2047_v3 = vpop.f32.mrb[65].mxu0 }
 0x44d   : > { %v2048_v4 = vadd.f32 %v2047_v3, %v3963_v16  ;;  %v2049_v5 = vpop.f32.mrb[66].mxu0 }
 0x44e   : > { %v2050_v6 = vadd.f32 %v2049_v5, %v3960_v1  ;;  %v2051_v7 = vpop.f32.mrb[67].mxu0 }
 0x44f   : > { %v2741_v8 = vpack.c.bf16 %v2048_v4, %v2046_v2  ;;  %v2052_v9 = vadd.f32 %v2051_v7, %v3963_v16 }
 0x451   : > { %2396 = vst [vmem:[%s3971_s18] sm:$0xff] %v2741_v8  ;;  %v2742_v19 = vpack.c.bf16 %v2052_v9, %v2050_v6 }
 0x453   : > { %2397 = vst [vmem:[%s3971_s18 + $0x8] sm:$0xff] %v2742_v19  ;;  %v2055_v21 = vpop.f32.mrb[68].mxu0 }
 0x454   : > { %v2056_v10 = vadd.f32 %v2055_v21, %v3960_v1  ;;  %v2057_v11 = vpop.f32.mrb[69].mxu0 }
 0x455   : > { %v2058_v12 = vadd.f32 %v2057_v11, %v3963_v16  ;;  %v2059_v13 = vpop.f32.mrb[70].mxu0 }
 0x456   : > { %v2060_v14 = vadd.f32 %v2059_v13, %v3960_v1  ;;  %v2061_v15 = vpop.f32.mrb[71].mxu0 }
 0x457   : > { %v2743_v18 = vpack.c.bf16 %v2058_v12, %v2056_v10  ;;  %v2062_v20 = vadd.f32 %v2061_v15, %v3963_v16 }
 0x459   : > { %2398 = vst [vmem:[%s3971_s18 + $0x10] sm:$0xff] %v2743_v18  ;;  %v2744_v24 = vpack.c.bf16 %v2062_v20, %v2060_v14 }
 0x45b   : > { %2399 = vst [vmem:[%s3971_s18 + $0x18] sm:$0xff] %v2744_v24  ;;  %v2065_v25 = vpop.f32.mrb[72].mxu0 }
 0x45c   : > { %v2066_v22 = vadd.f32 %v2065_v25, %v3960_v1  ;;  %v2067_v32 = vpop.f32.mrb[73].mxu0 }
 0x45d   : > { %v2068_v26 = vadd.f32 %v2067_v32, %v3963_v16  ;;  %v2069_v27 = vpop.f32.mrb[74].mxu0 }
 0x45e   : > { %v2070_v23 = vadd.f32 %v2069_v27, %v3960_v1  ;;  %v2071_v28 = vpop.f32.mrb[75].mxu0 }
 0x45f   : > { %v2745_v29 = vpack.c.bf16 %v2068_v26, %v2066_v22  ;;  %v2072_v30 = vadd.f32 %v2071_v28, %v3963_v16 }
 0x461   : > { %2400 = vst [vmem:[%s3971_s18 + $0x20] sm:$0xff] %v2745_v29  ;;  %v2746_v31 = vpack.c.bf16 %v2072_v30, %v2070_v23 }
 0x463   : > { %2401 = vst [vmem:[%s3971_s18 + $0x28] sm:$0xff] %v2746_v31  ;;  %v2075_v33 = vpop.f32.mrb[76].mxu0 }
 0x464   : > { %v2076_v34 = vadd.f32 %v2075_v33, %v3960_v1  ;;  %v2077_v35 = vpop.f32.mrb[77].mxu0 }
 0x465   : > { %v2078_v36 = vadd.f32 %v2077_v35, %v3963_v16  ;;  %v2079_v37 = vpop.f32.mrb[78].mxu0 }
 0x466   : > { %v2080_v38 = vadd.f32 %v2079_v37, %v3960_v1  ;;  %v2081_v39 = vpop.f32.mrb[79].mxu0 }
 0x467   : > { %v2747_v40 = vpack.c.bf16 %v2078_v36, %v2076_v34  ;;  %v2082_v41 = vadd.f32 %v2081_v39, %v3963_v16 }
 0x469   : > { %2402 = vst [vmem:[%s3971_s18 + $0x30] sm:$0xff] %v2747_v40  ;;  %v2748_v42 = vpack.c.bf16 %v2082_v41, %v2080_v38 }
 0x46b   : > { %2403 = vst [vmem:[%s3971_s18 + $0x38] sm:$0xff] %v2748_v42  ;;  %v2085_v43 = vpop.f32.mrb[80].mxu0 }
 0x46c   : > { %v2086_v44 = vadd.f32 %v2085_v43, %v3960_v1  ;;  %v2087_v45 = vpop.f32.mrb[81].mxu0 }
 0x46d   : > { %v2088_v46 = vadd.f32 %v2087_v45, %v3963_v16  ;;  %v2089_v47 = vpop.f32.mrb[82].mxu0 }
 0x46e   : > { %v2090_v48 = vadd.f32 %v2089_v47, %v3960_v1  ;;  %v2091_v49 = vpop.f32.mrb[83].mxu0 }
 0x46f   : > { %v2749_v50 = vpack.c.bf16 %v2088_v46, %v2086_v44  ;;  %v2092_v51 = vadd.f32 %v2091_v49, %v3963_v16 }
 0x471   : > { %2404 = vst [vmem:[%s3971_s18 + $0x40] sm:$0xff] %v2749_v50  ;;  %v2750_v52 = vpack.c.bf16 %v2092_v51, %v2090_v48 }
 0x473   : > { %2405 = vst [vmem:[%s3971_s18 + $0x48] sm:$0xff] %v2750_v52  ;;  %v2095_v53 = vpop.f32.mrb[84].mxu0 }
 0x474   : > { %v2096_v54 = vadd.f32 %v2095_v53, %v3960_v1  ;;  %v2097_v55 = vpop.f32.mrb[85].mxu0 }
 0x475   : > { %v2098_v56 = vadd.f32 %v2097_v55, %v3963_v16  ;;  %v2099_v57 = vpop.f32.mrb[86].mxu0 }
 0x476   : > { %v2100_v58 = vadd.f32 %v2099_v57, %v3960_v1  ;;  %v2101_v59 = vpop.f32.mrb[87].mxu0 }
 0x477   : > { %v2751_v60 = vpack.c.bf16 %v2098_v56, %v2096_v54  ;;  %v2102_v61 = vadd.f32 %v2101_v59, %v3963_v16 }
 0x479   : > { %2406 = vst [vmem:[%s3971_s18 + $0x50] sm:$0xff] %v2751_v60  ;;  %v2752_v62 = vpack.c.bf16 %v2102_v61, %v2100_v58 }
 0x47b   : > { %2407 = vst [vmem:[%s3971_s18 + $0x58] sm:$0xff] %v2752_v62  ;;  %v2105_v63 = vpop.f32.mrb[88].mxu0 }
 0x47c   : > { %v2106_v0 = vadd.f32 %v2105_v63, %v3960_v1  ;;  %v2107_v17 = vpop.f32.mrb[89].mxu0 }
 0x47d   : > { %v2108_v2 = vadd.f32 %v2107_v17, %v3963_v16  ;;  %v2109_v3 = vpop.f32.mrb[90].mxu0 }
 0x47e   : > { %v2110_v4 = vadd.f32 %v2109_v3, %v3960_v1  ;;  %v2111_v5 = vpop.f32.mrb[91].mxu0 }
 0x47f   : > { %v2753_v6 = vpack.c.bf16 %v2108_v2, %v2106_v0  ;;  %v2112_v7 = vadd.f32 %v2111_v5, %v3963_v16 }
 0x481   : > { %2408 = vst [vmem:[%s3971_s18 + $0x60] sm:$0xff] %v2753_v6  ;;  %v2754_v8 = vpack.c.bf16 %v2112_v7, %v2110_v4 }
 0x483   : > { %2409 = vst [vmem:[%s3971_s18 + $0x68] sm:$0xff] %v2754_v8  ;;  %v2115_v9 = vpop.f32.mrb[92].mxu0 }
 0x484   : > { %v2116_v19 = vadd.f32 %v2115_v9, %v3960_v1  ;;  %v2117_v21 = vpop.f32.mrb[93].mxu0 }
 0x485   : > { %v2118_v10 = vadd.f32 %v2117_v21, %v3963_v16  ;;  %v2119_v11 = vpop.f32.mrb[94].mxu0 }
 0x486   : > { %v2120_v12 = vadd.f32 %v2119_v11, %v3960_v1  ;;  %v2121_v13 = vpop.f32.mrb[95].mxu0 }
 0x487   : > { %v2755_v14 = vpack.c.bf16 %v2118_v10, %v2116_v19  ;;  %v2122_v15 = vadd.f32 %v2121_v13, %v3963_v16 }
 0x489   : > { %2410 = vst [vmem:[%s3971_s18 + $0x70] sm:$0xff] %v2755_v14  ;;  %v2756_v18 = vpack.c.bf16 %v2122_v15, %v2120_v12 }
 0x48b   : > { %2411 = vst [vmem:[%s3971_s18 + $0x78] sm:$0xff] %v2756_v18  ;;  %v2125_v20 = vpop.f32.mrb[96].mxu0 }
 0x48c   : > { %v2126_v24 = vadd.f32 %v2125_v20, %v3960_v1  ;;  %v2127_v25 = vpop.f32.mrb[97].mxu0 }
 0x48d   : > { %v2128_v22 = vadd.f32 %v2127_v25, %v3963_v16  ;;  %v2129_v32 = vpop.f32.mrb[98].mxu0 }
 0x48e   : > { %v2130_v26 = vadd.f32 %v2129_v32, %v3960_v1  ;;  %v2131_v27 = vpop.f32.mrb[99].mxu0 }
 0x48f   : > { %v2757_v23 = vpack.c.bf16 %v2128_v22, %v2126_v24  ;;  %v2132_v28 = vadd.f32 %v2131_v27, %v3963_v16 }
 0x491   : > { %2412 = vst [vmem:[%s3971_s18 + $0x80] sm:$0xff] %v2757_v23  ;;  %v2758_v29 = vpack.c.bf16 %v2132_v28, %v2130_v26 }
 0x493   : > { %2413 = vst [vmem:[%s3971_s18 + $0x88] sm:$0xff] %v2758_v29  ;;  %v2135_v30 = vpop.f32.mrb[100].mxu0 }
 0x494   : > { %v2136_v31 = vadd.f32 %v2135_v30, %v3960_v1  ;;  %v2137_v33 = vpop.f32.mrb[101].mxu0 }
 0x495   : > { %v2138_v34 = vadd.f32 %v2137_v33, %v3963_v16  ;;  %v2139_v35 = vpop.f32.mrb[102].mxu0 }
 0x496   : > { %v2140_v36 = vadd.f32 %v2139_v35, %v3960_v1  ;;  %v2141_v37 = vpop.f32.mrb[103].mxu0 }
 0x497   : > { %v2759_v38 = vpack.c.bf16 %v2138_v34, %v2136_v31  ;;  %v2142_v39 = vadd.f32 %v2141_v37, %v3963_v16 }
 0x499   : > { %2414 = vst [vmem:[%s3971_s18 + $0x90] sm:$0xff] %v2759_v38  ;;  %v2760_v40 = vpack.c.bf16 %v2142_v39, %v2140_v36 }
 0x49b   : > { %2415 = vst [vmem:[%s3971_s18 + $0x98] sm:$0xff] %v2760_v40  ;;  %v2145_v41 = vpop.f32.mrb[104].mxu0 }
 0x49c   : > { %v2146_v42 = vadd.f32 %v2145_v41, %v3960_v1  ;;  %v2147_v43 = vpop.f32.mrb[105].mxu0 }
 0x49d   : > { %v2148_v44 = vadd.f32 %v2147_v43, %v3963_v16  ;;  %v2149_v45 = vpop.f32.mrb[106].mxu0 }
 0x49e   : > { %v2150_v46 = vadd.f32 %v2149_v45, %v3960_v1  ;;  %v2151_v47 = vpop.f32.mrb[107].mxu0 }
 0x49f   : > { %v2761_v48 = vpack.c.bf16 %v2148_v44, %v2146_v42  ;;  %v2152_v49 = vadd.f32 %v2151_v47, %v3963_v16 }
 0x4a1   : > { %2416 = vst [vmem:[%s3971_s18 + $0xa0] sm:$0xff] %v2761_v48  ;;  %v2762_v50 = vpack.c.bf16 %v2152_v49, %v2150_v46 }
 0x4a3   : > { %2417 = vst [vmem:[%s3971_s18 + $0xa8] sm:$0xff] %v2762_v50  ;;  %v2155_v51 = vpop.f32.mrb[108].mxu0 }
 0x4a4   : > { %v2156_v52 = vadd.f32 %v2155_v51, %v3960_v1  ;;  %v2157_v53 = vpop.f32.mrb[109].mxu0 }
 0x4a5   : > { %v2158_v54 = vadd.f32 %v2157_v53, %v3963_v16  ;;  %v2159_v55 = vpop.f32.mrb[110].mxu0 }
 0x4a6   : > { %v2160_v56 = vadd.f32 %v2159_v55, %v3960_v1  ;;  %v2161_v57 = vpop.f32.mrb[111].mxu0 }
 0x4a7   : > { %v2763_v58 = vpack.c.bf16 %v2158_v54, %v2156_v52  ;;  %v2162_v59 = vadd.f32 %v2161_v57, %v3963_v16 }
 0x4a9   : > { %2418 = vst [vmem:[%s3971_s18 + $0xb0] sm:$0xff] %v2763_v58  ;;  %v2764_v60 = vpack.c.bf16 %v2162_v59, %v2160_v56 }
 0x4ab   : > { %2419 = vst [vmem:[%s3971_s18 + $0xb8] sm:$0xff] %v2764_v60  ;;  %v2165_v61 = vpop.f32.mrb[112].mxu0 }
 0x4ac   : > { %v2166_v62 = vadd.f32 %v2165_v61, %v3960_v1  ;;  %v2167_v63 = vpop.f32.mrb[113].mxu0 }
 0x4ad   : > { %v2168_v0 = vadd.f32 %v2167_v63, %v3963_v16  ;;  %v2169_v17 = vpop.f32.mrb[114].mxu0 }
 0x4ae   : > { %v2170_v2 = vadd.f32 %v2169_v17, %v3960_v1  ;;  %v2171_v3 = vpop.f32.mrb[115].mxu0 }
 0x4af   : > { %v2765_v4 = vpack.c.bf16 %v2168_v0, %v2166_v62  ;;  %v2172_v5 = vadd.f32 %v2171_v3, %v3963_v16 }
 0x4b1   : > { %2420 = vst [vmem:[%s3971_s18 + $0xc0] sm:$0xff] %v2765_v4  ;;  %v2766_v6 = vpack.c.bf16 %v2172_v5, %v2170_v2 }
 0x4b3   : > { %2421 = vst [vmem:[%s3971_s18 + $0xc8] sm:$0xff] %v2766_v6  ;;  %v2175_v7 = vpop.f32.mrb[116].mxu0 }
 0x4b4   : > { %v2176_v8 = vadd.f32 %v2175_v7, %v3960_v1  ;;  %v2177_v9 = vpop.f32.mrb[117].mxu0 }
 0x4b5   : > { %v2178_v19 = vadd.f32 %v2177_v9, %v3963_v16  ;;  %v2179_v21 = vpop.f32.mrb[118].mxu0 }
 0x4b6   : > { %v2180_v10 = vadd.f32 %v2179_v21, %v3960_v1  ;;  %v2181_v11 = vpop.f32.mrb[119].mxu0 }
 0x4b7   : > { %v2767_v12 = vpack.c.bf16 %v2178_v19, %v2176_v8  ;;  %v2182_v13 = vadd.f32 %v2181_v11, %v3963_v16 }
 0x4b9   : > { %2422 = vst [vmem:[%s3971_s18 + $0xd0] sm:$0xff] %v2767_v12  ;;  %v2768_v14 = vpack.c.bf16 %v2182_v13, %v2180_v10 }
 0x4bb   : > { %2423 = vst [vmem:[%s3971_s18 + $0xd8] sm:$0xff] %v2768_v14  ;;  %v2185_v15 = vpop.f32.mrb[128].mxu1 }
 0x4bc   : > { %v2186_v18 = vadd.f32 %v2185_v15, %v3960_v1  ;;  %v2187_v20 = vpop.f32.mrb[129].mxu1 }
 0x4bd   : > { %v2188_v24 = vadd.f32 %v2187_v20, %v3963_v16  ;;  %v2189_v25 = vpop.f32.mrb[130].mxu1 }
 0x4be   : > { %v2190_v22 = vadd.f32 %v2189_v25, %v3960_v1  ;;  %v2191_v32 = vpop.f32.mrb[131].mxu1 }
 0x4bf   : > { %v2769_v26 = vpack.c.bf16 %v2188_v24, %v2186_v18  ;;  %v2192_v27 = vadd.f32 %v2191_v32, %v3963_v16 }
 0x4c1   : > { %2424 = vst [vmem:[%s3971_s18 + $0xe0] sm:$0xff] %v2769_v26  ;;  %v2770_v23 = vpack.c.bf16 %v2192_v27, %v2190_v22 }
 0x4c3   : > { %2425 = vst [vmem:[%s3971_s18 + $0xe8] sm:$0xff] %v2770_v23  ;;  %v2195_v28 = vpop.f32.mrb[132].mxu1 }
 0x4c4   : > { %v2196_v29 = vadd.f32 %v2195_v28, %v3960_v1  ;;  %v2197_v30 = vpop.f32.mrb[133].mxu1 }
 0x4c5   : > { %v2198_v31 = vadd.f32 %v2197_v30, %v3963_v16  ;;  %v2199_v33 = vpop.f32.mrb[134].mxu1 }
 0x4c6   : > { %v2200_v34 = vadd.f32 %v2199_v33, %v3960_v1  ;;  %v2201_v35 = vpop.f32.mrb[135].mxu1 }
 0x4c7   : > { %v2771_v36 = vpack.c.bf16 %v2198_v31, %v2196_v29  ;;  %v2202_v37 = vadd.f32 %v2201_v35, %v3963_v16 }
 0x4c9   : > { %2426 = vst [vmem:[%s3971_s18 + $0xf0] sm:$0xff] %v2771_v36  ;;  %v2772_v38 = vpack.c.bf16 %v2202_v37, %v2200_v34 }
 0x4cb   : > { %2427 = vst [vmem:[%s3971_s18 + $0xf8] sm:$0xff] %v2772_v38 }
 0x4cc   : > { %3352 = shalt.err (!%p3349_p13)
}
 0x4cd   : > { %s3353_s25 = scalar_lea.hbm %s4068_s15, 4096  ;;  %s3357_s18 = scalar_lea.hbm %s4155_s26, 8192 }
 0x4ce   : > { %p3354_p9 = scmp.ne.s32.totalorder %s4068_s15, %s3353_s25  ;;  %p3358_p4 = scmp.lt.u32.totalorder %s4068_s15, %s4155_s26 }
 0x4cf   : > { %p3359_p8 = scmp.lt.u32.totalorder %s3357_s18, %s3353_s25  ;;  %p3361_p3 = scmp.lt.u32.totalorder %s3353_s25, %s4068_s15 }
 0x4d0   : > { %p3355_p0 = pnand %p3354_p9, %p3646_p10 }
 0x4d1   : > { %p3360_p6 = por %p3359_p8, %p3358_p4 }
 0x4d2   : > { %p3356_p11 = pneg %p3355_p0 }
 0x4d3   : > { %p3362_p5 = por %p3361_p3, %p3360_p6 }
 0x4d5   : > { %p3363_p7 = pnand %p3362_p5, %p3356_p11 }
 0x4d7   : > { %3366 = shalt.err (!%p3363_p7)
}
 0x4d8   : > { %s3426_s24 = smov 128   ;;  %s3427_s17 = smov 8  }
 0x4d9   : > { %2937 = dma.vmem_to_hbm [thread:$0]  (%p3646_p10), %s4070_s23, 4096, %s4068_s15, %s2429_s13, %s3426_s24, %s3426_s24, %s3427_s17  }
 0x4da PF: > { %s4156_s22 = sld [smem:[#allocation16_spill]]  ;;  %s4157_s9 = sld [smem:[#allocation17_spill]] }
 0x4db   : > { %p4159_p1 = scmp.ge.s32.totalorder %s3413_s12, 2 }
 0x4e0   : > { %s2458_s19 = sand.u32 1, %s4156_s22   ;;  %p4158_p12 = scmp.ne.s32.totalorder %s4157_s9, 0 }
 0x4e1   : > { %s2459_s25 = scalar_lea.sflag [#allocation4], %s2458_s19 }
 0x4e2   : > { %p2957_p2 = pnand %p4159_p1, %p4158_p12 }
 0x4e4   : > { %3396 = dma.done.wait (!%p2957_p2), %s2459_s25, 4096  }
 0x4e5   : > { %3398 = vsyncadd (!%p2957_p2), %s2459_s25, 4294963200  ;;  %p24_p13 = scmp.ge.s32.totalorder %s3636_s14, 4   ;;  %s4160_s30 = smov %s3405_s10 }
 0x4e6   : > { %s4161_s10 = smov %s3409_s11  ;;  %s4162_s11 = smov %s3652_s27 }
 0x4e7   : > { %s4163_s12 = smov %s3636_s14  ;;  %26 = sbr.rel (!%p24_p13) target bundleno = 9 (0x9), region = 117 }
 0x4ee   :  { %2464 = vsyncpa [#allocation3], 1 }
 0x4ef   :  { %2466 = vsyncpa [#allocation3 + $0x1], 1 }
 0x4f0   :  { %2467 = vsyncpa [#allocation6], 1 }
 0x4f1   :  { %2468 = vsyncpa [#allocation9], 1 }
 0x4f2   :  { %2469 = vsyncpa [#allocation4], 1 }
 0x4f3   :  { %2471 = vsyncpa [#allocation4 + $0x1], 1 }

// kernel: tpu_custom_call.1
= control target key start
LH: loop header
LB: loop body
LE: loop exit
PB: predicated region body
PF: predicated region fallthrough
CT: control target
= control target key end

     0   :  { %s4116_s0 = inlined_call_operand.hbm [shape: bf16[512,256], index: 0, kind: input, shape index: {}]   ;;  %s4117_s1 = inlined_call_operand.hbm [shape: bf16[256,256], index: 1, kind: input, shape index: {}]   ;;  %s4118_s2 = inlined_call_operand.vmem [shape: f32[1,256], index: 2, kind: input, shape index: {}]   ;;  %s4119_s3 = inlined_call_operand.hbm [shape: bf16[256,128], index: 3, kind: input, shape index: {}]   ;;  %s4120_s4 = inlined_call_operand.vmem [shape: f32[1,128], index: 4, kind: input, shape index: {}]   ;;  %s4121_s5 = inlined_call_operand.hbm [shape: bf16[128,256], index: 5, kind: input, shape index: {}]   ;;  %s4122_s6 = inlined_call_operand.vmem [shape: f32[1,256], index: 6, kind: input, shape index: {}]   ;;  %s4123_s7 = inlined_call_operand.hbm [shape: bf16[256,256], index: 7, kind: input, shape index: {}]   ;;  %s4124_s8 = inlined_call_operand.vmem [shape: f32[1,256], index: 8, kind: input, shape index: {}]   ;;  %s4125_s9 = inlined_call_operand.hbm [shape: bf16[512,256], index: 9, kind: output, shape index: {}]  }
   0x1   :  { %4136 = sst [smem:[#allocation18_spill]] %s4125_s9 }
   0x2   :  { %14 = vsyncpa [#allocation3], 0 }
   0x3   :  { %16 = vsyncpa [#allocation3 + $0x1], 0 }
   0x4   :  { %17 = vsyncpa [#allocation6], 0 }
   0x5   :  { %18 = vsyncpa [#allocation9], 0 }
   0x6   :  { %19 = vsyncpa [#allocation4], 0 }
   0x7   :  { %21 = vsyncpa [#allocation4 + $0x1], 0  ;;  %s3478_s30 = smov 0   ;;  %s3480_s10 = smov 0  }
   0x8   :  { %s3482_s11 = smov 0   ;;  %s3484_s12 = smov 0  }
   0x9 LB: > { %4137 = sst [smem:[#allocation16_spill]] %s3401_s30  ;;  %s3499_s13 = sadd.s32 4294967295, %s3413_s12   ;;  %s3413_s12 = sphi %s3484_s12, %s4163_s12   ;;  %s3409_s11 = sphi %s3482_s11, %s4162_s11   ;;  %s3405_s10 = sphi %s3480_s10, %s4161_s10   ;;  %s3401_s30 = sphi %s3478_s30, %s4160_s30  }
   0xa   : > { %s2554_s14 = sadd.s32 4294967294, %s3413_s12   ;;  %p47_p0 = scmp.ne.s32.totalorder %s3405_s10, %s3401_s30 }
   0xb   : > { %p4126_p1 = scmp.eq.s32.totalorder %s3499_s13, 0  ;;  %p245_p3 = scmp.eq.s32.totalorder %s2554_s14, 1 }
   0xc   : > { %p2555_p5 = scmp.ge.s32.totalorder %s3413_s12, 1  ;;  %p252_p7 = scmp.lt.s32.totalorder %s3413_s12, 3 }
   0xd   : > { %p3508_p4 = por %p4126_p1, %p47_p0  ;;  %p3513_p6 = por %p245_p3, %p47_p0 }
   0xe   : > { %p3518_p8 = pnand %p2555_p5, %p252_p7  ;;  %s3415_s18 = smov [#allocation5]  }
   0xf   : > { %s4138_s15 = scalar_select %p3508_p4, 1, 0 }
  0x10   : > { %s4139_s16 = scalar_select %p3513_p6, 1, 0 }
  0x11   : > { %s4141_s17 = scalar_select %p3518_p8, 1, 0 }
  0x12   : > { %4140 = sst [smem:[#allocation17_spill]] %s4139_s16  ;;  %s264_s19 = sshll.u32 %s3415_s18, 4  ;;  %s3522_s19 = int_to_ptr.vmem [resolvable:$true] %s264_s19 }
  0x13   : > { %p2939_p9 = pneg %p3518_p8  ;;  %s3416_s21 = smov [#allocation8]  }
  0x14   : > { %s296_s22 = sshll.u32 %s3416_s21, 4  ;;  %s3417_s23 = smov [#allocation7]   ;;  %s3533_s22 = int_to_ptr.vmem [resolvable:$true] %s296_s22 }
  0x15   : > { %p3529_p11 = pnand %p2939_p9, %p4126_p1  ;;  %s3535_s24 = sshll.u32 %s3417_s23, 4  ;;  %s281_s24 = int_to_ptr.vmem [resolvable:$true] %s3535_s24 }
  0x16   : > { %s3197_s27 = scalar_lea.hbm %s4117_s1, 4096 }
  0x17   : > { %p3198_p12 = scmp.ne.s32.totalorder %s4117_s1, %s3197_s27  ;;  %p3545_p13 = pneg %p3529_p11 }
  0x18   : > { %p3204_p5 = scmp.lt.u32.totalorder %s3197_s27, %s4117_s1 }
  0x19   : > { %p3200_p0 = pnand %p3545_p13, %p3198_p12 }
  0x1b   : > { %p3201_p3 = pneg %p3200_p0 }
  0x1d   : > { %p3206_p7 = pnand %p3204_p5, %p3201_p3 }
  0x1f   : > { %3209 = shalt.err (!%p3206_p7)
}
  0x20   : > { %s3210_s23 = scalar_lea.vmem %s3522_s19, 4096  ;;  %p3218_p2 = scmp.lt.s32.totalorder %s3522_s19, %s3522_s19 }
  0x21   : > { %p3211_p9 = scmp.ne.s32.totalorder %s3522_s19, %s3210_s23  ;;  %p3219_p6 = scmp.lt.s32.totalorder %s3210_s23, %s3210_s23 }
  0x23   : > { %p3213_p10 = pnand %p3211_p9, %p3545_p13  ;;  %p3220_p12 = por %p3219_p6, %p3218_p2 }
  0x25   : > { %p3214_p1 = pneg %p3213_p10 }
  0x27   : > { %p3221_p0 = pnand %p3220_p12, %p3214_p1 }
  0x29   : > { %3224 = shalt.err (!%p3221_p0)
}
  0x2a   : > { %s4132_s25 = smov 128   ;;  %s4134_s26 = smov 8  }
  0x2b   : > { %2942 = dma.hbm_to_vmem [thread:$0]  (!%p3529_p11), %s4117_s1, 4096, %s3522_s19, [#allocation6], %s4132_s25, %s4132_s25, %s4134_s26  }
  0x2c   : > { %s3225_s21 = scalar_lea.hbm %s4121_s5, 2048 }
  0x2d   : > { %p3226_p1 = scmp.ne.s32.totalorder %s4121_s5, %s3225_s21  ;;  %p3232_p10 = scmp.lt.u32.totalorder %s3225_s21, %s4121_s5 }
  0x2f   : > { %p3228_p2 = pnand %p3226_p1, %p3545_p13 }
  0x31   : > { %p3229_p6 = pneg %p3228_p2 }
  0x33   : > { %p3234_p3 = pnand %p3232_p10, %p3229_p6 }
  0x35   : > { %3237 = shalt.err (!%p3234_p3)
}
  0x36   : > { %s3238_s19 = scalar_lea.vmem %s3533_s22, 2048  ;;  %p3246_p12 = scmp.lt.s32.totalorder %s3533_s22, %s3533_s22 }
  0x37   : > { %p3239_p5 = scmp.ne.s32.totalorder %s3533_s22, %s3238_s19  ;;  %p3247_p0 = scmp.lt.s32.totalorder %s3238_s19, %s3238_s19 }
  0x39   : > { %p3241_p7 = pnand %p3239_p5, %p3545_p13  ;;  %p3248_p1 = por %p3247_p0, %p3246_p12 }
  0x3b   : > { %p3242_p9 = pneg %p3241_p7 }
  0x3d   : > { %p3249_p2 = pnand %p3248_p1, %p3242_p9 }
  0x3f   : > { %3252 = shalt.err (!%p3249_p2)
}
  0x40   : > { %2948 = dma.hbm_to_vmem [thread:$0]  (!%p3529_p11), %s4121_s5, 2048, %s3533_s22, [#allocation9], %s4132_s25, %s4132_s25, %s4134_s26  }
  0x41   : > { %s3253_s28 = scalar_lea.hbm %s4119_s3, 2048 }
  0x42   : > { %p3254_p6 = scmp.ne.s32.totalorder %s4119_s3, %s3253_s28  ;;  %p3260_p5 = scmp.lt.u32.totalorder %s3253_s28, %s4119_s3 }
  0x44   : > { %p3256_p10 = pnand %p3254_p6, %p3545_p13 }
  0x46   : > { %p3257_p3 = pneg %p3256_p10 }
  0x48   : > { %p3262_p7 = pnand %p3260_p5, %p3257_p3 }
  0x4a   : > { %3265 = shalt.err (!%p3262_p7)
}
  0x4b   : > { %s3266_s19 = scalar_lea.vmem %s281_s24, 2048  ;;  %p3274_p1 = scmp.lt.s32.totalorder %s281_s24, %s281_s24 }
  0x4c   : > { %p3267_p9 = scmp.ne.s32.totalorder %s281_s24, %s3266_s19  ;;  %p3275_p2 = scmp.lt.s32.totalorder %s3266_s19, %s3266_s19 }
  0x4e   : > { %p3269_p12 = pnand %p3267_p9, %p3545_p13  ;;  %p3276_p4 = por %p3275_p2, %p3274_p1 }
  0x50   : > { %p3270_p0 = pneg %p3269_p12 }
  0x52   : > { %p3277_p8 = pnand %p3276_p4, %p3270_p0 }
  0x54   : > { %3280 = shalt.err (!%p3277_p8)
}
  0x55   : > { %s3420_s22 = smov 64   ;;  %s3421_s9 = smov 4  }
  0x56   : > { %2945 = dma.hbm_to_vmem [thread:$0]  (!%p3529_p11), %s4119_s3, 2048, %s281_s24, [#allocation6], %s3420_s22, %s3420_s22, %s3421_s9  }
  0x57   : > { %s3422_s27 = smov [#allocation10]   ;;  %s3281_s21 = scalar_lea.hbm %s4123_s7, 4096 }
  0x58   : > { %s312_s28 = sshll.u32 %s3422_s27, 4  ;;  %p3282_p4 = scmp.ne.s32.totalorder %s4123_s7, %s3281_s21  ;;  %s313_s28 = int_to_ptr.vmem [resolvable:$true] %s312_s28 }
  0x59   : > { %p3288_p10 = scmp.lt.u32.totalorder %s3281_s21, %s4123_s7 }
  0x5a   : > { %p3284_p8 = pnand %p3282_p4, %p3545_p13 }
  0x5c   : > { %p3285_p6 = pneg %p3284_p8 }
  0x5e   : > { %p3290_p3 = pnand %p3288_p10, %p3285_p6 }
  0x60   : > { %3293 = shalt.err (!%p3290_p3)
}
  0x61   : > { %s3294_s24 = scalar_lea.vmem %s313_s28, 4096  ;;  %p3302_p12 = scmp.lt.s32.totalorder %s313_s28, %s313_s28 }
  0x62   : > { %p3295_p5 = scmp.ne.s32.totalorder %s313_s28, %s3294_s24  ;;  %p3303_p0 = scmp.lt.s32.totalorder %s3294_s24, %s3294_s24 }
  0x64   : > { %p3297_p7 = pnand %p3295_p5, %p3545_p13  ;;  %p3304_p1 = por %p3303_p0, %p3302_p12 }
  0x66   : > { %p3298_p9 = pneg %p3297_p7 }
  0x68   : > { %p3305_p2 = pnand %p3304_p1, %p3298_p9 }
  0x6a   : > { %3308 = shalt.err (!%p3305_p2)
}
  0x6b   : > { %s4144_s22 = smov 8   ;;  %s4145_s9 = smov 128  }
  0x6c   : > { %2951 = dma.hbm_to_vmem [thread:$0]  (!%p3529_p11), %s4123_s7, 4096, %s313_s28, [#allocation9], %s4145_s9, %s4145_s9, %s4144_s22  }
  0x6d   : > { %s3636_s14 = sadd.s32 1, %s3413_s12   ;;  %s34_s20 = sadd.s32 1, %s3409_s11 }
  0x6e   : > { %s31_s30 = ssub.s32 %s3413_s12, %s3636_s14  ;;  %p41_p13 = scmp.ne.s32.totalorder %s3409_s11, %s3405_s10 }
  0x6f   : > { %p32_p4 = scmp.eq.s32.totalorder %s31_s30, 0  ;;  %p42_p8 = scmp.eq.s32.totalorder %s3413_s12, 0 }
  0x70   : > { %p4146_p6 = scmp.eq.s32.totalorder %s3499_s13, 1  ;;  %p2964_p3 = scmp.lt.s32.totalorder %s3413_s12, 2 }
  0x71   : > { %s3652_s27 = scalar_select %p32_p4, %s3409_s11, %s34_s20  }
  0x72   : > { %p3646_p10 = por %p4146_p6, %p41_p13  ;;  %p43_p5 = por %p42_p8, %p41_p13 }
  0x73   : > { %s329_s29 = sand.u32 1, %s3409_s11   ;;  %s2740_s28 = sshll.u32 %s3413_s12, 12 }
  0x74   : > { %s2561_s18 = sshll.u32 %s329_s29, 8  ;;  %s3659_s19 = scalar_lea.hbm %s4116_s0, %s2740_s28 }
  0x75   : > { %s333_s24 = scalar_lea.vmem [#allocation2], %s2561_s18  ;;  %p3663_p11 = pnand %p2964_p3, %p43_p5 }
  0x76   : > { %s341_s25 = sshll.u32 %s333_s24, 4  ;;  %s3667_s20 = scalar_lea.sflag [#allocation3], %s329_s29  ;;  %s3661_s25 = int_to_ptr.vmem [resolvable:$true] %s341_s25 }
  0x77   : > { %s3309_s30 = scalar_lea.hbm %s3659_s19, 4096  ;;  %p3311_p9 = pneg %p3663_p11 }
  0x78   : > { %p3310_p7 = scmp.ne.s32.totalorder %s3659_s19, %s3309_s30  ;;  %s3314_s21 = scalar_lea.hbm %s4116_s0, 8192 }
  0x79   : > { %p3315_p1 = scmp.lt.u32.totalorder %s3659_s19, %s4116_s0  ;;  %p3316_p2 = scmp.lt.u32.totalorder %s3314_s21, %s3309_s30 }
  0x7a   : > { %p3312_p12 = pnand %p3311_p9, %p3310_p7  ;;  %p3318_p4 = scmp.lt.u32.totalorder %s3309_s30, %s3659_s19 }
  0x7b   : > { %p3317_p13 = por %p3316_p2, %p3315_p1 }
  0x7c   : > { %p3313_p0 = pneg %p3312_p12 }
  0x7d   : > { %p3319_p8 = por %p3318_p4, %p3317_p13 }
  0x7f   : > { %p3320_p6 = pnand %p3319_p8, %p3313_p0 }
  0x81   : > { %3323 = shalt.err (!%p3320_p6)
}
  0x82   : > { %s3324_s29 = scalar_lea.vmem %s3661_s25, 4096  ;;  %s3423_s18 = smov [#allocation2]  }
  0x83   : > { %p3325_p3 = scmp.ne.s32.totalorder %s3661_s25, %s3324_s29  ;;  %s3329_s28 = sshll.u32 %s3423_s18, 4  ;;  %s3330_s28 = int_to_ptr.vmem [resolvable:$false] %s3329_s28 }
  0x84   : > { %s3331_s23 = scalar_lea.vmem %s3330_s28, 8192  ;;  %p3332_p12 = scmp.lt.s32.totalorder %s3661_s25, %s3330_s28 }
  0x85   : > { %p3327_p5 = pnand %p3325_p3, %p3311_p9  ;;  %p3333_p1 = scmp.lt.s32.totalorder %s3331_s23, %s3324_s29 }
  0x87   : > { %p3328_p7 = pneg %p3327_p5  ;;  %p3334_p2 = por %p3333_p1, %p3332_p12 }
  0x89   : > { %p3335_p13 = pnand %p3334_p2, %p3328_p7 }
  0x8b   : > { %3338 = shalt.err (!%p3335_p13)
}
  0x8c   : > { %2955 = dma.hbm_to_vmem [thread:$0]  (!%p3663_p11), %s3659_s19, 4096, %s3661_s25, %s3667_s20, %s4145_s9, %s4145_s9, %s4144_s22  }
  0x8d   : > { %p4149_p9 = scmp.ne.s32.totalorder %s4141_s17, 0 }
  0x8e   : > { %s3701_s30 = sand.u32 (!%p4149_p9), 1, %s3405_s10   ;;  %p4150_p0 = scmp.ne.s32.totalorder (!%p4149_p9), %s4138_s15, 0 }
  0x8f   : > { %353 = sbr.rel (%p4149_p9) target bundleno = 1242 (0x4da), region = 56  ;;  %s2566_s21 = sshll.u32 (!%p4149_p9), %s3701_s30, 8 }
  0x90   : > { %s356_s24 = scalar_lea.sflag (!%p4149_p9), [#allocation3], %s3701_s30  ;;  %s3707_s26 = scalar_lea.vmem (!%p4149_p9), [#allocation2], %s2566_s21 }
  0x96   : > { %3384 = dma.done.wait (%p4150_p0), %s356_s24, 4096  }
  0x97   : > { %3386 = vsyncadd (%p4150_p0), %s356_s24, 4294963200  ;;  %p4151_p11 = scmp.eq.s32.totalorder %s3499_s13, 0 }
  0x99   : > { %3388 = dma.done.wait (%p4151_p11), [#allocation6], 6144   ;;  %p4152_p4 = pmov %p4151_p11 }
  0x9b   : > { %3390 = vsyncadd (%p4152_p4), [#allocation6], 4294961152  ;;  %p4153_p8 = pmov %p4152_p4 }
  0x9c   : > { %p4154_p6 = pmov %p4152_p4 }
  0x9d   : > { %3392 = dma.done.wait (%p4153_p8), [#allocation9], 6144  }
  0x9e   : > { %3394 = vsyncadd (%p4154_p6), [#allocation9], 4294961152  ;;  %v3013_v0 = vld [vmem:[#allocation5 + $0x4] ss:$8 sps:$4 sm:$0xff]   ;;  %v3015_v1 = vld [vmem:[#allocation5] ss:$8 sps:$4 sm:$0xff]  }
  0x9f   : > { %809 = vmatprep.subr.bf16.mxu0 %v3013_v0  ;;  %v3016_v2 = vld [vmem:[#allocation5 + $0x14] ss:$8 sps:$4 sm:$0xff]   ;;  %v3018_v3 = vld [vmem:[#allocation5 + $0x10] ss:$8 sps:$4 sm:$0xff]   ;;  %v3019_v4 = vld [vmem:[#allocation5 + $0x24] ss:$8 sps:$4 sm:$0xff]  }
  0xa0   : > { %810 = vmatpush1.bf16.msra.mxu0 %v3015_v1  ;;  %v3021_v5 = vld [vmem:[#allocation5 + $0x20] ss:$8 sps:$4 sm:$0xff]   ;;  %v3022_v6 = vld [vmem:[#allocation5 + $0x34] ss:$8 sps:$4 sm:$0xff]   ;;  %v3024_v7 = vld [vmem:[#allocation5 + $0x30] ss:$8 sps:$4 sm:$0xff]  }
  0xa1   : > { %811 = vmatprep.subr.bf16.mxu0 %v3016_v2  ;;  %v3025_v8 = vld [vmem:[#allocation5 + $0x44] ss:$8 sps:$4 sm:$0xff]   ;;  %v3027_v9 = vld [vmem:[#allocation5 + $0x40] ss:$8 sps:$4 sm:$0xff]   ;;  %v3028_v10 = vld [vmem:[#allocation5 + $0x54] ss:$8 sps:$4 sm:$0xff]  }
  0xa2   : > { %v3030_v11 = vld [vmem:[#allocation5 + $0x50] ss:$8 sps:$4 sm:$0xff]   ;;  %v3031_v12 = vld [vmem:[#allocation5 + $0x64] ss:$8 sps:$4 sm:$0xff]   ;;  %v3033_v14 = vld [vmem:[#allocation5 + $0x60] ss:$8 sps:$4 sm:$0xff]  }
  0xa3   : > { %v3063_v13 = vld [vmem:[%s3707_s26 + $0x4] ss:$8 sps:$4 sm:$0xff]   ;;  %v3034_v15 = vld [vmem:[#allocation5 + $0x74] ss:$8 sps:$4 sm:$0xff]   ;;  %v3036_v16 = vld [vmem:[#allocation5 + $0x70] ss:$8 sps:$4 sm:$0xff]  }
  0xa4   : > { %812 = vmatpush1.bf16.msra.mxu0 %v3018_v3  ;;  %841 = vmatprep.mubr.bf16.mxu0 %v3063_v13  ;;  %v3037_v17 = vld [vmem:[#allocation5 + $0x84] ss:$8 sps:$4 sm:$0xff]   ;;  %v3039_v18 = vld [vmem:[#allocation5 + $0x80] ss:$8 sps:$4 sm:$0xff]   ;;  %v3040_v19 = vld [vmem:[#allocation5 + $0x94] ss:$8 sps:$4 sm:$0xff]  }
  0xa5   : > { %813 = vmatprep.subr.bf16.mxu0 %v3019_v4  ;;  %v3042_v20 = vld [vmem:[#allocation5 + $0x90] ss:$8 sps:$4 sm:$0xff]   ;;  %v3043_v21 = vld [vmem:[#allocation5 + $0xa4] ss:$8 sps:$4 sm:$0xff]   ;;  %v3045_v22 = vld [vmem:[#allocation5 + $0xa0] ss:$8 sps:$4 sm:$0xff]  }
  0xa6   : > { %v3046_v23 = vld [vmem:[#allocation5 + $0xb4] ss:$8 sps:$4 sm:$0xff]   ;;  %v3048_v24 = vld [vmem:[#allocation5 + $0xb0] ss:$8 sps:$4 sm:$0xff]   ;;  %v3049_v25 = vld [vmem:[#allocation5 + $0xc4] ss:$8 sps:$4 sm:$0xff]  }
  0xa7   : > { %v3051_v26 = vld [vmem:[#allocation5 + $0xc0] ss:$8 sps:$4 sm:$0xff]   ;;  %v3052_v27 = vld [vmem:[#allocation5 + $0xd4] ss:$8 sps:$4 sm:$0xff]   ;;  %v3054_v28 = vld [vmem:[#allocation5 + $0xd0] ss:$8 sps:$4 sm:$0xff]  }
  0xa8   : > { %814 = vmatpush1.bf16.msra.mxu0 %v3021_v5  ;;  %v3055_v29 = vld [vmem:[#allocation5 + $0xe4] ss:$8 sps:$4 sm:$0xff]   ;;  %v3057_v30 = vld [vmem:[#allocation5 + $0xe0] ss:$8 sps:$4 sm:$0xff]   ;;  %v3058_v31 = vld [vmem:[#allocation5 + $0xf4] ss:$8 sps:$4 sm:$0xff]  }
  0xa9   : > { %815 = vmatprep.subr.bf16.mxu0 %v3022_v6  ;;  %v3109_v32 = vld [vmem:[#allocation7 + $0x40] sm:$0xff]   ;;  %v3111_v34 = vld [vmem:[#allocation7 + $0x48] sm:$0xff]   ;;  %v3060_v35 = vld [vmem:[#allocation5 + $0xf0] ss:$8 sps:$4 sm:$0xff]   ;;  %s3971_s18 = scalar_lea.vmem [#allocation11], %s2566_s21  ;;  %s2774_s28 = sshll.u32 %s3499_s13, 12 }
  0xaa   : > { %v3110_v33 = vld [vmem:[#allocation7] sm:$0xff]   ;;  %2775 = vmatprep.subr.bf16.mxu1 %v3109_v32  ;;  %v3064_v37 = vld [vmem:[%s3707_s26 + $0x14] ss:$8 sps:$4 sm:$0xff]   ;;  %v3112_v38 = vld [vmem:[#allocation7 + $0x8] sm:$0xff]   ;;  %s2443_s23 = sshll.u32 %s3971_s18, 4  ;;  %s2429_s13 = scalar_lea.sflag [#allocation4], %s3701_s30  ;;  %s4070_s23 = int_to_ptr.vmem [resolvable:$true] %s2443_s23 }
  0xab   : > { %v3061_v36 = vld [vmem:[%s3707_s26] ss:$8 sps:$4 sm:$0xff]   ;;  %2776 = vmatpush3.bf16.msra.mxu1 %v3110_v33  ;;  %v3113_v39 = vld [vmem:[#allocation7 + $0x50] sm:$0xff]   ;;  %v3115_v41 = vld [vmem:[#allocation7 + $0x58] sm:$0xff]   ;;  %s3339_s17 = scalar_lea.vmem %s4070_s23, 4096  ;;  %s3425_s22 = smov [#allocation11]  }
  0xac   : > { %816 = vmatpush1.bf16.msra.mxu0 %v3024_v7  ;;  %2777 = vmatprep.subr.bf16.mxu1 %v3111_v34  ;;  %v3114_v40 = vld [vmem:[#allocation7 + $0x10] sm:$0xff]   ;;  %v3116_v42 = vld [vmem:[#allocation7 + $0x18] sm:$0xff]   ;;  %v3117_v44 = vld [vmem:[#allocation7 + $0x60] sm:$0xff]   ;;  %p3340_p3 = scmp.ne.s32.totalorder %s4070_s23, %s3339_s17  ;;  %s3343_s9 = sshll.u32 %s3425_s22, 4  ;;  %s3344_s9 = int_to_ptr.vmem [resolvable:$false] %s3343_s9 }
  0xad   : > { %817 = vmatprep.subr.bf16.mxu0 %v3025_v8  ;;  %v3066_v43 = vld [vmem:[%s3707_s26 + $0x10] ss:$8 sps:$4 sm:$0xff]   ;;  %v3067_v45 = vld [vmem:[%s3707_s26 + $0x24] ss:$8 sps:$4 sm:$0xff]   ;;  %v3069_v48 = vld [vmem:[%s3707_s26 + $0x20] ss:$8 sps:$4 sm:$0xff]   ;;  %p3346_p12 = scmp.lt.s32.totalorder %s4070_s23, %s3344_s9 }
  0xae   : > { %v3118_v46 = vld [vmem:[#allocation7 + $0x20] sm:$0xff]   ;;  %v3119_v47 = vld [vmem:[#allocation7 + $0x68] sm:$0xff]   ;;  %v3070_v49 = vld [vmem:[%s3707_s26 + $0x34] ss:$8 sps:$4 sm:$0xff]   ;;  %p3341_p5 = pnand %p3340_p3, %p3646_p10  ;;  %s3345_s19 = scalar_lea.vmem %s3344_s9, 8192 }
  0xaf   : > { %2778 = vmatpush3.bf16.msra.mxu1 %v3112_v38  ;;  %v3072_v50 = vld [vmem:[%s3707_s26 + $0x30] ss:$8 sps:$4 sm:$0xff]   ;;  %v3073_v51 = vld [vmem:[%s3707_s26 + $0x44] ss:$8 sps:$4 sm:$0xff]   ;;  %v3075_v52 = vld [vmem:[%s3707_s26 + $0x40] ss:$8 sps:$4 sm:$0xff]   ;;  %p3347_p1 = scmp.lt.s32.totalorder %s3345_s19, %s3339_s17 }
  0xb0   : > { %818 = vmatpush1.bf16.msra.mxu0 %v3027_v9  ;;  %2779 = vmatprep.subr.bf16.mxu1 %v3113_v39  ;;  %v3076_v53 = vld [vmem:[%s3707_s26 + $0x54] ss:$8 sps:$4 sm:$0xff]   ;;  %v3078_v54 = vld [vmem:[%s3707_s26 + $0x50] ss:$8 sps:$4 sm:$0xff]   ;;  %v3079_v55 = vld [vmem:[%s3707_s26 + $0x64] ss:$8 sps:$4 sm:$0xff]   ;;  %p3342_p7 = pneg %p3341_p5 }
  0xb1   : > { %819 = vmatprep.subr.bf16.mxu0 %v3028_v10  ;;  %v3081_v56 = vld [vmem:[%s3707_s26 + $0x60] ss:$8 sps:$4 sm:$0xff]   ;;  %v3082_v57 = vld [vmem:[%s3707_s26 + $0x74] ss:$8 sps:$4 sm:$0xff]   ;;  %v3084_v58 = vld [vmem:[%s3707_s26 + $0x70] ss:$8 sps:$4 sm:$0xff]   ;;  %p3348_p2 = por %p3347_p1, %p3346_p12 }
  0xb2   : > { %v3085_v59 = vld [vmem:[%s3707_s26 + $0x84] ss:$8 sps:$4 sm:$0xff]   ;;  %v3087_v60 = vld [vmem:[%s3707_s26 + $0x80] ss:$8 sps:$4 sm:$0xff]   ;;  %v3088_v61 = vld [vmem:[%s3707_s26 + $0x94] ss:$8 sps:$4 sm:$0xff]  }
  0xb3   : > { %2780 = vmatpush3.bf16.msra.mxu1 %v3114_v40  ;;  %v3090_v62 = vld [vmem:[%s3707_s26 + $0x90] ss:$8 sps:$4 sm:$0xff]   ;;  %v3091_v63 = vld [vmem:[%s3707_s26 + $0xa4] ss:$8 sps:$4 sm:$0xff]   ;;  %v3093_v0 = vld [vmem:[%s3707_s26 + $0xa0] ss:$8 sps:$4 sm:$0xff]   ;;  %p3349_p13 = pnand %p3348_p2, %p3342_p7 }
  0xb4   : > { %820 = vmatpush1.bf16.msra.mxu0 %v3030_v11  ;;  %2781 = vmatprep.subr.bf16.mxu1 %v3115_v41  ;;  %v3094_v1 = vld [vmem:[%s3707_s26 + $0xb4] ss:$8 sps:$4 sm:$0xff]   ;;  %v3120_v2 = vld [vmem:[#allocation7 + $0x28] sm:$0xff]   ;;  %v3096_v3 = vld [vmem:[%s3707_s26 + $0xb0] ss:$8 sps:$4 sm:$0xff]  }
  0xb5   : > { %821 = vmatprep.subr.bf16.mxu0 %v3031_v12  ;;  %v3121_v4 = vld [vmem:[#allocation7 + $0x70] sm:$0xff]   ;;  %v3097_v5 = vld [vmem:[%s3707_s26 + $0xc4] ss:$8 sps:$4 sm:$0xff]   ;;  %v3123_v7 = vld [vmem:[#allocation7 + $0x78] sm:$0xff]  }
  0xb6   : > { %v3122_v6 = vld [vmem:[#allocation7 + $0x30] sm:$0xff]   ;;  %v3124_v8 = vld [vmem:[#allocation7 + $0x38] sm:$0xff]   ;;  %v3099_v9 = vld [vmem:[%s3707_s26 + $0xc0] ss:$8 sps:$4 sm:$0xff]  }
  0xb7   : > { %2782 = vmatpush3.bf16.msra.mxu1 %v3116_v42  ;;  %v3100_v10 = vld [vmem:[%s3707_s26 + $0xd4] ss:$8 sps:$4 sm:$0xff]   ;;  %v3102_v11 = vld [vmem:[%s3707_s26 + $0xd0] ss:$8 sps:$4 sm:$0xff]   ;;  %v3103_v12 = vld [vmem:[%s3707_s26 + $0xe4] ss:$8 sps:$4 sm:$0xff]  }
  0xb8   : > { %822 = vmatpush1.bf16.msra.mxu0 %v3033_v14  ;;  %2783 = vmatprep.subr.bf16.mxu1 %v3117_v44  ;;  %v3105_v13 = vld [vmem:[%s3707_s26 + $0xe0] ss:$8 sps:$4 sm:$0xff]   ;;  %v3106_v14 = vld [vmem:[%s3707_s26 + $0xf4] ss:$8 sps:$4 sm:$0xff]  }
  0xb9   : > { %823 = vmatprep.subr.bf16.mxu0 %v3034_v15  ;;  %v3108_v15 = vld [vmem:[%s3707_s26 + $0xf0] ss:$8 sps:$4 sm:$0xff]   ;;  %v3125_v39 = vld [vmem:[#allocation8] ss:$8 sps:$4 sm:$0xff]   ;;  %v3130_v42 = vld [vmem:[#allocation8 + $0x14] ss:$8 sps:$4 sm:$0xff]  }
  0xba   : > { %s4155_s26 = sld [smem:[#allocation18_spill]] }
  0xbb   : > { %2784 = vmatpush3.bf16.msra.mxu1 %v3118_v46 }
  0xbc   : > { %824 = vmatpush1.bf16.msra.mxu0 %v3036_v16  ;;  %2785 = vmatprep.subr.bf16.mxu1 %v3119_v47  ;;  %v3127_v16 = vld [vmem:[#allocation8 + $0x4] ss:$8 sps:$4 sm:$0xff]  }
  0xbd   : > { %825 = vmatprep.subr.bf16.mxu0 %v3037_v17  ;;  %v479_v17 = vlaneseq }
  0xbf   : > { %2786 = vmatpush3.bf16.msra.mxu1 %v3120_v2  ;;  %v3134_v2 = vld [vmem:[#allocation8 + $0x30] ss:$8 sps:$4 sm:$0xff]  }
  0xc0   : > { %826 = vmatpush1.bf16.msra.mxu0 %v3039_v18  ;;  %2787 = vmatprep.subr.bf16.mxu1 %v3121_v4  ;;  %v480_v18 = vshrl.u32 %v479_v17, 7  ;;  %s4068_s15 = scalar_lea.hbm %s4155_s26, %s2774_s28 }
  0xc1   : > { %827 = vmatprep.subr.bf16.mxu0 %v3040_v19 }
  0xc2   : > { %v3753_v19 = vsub.s32 0, %v480_v18 }
  0xc3   : > { %2788 = vmatpush3.bf16.msra.mxu1 %v3122_v6 }
  0xc4   : > { %828 = vmatpush1.bf16.msra.mxu0 %v3042_v20  ;;  %2789 = vmatprep.subr.bf16.mxu1 %v3123_v7  ;;  %v477_v20 = vld [vmem:[%s4118_s2] sm:$0x3] }
  0xc5   : > { %829 = vmatprep.subr.bf16.mxu0 %v3043_v21  ;;  %v3758_v21 = vsub.s32 1, %v480_v18 }
  0xc7   : > { %2790 = vmatpush3.bf16.msra.mxu1 %v3124_v8 }
  0xc8   : > { %830 = vmatpush1.bf16.msra.mxu0 %v3045_v22  ;;  %1518 = vmatprep.subr.bf16.mxu1 %v3127_v16  ;;  %v3761_v22 = vrot.slane %v477_v20, %v3753_v19 }
  0xc9   : > { %831 = vmatprep.subr.bf16.mxu0 %v3046_v23  ;;  %v3764_v23 = vrot.slane %v477_v20, %v3758_v21 }
  0xcc   : > { %832 = vmatpush1.bf16.msra.mxu0 %v3048_v24 }
  0xcd   : > { %833 = vmatprep.subr.bf16.mxu0 %v3049_v25 }
  0xd0   : > { %834 = vmatpush1.bf16.msra.mxu0 %v3051_v26 }
  0xd1   : > { %835 = vmatprep.subr.bf16.mxu0 %v3052_v27 }
  0xd4   : > { %836 = vmatpush1.bf16.msra.mxu0 %v3054_v28 }
  0xd5   : > { %837 = vmatprep.subr.bf16.mxu0 %v3055_v29 }
  0xd8   : > { %838 = vmatpush1.bf16.msra.mxu0 %v3057_v30 }
  0xd9   : > { %839 = vmatprep.subr.bf16.mxu0 %v3058_v31 }
  0xdc   : > { %840 = vmatpush1.bf16.msra.mxu0 %v3060_v35 }
  0xdf   : > { %842 = vmatmul.mubr.bf16.vlgmr.msra.gmra.mrb[0].mxu0 %v3061_v36 }
  0xe0   : > { %851 = vmatprep.mubr.bf16.mxu0 %v3064_v37 }
  0xe7   : > { %852 = vmatmul.mubr.bf16.gmra.mrb[4].mxu0 %v3066_v43 }
  0xe8   : > { %861 = vmatprep.mubr.bf16.mxu0 %v3067_v45 }
  0xef   : > { %862 = vmatmul.mubr.bf16.gmra.mrb[8].mxu0 %v3069_v48  ;;  %v3128_v48 = vld [vmem:[#allocation8 + $0x10] ss:$8 sps:$4 sm:$0xff]  }
  0xf0   : > { %871 = vmatprep.mubr.bf16.mxu0 %v3070_v49 }
  0xf7   : > { %872 = vmatmul.mubr.bf16.gmra.mrb[12].mxu0 %v3072_v50 }
  0xf8   : > { %881 = vmatprep.mubr.bf16.mxu0 %v3073_v51  ;;  %v3133_v51 = vld [vmem:[#allocation8 + $0x24] ss:$8 sps:$4 sm:$0xff]  }
  0xff   : > { %882 = vmatmul.mubr.bf16.gmra.mrb[16].mxu0 %v3075_v52 }
 0x100   : > { %891 = vmatprep.mubr.bf16.mxu0 %v3076_v53 }
 0x107   : > { %892 = vmatmul.mubr.bf16.gmra.mrb[20].mxu0 %v3078_v54 }
 0x108   : > { %901 = vmatprep.mubr.bf16.mxu0 %v3079_v55 }
 0x10f   : > { %902 = vmatmul.mubr.bf16.gmra.mrb[24].mxu0 %v3081_v56 }
 0x110   : > { %911 = vmatprep.mubr.bf16.mxu0 %v3082_v57  ;;  %v3131_v57 = vld [vmem:[#allocation8 + $0x20] ss:$8 sps:$4 sm:$0xff]  }
 0x117   : > { %912 = vmatmul.mubr.bf16.gmra.mrb[28].mxu0 %v3084_v58 }
 0x118   : > { %921 = vmatprep.mubr.bf16.mxu0 %v3085_v59 }
 0x11f   : > { %922 = vmatmul.mubr.bf16.gmra.mrb[32].mxu0 %v3087_v60  ;;  %v3136_v60 = vld [vmem:[#allocation8 + $0x34] ss:$8 sps:$4 sm:$0xff]  }
 0x120   : > { %931 = vmatprep.mubr.bf16.mxu0 %v3088_v61 }
 0x127   : > { %932 = vmatmul.mubr.bf16.gmra.mrb[36].mxu0 %v3090_v62 }
 0x128   : > { %941 = vmatprep.mubr.bf16.mxu0 %v3091_v63 }
 0x12f   : > { %942 = vmatmul.mubr.bf16.gmra.mrb[40].mxu0 %v3093_v0 }
 0x130   : > { %951 = vmatprep.mubr.bf16.mxu0 %v3094_v1 }
 0x137   : > { %952 = vmatmul.mubr.bf16.gmra.mrb[44].mxu0 %v3096_v3 }
 0x138   : > { %961 = vmatprep.mubr.bf16.mxu0 %v3097_v5  ;;  %v3139_v5 = vld [vmem:[#allocation8 + $0x44] ss:$8 sps:$4 sm:$0xff]  }
 0x13f   : > { %962 = vmatmul.mubr.bf16.gmra.mrb[48].mxu0 %v3099_v9 }
 0x140   : > { %971 = vmatprep.mubr.bf16.mxu0 %v3100_v10 }
 0x147   : > { %972 = vmatmul.mubr.bf16.gmra.mrb[52].mxu0 %v3102_v11  ;;  %v3137_v11 = vld [vmem:[#allocation8 + $0x40] ss:$8 sps:$4 sm:$0xff]  }
 0x148   : > { %981 = vmatprep.mubr.bf16.mxu0 %v3103_v12 }
 0x14f   : > { %982 = vmatmul.mubr.bf16.gmra.mrb[56].mxu0 %v3105_v13 }
 0x150   : > { %991 = vmatprep.mubr.bf16.mxu0 %v3106_v14  ;;  %v3142_v14 = vld [vmem:[#allocation8 + $0x54] ss:$8 sps:$4 sm:$0xff]  }
 0x157   : > { %992 = vmatmul.mubr.bf16.gmra.mrb[60].mxu0 %v3108_v15 }
 0x1b2   : > { %v843_v24 = vpop.f32.mrb[0].mxu0 }
 0x1b3   : > { %v844_v25 = vadd.f32 %v843_v24, %v3761_v22  ;;  %v845_v26 = vpop.f32.mrb[1].mxu0  ;;  %v3140_v24 = vld [vmem:[#allocation8 + $0x50] ss:$8 sps:$4 sm:$0xff]  }
 0x1b4   : > { %v846_v27 = vadd.f32 %v845_v26, %v3764_v23  ;;  %v847_v28 = vpop.f32.mrb[2].mxu0 }
 0x1b5   : > { %v848_v29 = vadd.f32 %v847_v28, %v3761_v22  ;;  %v849_v30 = vpop.f32.mrb[3].mxu0  ;;  %v1002_v32 = vmax.f32 %v844_v25, 0.0 }
 0x1b6   : > { %v850_v31 = vadd.f32 %v849_v30, %v3764_v23  ;;  %v1003_v34 = vmax.f32 %v846_v27, 0.0  ;;  %v3145_v27 = vld [vmem:[#allocation8 + $0x64] ss:$8 sps:$4 sm:$0xff]  }
 0x1b7   : > { %v1004_v33 = vmax.f32 %v848_v29, 0.0 }
 0x1b8   : > { %v1005_v35 = vmax.f32 %v850_v31, 0.0 }
 0x1b9   : > { %v1066_v36 = vpack.c.bf16 %v1004_v33, %v1002_v32  ;;  %v3143_v33 = vld [vmem:[#allocation8 + $0x60] ss:$8 sps:$4 sm:$0xff]  }
 0x1ba   : > { %v853_v37 = vpop.f32.mrb[4].mxu0  ;;  %v1067_v38 = vpack.c.bf16 %v1005_v35, %v1003_v34 }
 0x1bb   : > { %v854_v40 = vadd.f32 %v853_v37, %v3761_v22  ;;  %v855_v41 = vpop.f32.mrb[5].mxu0 }
 0x1bc   : > { %v856_v43 = vadd.f32 %v855_v41, %v3764_v23  ;;  %v857_v44 = vpop.f32.mrb[6].mxu0  ;;  %1265 = vmatprep.mubr.bf16.mxu1 %v1067_v38 }
 0x1bd   : > { %v858_v45 = vadd.f32 %v857_v44, %v3761_v22  ;;  %v859_v46 = vpop.f32.mrb[7].mxu0  ;;  %1266 = vmatmul.mubr.bf16.vlgmr.msra.gmra.mrb[0].mxu1 %v1066_v36  ;;  %v1006_v49 = vmax.f32 %v854_v40, 0.0  ;;  %v3148_v36 = vld [vmem:[#allocation8 + $0x74] ss:$8 sps:$4 sm:$0xff]  }
 0x1be   : > { %v860_v47 = vadd.f32 %v859_v46, %v3764_v23  ;;  %1519 = vmatpush1.bf16.msra.mxu1 %v3125_v39  ;;  %v1007_v52 = vmax.f32 %v856_v43, 0.0 }
 0x1bf   : > { %v1008_v50 = vmax.f32 %v858_v45, 0.0  ;;  %1520 = vmatprep.subr.bf16.mxu1 %v3130_v42  ;;  %v3146_v42 = vld [vmem:[#allocation8 + $0x70] ss:$8 sps:$4 sm:$0xff]  }
 0x1c0   : > { %v1009_v53 = vmax.f32 %v860_v47, 0.0 }
 0x1c1   : > { %v1068_v54 = vpack.c.bf16 %v1008_v50, %v1006_v49 }
 0x1c2   : > { %v1069_v55 = vpack.c.bf16 %v1009_v53, %v1007_v52  ;;  %v863_v56 = vpop.f32.mrb[8].mxu0  ;;  %1521 = vmatpush1.bf16.msra.mxu1 %v3128_v48 }
 0x1c3   : > { %v864_v58 = vadd.f32 %v863_v56, %v3761_v22  ;;  %v865_v59 = vpop.f32.mrb[9].mxu0  ;;  %1522 = vmatprep.subr.bf16.mxu1 %v3133_v51 }
 0x1c4   : > { %v866_v61 = vadd.f32 %v865_v59, %v3764_v23  ;;  %v867_v62 = vpop.f32.mrb[10].mxu0  ;;  %1273 = vmatprep.mubr.bf16.mxu1 %v1069_v55 }
 0x1c5   : > { %v868_v63 = vadd.f32 %v867_v62, %v3761_v22  ;;  %v869_v0 = vpop.f32.mrb[11].mxu0  ;;  %1274 = vmatmul.mubr.bf16.gmra.mrb[4].mxu1 %v1068_v54  ;;  %v1010_v3 = vmax.f32 %v864_v58, 0.0 }
 0x1c6   : > { %v870_v1 = vadd.f32 %v869_v0, %v3764_v23  ;;  %1523 = vmatpush1.bf16.msra.mxu1 %v3131_v57  ;;  %v1011_v6 = vmax.f32 %v866_v61, 0.0 }
 0x1c7   : > { %v1012_v4 = vmax.f32 %v868_v63, 0.0  ;;  %1524 = vmatprep.subr.bf16.mxu1 %v3136_v60 }
 0x1c8   : > { %v1013_v7 = vmax.f32 %v870_v1, 0.0 }
 0x1c9   : > { %v1070_v8 = vpack.c.bf16 %v1012_v4, %v1010_v3 }
 0x1ca   : > { %v1071_v9 = vpack.c.bf16 %v1013_v7, %v1011_v6  ;;  %v873_v10 = vpop.f32.mrb[12].mxu0  ;;  %1525 = vmatpush1.bf16.msra.mxu1 %v3134_v2 }
 0x1cb   : > { %v874_v12 = vadd.f32 %v873_v10, %v3761_v22  ;;  %v875_v13 = vpop.f32.mrb[13].mxu0  ;;  %1526 = vmatprep.subr.bf16.mxu1 %v3139_v5 }
 0x1cc   : > { %v876_v15 = vadd.f32 %v875_v13, %v3764_v23  ;;  %v877_v16 = vpop.f32.mrb[14].mxu0  ;;  %1281 = vmatprep.mubr.bf16.mxu1 %v1071_v9 }
 0x1cd   : > { %v878_v17 = vadd.f32 %v877_v16, %v3761_v22  ;;  %v879_v18 = vpop.f32.mrb[15].mxu0  ;;  %1282 = vmatmul.mubr.bf16.gmra.mrb[8].mxu1 %v1070_v8  ;;  %v1014_v25 = vmax.f32 %v874_v12, 0.0 }
 0x1ce   : > { %v880_v20 = vadd.f32 %v879_v18, %v3764_v23  ;;  %1527 = vmatpush1.bf16.msra.mxu1 %v3137_v11  ;;  %v1015_v28 = vmax.f32 %v876_v15, 0.0 }
 0x1cf   : > { %v1016_v26 = vmax.f32 %v878_v17, 0.0  ;;  %1528 = vmatprep.subr.bf16.mxu1 %v3142_v14 }
 0x1d0   : > { %v1017_v29 = vmax.f32 %v880_v20, 0.0 }
 0x1d1   : > { %v1072_v30 = vpack.c.bf16 %v1016_v26, %v1014_v25 }
 0x1d2   : > { %v1073_v31 = vpack.c.bf16 %v1017_v29, %v1015_v28  ;;  %v883_v32 = vpop.f32.mrb[16].mxu0  ;;  %1529 = vmatpush1.bf16.msra.mxu1 %v3140_v24 }
 0x1d3   : > { %v884_v34 = vadd.f32 %v883_v32, %v3761_v22  ;;  %v885_v35 = vpop.f32.mrb[17].mxu0  ;;  %1530 = vmatprep.subr.bf16.mxu1 %v3145_v27 }
 0x1d4   : > { %v886_v37 = vadd.f32 %v885_v35, %v3764_v23  ;;  %v887_v38 = vpop.f32.mrb[18].mxu0  ;;  %1289 = vmatprep.mubr.bf16.mxu1 %v1073_v31 }
 0x1d5   : > { %v888_v39 = vadd.f32 %v887_v38, %v3761_v22  ;;  %v889_v40 = vpop.f32.mrb[19].mxu0  ;;  %1290 = vmatmul.mubr.bf16.gmra.mrb[12].mxu1 %v1072_v30  ;;  %v1018_v43 = vmax.f32 %v884_v34, 0.0 }
 0x1d6   : > { %v890_v41 = vadd.f32 %v889_v40, %v3764_v23  ;;  %1531 = vmatpush1.bf16.msra.mxu1 %v3143_v33  ;;  %v1019_v45 = vmax.f32 %v886_v37, 0.0 }
 0x1d7   : > { %v1020_v44 = vmax.f32 %v888_v39, 0.0  ;;  %1532 = vmatprep.subr.bf16.mxu1 %v3148_v36 }
 0x1d8   : > { %v1021_v46 = vmax.f32 %v890_v41, 0.0 }
 0x1d9   : > { %v1074_v47 = vpack.c.bf16 %v1020_v44, %v1018_v43 }
 0x1da   : > { %v1075_v48 = vpack.c.bf16 %v1021_v46, %v1019_v45  ;;  %v893_v49 = vpop.f32.mrb[20].mxu0  ;;  %1533 = vmatpush1.bf16.msra.mxu1 %v3146_v42 }
 0x1db   : > { %v894_v50 = vadd.f32 %v893_v49, %v3761_v22  ;;  %v895_v51 = vpop.f32.mrb[21].mxu0 }
 0x1dc   : > { %v896_v52 = vadd.f32 %v895_v51, %v3764_v23  ;;  %v897_v53 = vpop.f32.mrb[22].mxu0  ;;  %1297 = vmatprep.mubr.bf16.mxu1 %v1075_v48 }
 0x1dd   : > { %v898_v54 = vadd.f32 %v897_v53, %v3761_v22  ;;  %v899_v55 = vpop.f32.mrb[23].mxu0  ;;  %1298 = vmatmul.mubr.bf16.gmra.mrb[16].mxu1 %v1074_v47  ;;  %v1022_v57 = vmax.f32 %v894_v50, 0.0 }
 0x1de   : > { %v900_v56 = vadd.f32 %v899_v55, %v3764_v23  ;;  %v1023_v59 = vmax.f32 %v896_v52, 0.0 }
 0x1df   : > { %v1024_v58 = vmax.f32 %v898_v54, 0.0 }
 0x1e0   : > { %v1025_v60 = vmax.f32 %v900_v56, 0.0 }
 0x1e1   : > { %v1076_v61 = vpack.c.bf16 %v1024_v58, %v1022_v57 }
 0x1e2   : > { %v1077_v62 = vpack.c.bf16 %v1025_v60, %v1023_v59  ;;  %v903_v63 = vpop.f32.mrb[24].mxu0 }
 0x1e3   : > { %v904_v0 = vadd.f32 %v903_v63, %v3761_v22  ;;  %v905_v1 = vpop.f32.mrb[25].mxu0 }
 0x1e4   : > { %v906_v2 = vadd.f32 %v905_v1, %v3764_v23  ;;  %v907_v3 = vpop.f32.mrb[26].mxu0  ;;  %1305 = vmatprep.mubr.bf16.mxu1 %v1077_v62 }
 0x1e5   : > { %v908_v4 = vadd.f32 %v907_v3, %v3761_v22  ;;  %v909_v5 = vpop.f32.mrb[27].mxu0  ;;  %1306 = vmatmul.mubr.bf16.gmra.mrb[20].mxu1 %v1076_v61  ;;  %v1026_v7 = vmax.f32 %v904_v0, 0.0 }
 0x1e6   : > { %v910_v6 = vadd.f32 %v909_v5, %v3764_v23  ;;  %v1027_v9 = vmax.f32 %v906_v2, 0.0 }
 0x1e7   : > { %v1028_v8 = vmax.f32 %v908_v4, 0.0 }
 0x1e8   : > { %v1029_v10 = vmax.f32 %v910_v6, 0.0 }
 0x1e9   : > { %v1078_v11 = vpack.c.bf16 %v1028_v8, %v1026_v7 }
 0x1ea   : > { %v1079_v12 = vpack.c.bf16 %v1029_v10, %v1027_v9  ;;  %v913_v13 = vpop.f32.mrb[28].mxu0 }
 0x1eb   : > { %v914_v14 = vadd.f32 %v913_v13, %v3761_v22  ;;  %v915_v15 = vpop.f32.mrb[29].mxu0 }
 0x1ec   : > { %v916_v16 = vadd.f32 %v915_v15, %v3764_v23  ;;  %v917_v17 = vpop.f32.mrb[30].mxu0  ;;  %1313 = vmatprep.mubr.bf16.mxu1 %v1079_v12 }
 0x1ed   : > { %v918_v18 = vadd.f32 %v917_v17, %v3761_v22  ;;  %v919_v20 = vpop.f32.mrb[31].mxu0  ;;  %1314 = vmatmul.mubr.bf16.gmra.mrb[24].mxu1 %v1078_v11  ;;  %v1030_v25 = vmax.f32 %v914_v14, 0.0 }
 0x1ee   : > { %v920_v24 = vadd.f32 %v919_v20, %v3764_v23  ;;  %v1031_v27 = vmax.f32 %v916_v16, 0.0 }
 0x1ef   : > { %v1032_v26 = vmax.f32 %v918_v18, 0.0 }
 0x1f0   : > { %v1033_v28 = vmax.f32 %v920_v24, 0.0 }
 0x1f1   : > { %v1080_v29 = vpack.c.bf16 %v1032_v26, %v1030_v25 }
 0x1f2   : > { %v1081_v30 = vpack.c.bf16 %v1033_v28, %v1031_v27  ;;  %v923_v31 = vpop.f32.mrb[32].mxu0 }
 0x1f3   : > { %v924_v32 = vadd.f32 %v923_v31, %v3761_v22  ;;  %v925_v33 = vpop.f32.mrb[33].mxu0 }
 0x1f4   : > { %v926_v34 = vadd.f32 %v925_v33, %v3764_v23  ;;  %v927_v35 = vpop.f32.mrb[34].mxu0  ;;  %1321 = vmatprep.mubr.bf16.mxu1 %v1081_v30 }
 0x1f5   : > { %v928_v36 = vadd.f32 %v927_v35, %v3761_v22  ;;  %v929_v37 = vpop.f32.mrb[35].mxu0  ;;  %1322 = vmatmul.mubr.bf16.gmra.mrb[28].mxu1 %v1080_v29  ;;  %v1034_v39 = vmax.f32 %v924_v32, 0.0 }
 0x1f6   : > { %v930_v38 = vadd.f32 %v929_v37, %v3764_v23  ;;  %v1035_v41 = vmax.f32 %v926_v34, 0.0 }
 0x1f7   : > { %v1036_v40 = vmax.f32 %v928_v36, 0.0 }
 0x1f8   : > { %v1037_v42 = vmax.f32 %v930_v38, 0.0 }
 0x1f9   : > { %v1082_v43 = vpack.c.bf16 %v1036_v40, %v1034_v39 }
 0x1fa   : > { %v1083_v44 = vpack.c.bf16 %v1037_v42, %v1035_v41  ;;  %v933_v45 = vpop.f32.mrb[36].mxu0 }
 0x1fb   : > { %v934_v46 = vadd.f32 %v933_v45, %v3761_v22  ;;  %v935_v47 = vpop.f32.mrb[37].mxu0 }
 0x1fc   : > { %v936_v48 = vadd.f32 %v935_v47, %v3764_v23  ;;  %v937_v49 = vpop.f32.mrb[38].mxu0  ;;  %1329 = vmatprep.mubr.bf16.mxu1 %v1083_v44 }
 0x1fd   : > { %v938_v50 = vadd.f32 %v937_v49, %v3761_v22  ;;  %v939_v51 = vpop.f32.mrb[39].mxu0  ;;  %1330 = vmatmul.mubr.bf16.gmra.mrb[32].mxu1 %v1082_v43  ;;  %v1038_v53 = vmax.f32 %v934_v46, 0.0 }
 0x1fe   : > { %v940_v52 = vadd.f32 %v939_v51, %v3764_v23  ;;  %v1039_v55 = vmax.f32 %v936_v48, 0.0 }
 0x1ff   : > { %v1040_v54 = vmax.f32 %v938_v50, 0.0 }
 0x200   : > { %v1041_v56 = vmax.f32 %v940_v52, 0.0 }
 0x201   : > { %v1084_v57 = vpack.c.bf16 %v1040_v54, %v1038_v53 }
 0x202   : > { %v1085_v58 = vpack.c.bf16 %v1041_v56, %v1039_v55  ;;  %v943_v59 = vpop.f32.mrb[40].mxu0 }
 0x203   : > { %v944_v60 = vadd.f32 %v943_v59, %v3761_v22  ;;  %v945_v61 = vpop.f32.mrb[41].mxu0 }
 0x204   : > { %v946_v62 = vadd.f32 %v945_v61, %v3764_v23  ;;  %v947_v63 = vpop.f32.mrb[42].mxu0  ;;  %1337 = vmatprep.mubr.bf16.mxu1 %v1085_v58 }
 0x205   : > { %v948_v0 = vadd.f32 %v947_v63, %v3761_v22  ;;  %v949_v1 = vpop.f32.mrb[43].mxu0  ;;  %1338 = vmatmul.mubr.bf16.gmra.mrb[36].mxu1 %v1084_v57  ;;  %v1042_v3 = vmax.f32 %v944_v60, 0.0 }
 0x206   : > { %v950_v2 = vadd.f32 %v949_v1, %v3764_v23  ;;  %v1043_v5 = vmax.f32 %v946_v62, 0.0 }
 0x207   : > { %v1044_v4 = vmax.f32 %v948_v0, 0.0 }
 0x208   : > { %v1045_v6 = vmax.f32 %v950_v2, 0.0 }
 0x209   : > { %v1086_v7 = vpack.c.bf16 %v1044_v4, %v1042_v3 }
 0x20a   : > { %v1087_v8 = vpack.c.bf16 %v1045_v6, %v1043_v5  ;;  %v953_v9 = vpop.f32.mrb[44].mxu0 }
 0x20b   : > { %v954_v10 = vadd.f32 %v953_v9, %v3761_v22  ;;  %v955_v11 = vpop.f32.mrb[45].mxu0 }
 0x20c   : > { %v956_v12 = vadd.f32 %v955_v11, %v3764_v23  ;;  %v957_v13 = vpop.f32.mrb[46].mxu0  ;;  %1345 = vmatprep.mubr.bf16.mxu1 %v1087_v8 }
 0x20d   : > { %v958_v14 = vadd.f32 %v957_v13, %v3761_v22  ;;  %v959_v15 = vpop.f32.mrb[47].mxu0  ;;  %1346 = vmatmul.mubr.bf16.gmra.mrb[40].mxu1 %v1086_v7  ;;  %v1046_v17 = vmax.f32 %v954_v10, 0.0 }
 0x20e   : > { %v960_v16 = vadd.f32 %v959_v15, %v3764_v23  ;;  %v1047_v20 = vmax.f32 %v956_v12, 0.0 }
 0x20f   : > { %v1048_v18 = vmax.f32 %v958_v14, 0.0 }
 0x210   : > { %v1049_v24 = vmax.f32 %v960_v16, 0.0 }
 0x211   : > { %v1088_v25 = vpack.c.bf16 %v1048_v18, %v1046_v17 }
 0x212   : > { %v1089_v26 = vpack.c.bf16 %v1049_v24, %v1047_v20  ;;  %v963_v27 = vpop.f32.mrb[48].mxu0  ;;  %v3424_v20 = vmov 0   ;;  %v3149_v24 = vld [vmem:[#allocation10] ss:$8 sps:$4 sm:$0xff]  }
 0x213   : > { %v964_v28 = vadd.f32 %v963_v27, %v3761_v22  ;;  %v965_v29 = vpop.f32.mrb[49].mxu0 }
 0x214   : > { %v966_v30 = vadd.f32 %v965_v29, %v3764_v23  ;;  %v967_v31 = vpop.f32.mrb[50].mxu0  ;;  %1353 = vmatprep.mubr.bf16.mxu1 %v1089_v26  ;;  %v3154_v26 = vld [vmem:[#allocation10 + $0x14] ss:$8 sps:$4 sm:$0xff]  }
 0x215   : > { %v968_v32 = vadd.f32 %v967_v31, %v3761_v22  ;;  %v969_v33 = vpop.f32.mrb[51].mxu0  ;;  %1354 = vmatmul.mubr.bf16.gmra.mrb[44].mxu1 %v1088_v25  ;;  %v1050_v35 = vmax.f32 %v964_v28, 0.0  ;;  %v3151_v25 = vld [vmem:[#allocation10 + $0x4] ss:$8 sps:$4 sm:$0xff]  }
 0x216   : > { %v970_v34 = vadd.f32 %v969_v33, %v3764_v23  ;;  %v1051_v37 = vmax.f32 %v966_v30, 0.0  ;;  %2011 = vmatprep.subr.bf16.mxu0 %v3151_v25  ;;  %2887 = vmatprep.subr.bf16.mxu1 %v3151_v25  ;;  %v3155_v30 = vld [vmem:[#allocation10 + $0x20] ss:$8 sps:$4 sm:$0xff]   ;;  %v3157_v31 = vld [vmem:[#allocation10 + $0x24] ss:$8 sps:$4 sm:$0xff]  }
 0x217   : > { %v1052_v36 = vmax.f32 %v968_v32, 0.0  ;;  %2012 = vmatpush1.bf16.msra.mxu0 %v3149_v24  ;;  %v3834_v32 = vld [vmem:[%s4120_s4] ss:$0 sm:$0xff] }
 0x218   : > { %v1053_v38 = vmax.f32 %v970_v34, 0.0  ;;  %2013 = vmatprep.subr.bf16.mxu0 %v3154_v26  ;;  %v3160_v34 = vld [vmem:[#allocation10 + $0x34] ss:$8 sps:$4 sm:$0xff]  }
 0x219   : > { %v1090_v39 = vpack.c.bf16 %v1052_v36, %v1050_v35  ;;  %v3158_v36 = vld [vmem:[#allocation10 + $0x30] ss:$8 sps:$4 sm:$0xff]  }
 0x21a   : > { %v1091_v40 = vpack.c.bf16 %v1053_v38, %v1051_v37  ;;  %v973_v41 = vpop.f32.mrb[52].mxu0 }
 0x21b   : > { %v974_v42 = vadd.f32 %v973_v41, %v3761_v22  ;;  %v975_v43 = vpop.f32.mrb[53].mxu0 }
 0x21c   : > { %v976_v44 = vadd.f32 %v975_v43, %v3764_v23  ;;  %v977_v45 = vpop.f32.mrb[54].mxu0  ;;  %1361 = vmatprep.mubr.bf16.mxu1 %v1091_v40  ;;  %v3161_v43 = vld [vmem:[#allocation10 + $0x40] ss:$8 sps:$4 sm:$0xff]  }
 0x21d   : > { %v978_v46 = vadd.f32 %v977_v45, %v3761_v22  ;;  %v979_v47 = vpop.f32.mrb[55].mxu0  ;;  %1362 = vmatmul.mubr.bf16.gmra.mrb[48].mxu1 %v1090_v39  ;;  %v1054_v49 = vmax.f32 %v974_v42, 0.0  ;;  %v3163_v39 = vld [vmem:[#allocation10 + $0x44] ss:$8 sps:$4 sm:$0xff]  }
 0x21e   : > { %v980_v48 = vadd.f32 %v979_v47, %v3764_v23  ;;  %v1055_v51 = vmax.f32 %v976_v44, 0.0 }
 0x21f   : > { %v1056_v50 = vmax.f32 %v978_v46, 0.0  ;;  %v3166_v46 = vld [vmem:[#allocation10 + $0x54] ss:$8 sps:$4 sm:$0xff]  }
 0x220   : > { %v1057_v52 = vmax.f32 %v980_v48, 0.0 }
 0x221   : > { %v1092_v53 = vpack.c.bf16 %v1056_v50, %v1054_v49  ;;  %v3164_v49 = vld [vmem:[#allocation10 + $0x50] ss:$8 sps:$4 sm:$0xff]  }
 0x222   : > { %v1093_v54 = vpack.c.bf16 %v1057_v52, %v1055_v51  ;;  %v983_v55 = vpop.f32.mrb[56].mxu0  ;;  %v3169_v52 = vld [vmem:[#allocation10 + $0x64] ss:$8 sps:$4 sm:$0xff]  }
 0x223   : > { %v984_v56 = vadd.f32 %v983_v55, %v3761_v22  ;;  %v985_v57 = vpop.f32.mrb[57].mxu0 }
 0x224   : > { %v986_v58 = vadd.f32 %v985_v57, %v3764_v23  ;;  %v987_v59 = vpop.f32.mrb[58].mxu0  ;;  %1369 = vmatprep.mubr.bf16.mxu1 %v1093_v54 }
 0x225   : > { %v988_v60 = vadd.f32 %v987_v59, %v3761_v22  ;;  %v989_v61 = vpop.f32.mrb[59].mxu0  ;;  %1370 = vmatmul.mubr.bf16.gmra.mrb[52].mxu1 %v1092_v53  ;;  %v1058_v63 = vmax.f32 %v984_v56, 0.0  ;;  %v3167_v56 = vld [vmem:[#allocation10 + $0x60] ss:$8 sps:$4 sm:$0xff]   ;;  %v3172_v59 = vld [vmem:[#allocation10 + $0x74] ss:$8 sps:$4 sm:$0xff]  }
 0x226   : > { %v990_v62 = vadd.f32 %v989_v61, %v3764_v23  ;;  %v1059_v1 = vmax.f32 %v986_v58, 0.0 }
 0x227   : > { %v1060_v0 = vmax.f32 %v988_v60, 0.0 }
 0x228   : > { %v1061_v2 = vmax.f32 %v990_v62, 0.0  ;;  %v3170_v62 = vld [vmem:[#allocation10 + $0x70] ss:$8 sps:$4 sm:$0xff]  }
 0x229   : > { %v1094_v3 = vpack.c.bf16 %v1060_v0, %v1058_v63 }
 0x22a   : > { %v1095_v4 = vpack.c.bf16 %v1061_v2, %v1059_v1  ;;  %v993_v5 = vpop.f32.mrb[60].mxu0  ;;  %v3175_v1 = vld [vmem:[#allocation10 + $0x84] ss:$8 sps:$4 sm:$0xff]  }
 0x22b   : > { %v994_v6 = vadd.f32 %v993_v5, %v3761_v22  ;;  %v995_v7 = vpop.f32.mrb[61].mxu0  ;;  %v3173_v5 = vld [vmem:[#allocation10 + $0x80] ss:$8 sps:$4 sm:$0xff]  }
 0x22c   : > { %v996_v8 = vadd.f32 %v995_v7, %v3764_v23  ;;  %v997_v9 = vpop.f32.mrb[62].mxu0  ;;  %1377 = vmatprep.mubr.bf16.mxu1 %v1095_v4 }
 0x22d   : > { %v998_v10 = vadd.f32 %v997_v9, %v3761_v22  ;;  %v999_v11 = vpop.f32.mrb[63].mxu0  ;;  %1378 = vmatmul.mubr.bf16.gmra.mrb[56].mxu1 %v1094_v3  ;;  %v1062_v13 = vmax.f32 %v994_v6, 0.0  ;;  %v3152_v22 = vld [vmem:[#allocation10 + $0x10] ss:$8 sps:$4 sm:$0xff]  }
 0x22e   : > { %v1000_v12 = vadd.f32 %v999_v11, %v3764_v23  ;;  %v1063_v15 = vmax.f32 %v996_v8, 0.0  ;;  %2014 = vmatpush1.bf16.msra.mxu0 %v3152_v22  ;;  %v3178_v8 = vld [vmem:[#allocation10 + $0x94] ss:$8 sps:$4 sm:$0xff]   ;;  %v3176_v11 = vld [vmem:[#allocation10 + $0x90] ss:$8 sps:$4 sm:$0xff]  }
 0x22f   : > { %v1064_v14 = vmax.f32 %v998_v10, 0.0  ;;  %2015 = vmatprep.subr.bf16.mxu0 %v3157_v31 }
 0x230   : > { %v1065_v16 = vmax.f32 %v1000_v12, 0.0 }
 0x231   : > { %v1096_v17 = vpack.c.bf16 %v1064_v14, %v1062_v13  ;;  %v3181_v14 = vld [vmem:[#allocation10 + $0xa4] ss:$8 sps:$4 sm:$0xff]  }
 0x232   : > { %v1097_v18 = vpack.c.bf16 %v1065_v16, %v1063_v15  ;;  %2016 = vmatpush1.bf16.msra.mxu0 %v3155_v30 }
 0x233   : > { %2017 = vmatprep.subr.bf16.mxu0 %v3160_v34 }
 0x234   : > { %1385 = vmatprep.mubr.bf16.mxu1 %v1097_v18  ;;  %v3179_v18 = vld [vmem:[#allocation10 + $0xa0] ss:$8 sps:$4 sm:$0xff]  }
 0x235   : > { %1386 = vmatmul.mubr.bf16.gmra.mrb[60].mxu1 %v1096_v17 }
 0x236   : > { %1550 = vmatprep.mubr.bf16.mxu1 %v3424_v20  ;;  %2018 = vmatpush1.bf16.msra.mxu0 %v3158_v36 }
 0x237   : > { %2019 = vmatprep.subr.bf16.mxu0 %v3163_v39 }
 0x23a   : > { %2020 = vmatpush1.bf16.msra.mxu0 %v3161_v43 }
 0x23b   : > { %2021 = vmatprep.subr.bf16.mxu0 %v3166_v46 }
 0x23e   : > { %2022 = vmatpush1.bf16.msra.mxu0 %v3164_v49 }
 0x23f   : > { %2023 = vmatprep.subr.bf16.mxu0 %v3169_v52 }
 0x242   : > { %2024 = vmatpush1.bf16.msra.mxu0 %v3167_v56 }
 0x243   : > { %2025 = vmatprep.subr.bf16.mxu0 %v3172_v59 }
 0x246   : > { %2026 = vmatpush1.bf16.msra.mxu0 %v3170_v62 }
 0x247   : > { %2027 = vmatprep.subr.bf16.mxu0 %v3175_v1 }
 0x24a   : > { %2028 = vmatpush1.bf16.msra.mxu0 %v3173_v5 }
 0x24b   : > { %2029 = vmatprep.subr.bf16.mxu0 %v3178_v8 }
 0x24e   : > { %2030 = vmatpush1.bf16.msra.mxu0 %v3176_v11 }
 0x24f   : > { %2031 = vmatprep.subr.bf16.mxu0 %v3181_v14 }
 0x252   : > { %2032 = vmatpush1.bf16.msra.mxu0 %v3179_v18 }
 0x290   : > { %v2791_v27 = vpop.f32.mrb[0].mxu1 }
 0x291   : > { %v2792_v23 = vpop.f32.mrb[1].mxu1 }
 0x292   : > { %v2793_v28 = vadd.f32 %v2792_v23, %v2791_v27  ;;  %v2794_v29 = vpop.f32.mrb[2].mxu1  ;;  %v3182_v23 = vld [vmem:[#allocation10 + $0xb0] ss:$8 sps:$4 sm:$0xff]  }
 0x293   : > { %v2795_v33 = vpop.f32.mrb[3].mxu1 }
 0x294   : > { %v2796_v35 = vadd.f32 %v2795_v33, %v2794_v29  ;;  %v1268_v37 = vadd.f32 %v2793_v28, %v3834_v32 }
 0x296   : > { %v1271_v38 = vadd.f32 %v2796_v35, %v3834_v32  ;;  %v3185_v35 = vld [vmem:[#allocation10 + $0xc0] ss:$8 sps:$4 sm:$0xff]  }
 0x298   : > { %v1394_v40 = vpack.c.bf16 %v1271_v38, %v1268_v37  ;;  %v2797_v41 = vpop.f32.mrb[4].mxu1  ;;  %v3190_v38 = vld [vmem:[#allocation10 + $0xd4] ss:$8 sps:$4 sm:$0xff]  }
 0x299   : > { %v2798_v42 = vpop.f32.mrb[5].mxu1 }
 0x29a   : > { %v2799_v44 = vadd.f32 %v2798_v42, %v2797_v41  ;;  %v2800_v45 = vpop.f32.mrb[6].mxu1  ;;  %1551 = vmatmul.mubr.bf16.vlgmr.msra.gmra.mrb[64].mxu1 %v1394_v40  ;;  %v3188_v41 = vld [vmem:[#allocation10 + $0xd0] ss:$8 sps:$4 sm:$0xff]  }
 0x29b   : > { %v2801_v47 = vpop.f32.mrb[7].mxu1  ;;  %1560 = vmatprep.mubr.bf16.mxu1 %v3424_v20  ;;  %2903 = vmatpush1.bf16.msra.mxu1 %v3149_v24 }
 0x29c   : > { %v2802_v48 = vadd.f32 %v2801_v47, %v2800_v45  ;;  %2888 = vmatprep.subr.bf16.mxu1 %v3154_v26  ;;  %v1276_v50 = vadd.f32 %v2799_v44, %v3834_v32 }
 0x29e   : > { %v1279_v51 = vadd.f32 %v2802_v48, %v3834_v32 }
 0x29f   : > { %2904 = vmatpush1.bf16.msra.mxu1 %v3152_v22  ;;  %v3184_v22 = vld [vmem:[#allocation10 + $0xb4] ss:$8 sps:$4 sm:$0xff]  }
 0x2a0   : > { %v2803_v53 = vpop.f32.mrb[8].mxu1  ;;  %v1395_v54 = vpack.c.bf16 %v1279_v51, %v1276_v50  ;;  %2889 = vmatprep.subr.bf16.mxu1 %v3157_v31  ;;  %2033 = vmatprep.subr.bf16.mxu0 %v3184_v22 }
 0x2a1   : > { %v2804_v55 = vpop.f32.mrb[9].mxu1  ;;  %2034 = vmatpush1.bf16.msra.mxu0 %v3182_v23 }
 0x2a2   : > { %v2805_v57 = vadd.f32 %v2804_v55, %v2803_v53  ;;  %v2806_v58 = vpop.f32.mrb[10].mxu1  ;;  %1561 = vmatmul.mubr.bf16.gmra.mrb[68].mxu1 %v1395_v54 }
 0x2a3   : > { %v2807_v60 = vpop.f32.mrb[11].mxu1  ;;  %1570 = vmatprep.mubr.bf16.mxu1 %v3424_v20  ;;  %2905 = vmatpush1.bf16.msra.mxu1 %v3155_v30  ;;  %v3187_v30 = vld [vmem:[#allocation10 + $0xc4] ss:$8 sps:$4 sm:$0xff]  }
 0x2a4   : > { %v2808_v61 = vadd.f32 %v2807_v60, %v2806_v58  ;;  %2890 = vmatprep.subr.bf16.mxu1 %v3160_v34  ;;  %v1284_v63 = vadd.f32 %v2805_v57, %v3834_v32  ;;  %2035 = vmatprep.subr.bf16.mxu0 %v3187_v30 }
 0x2a5   : > { %2036 = vmatpush1.bf16.msra.mxu0 %v3185_v35 }
 0x2a6   : > { %v1287_v0 = vadd.f32 %v2808_v61, %v3834_v32  ;;  %2037 = vmatprep.subr.bf16.mxu0 %v3190_v38 }
 0x2a7   : > { %2906 = vmatpush1.bf16.msra.mxu1 %v3158_v36 }
 0x2a8   : > { %v2809_v2 = vpop.f32.mrb[12].mxu1  ;;  %v1396_v3 = vpack.c.bf16 %v1287_v0, %v1284_v63  ;;  %2891 = vmatprep.subr.bf16.mxu1 %v3163_v39 }
 0x2a9   : > { %v2810_v4 = vpop.f32.mrb[13].mxu1  ;;  %2038 = vmatpush1.bf16.msra.mxu0 %v3188_v41 }
 0x2aa   : > { %v2811_v6 = vadd.f32 %v2810_v4, %v2809_v2  ;;  %v2812_v7 = vpop.f32.mrb[14].mxu1  ;;  %1571 = vmatmul.mubr.bf16.gmra.mrb[72].mxu1 %v1396_v3 }
 0x2ab   : > { %v2813_v9 = vpop.f32.mrb[15].mxu1  ;;  %1580 = vmatprep.mubr.bf16.mxu1 %v3424_v20  ;;  %2907 = vmatpush1.bf16.msra.mxu1 %v3161_v43 }
 0x2ac   : > { %v2814_v10 = vadd.f32 %v2813_v9, %v2812_v7  ;;  %2892 = vmatprep.subr.bf16.mxu1 %v3166_v46  ;;  %v1292_v12 = vadd.f32 %v2811_v6, %v3834_v32 }
 0x2ae   : > { %v1295_v13 = vadd.f32 %v2814_v10, %v3834_v32 }
 0x2af   : > { %2908 = vmatpush1.bf16.msra.mxu1 %v3164_v49 }
 0x2b0   : > { %v2815_v15 = vpop.f32.mrb[16].mxu1  ;;  %v1397_v16 = vpack.c.bf16 %v1295_v13, %v1292_v12  ;;  %2893 = vmatprep.subr.bf16.mxu1 %v3169_v52 }
 0x2b1   : > { %v2816_v17 = vpop.f32.mrb[17].mxu1 }
 0x2b2   : > { %v2817_v24 = vadd.f32 %v2816_v17, %v2815_v15  ;;  %v2818_v25 = vpop.f32.mrb[18].mxu1  ;;  %1581 = vmatmul.mubr.bf16.gmra.mrb[76].mxu1 %v1397_v16 }
 0x2b3   : > { %v2819_v26 = vpop.f32.mrb[19].mxu1  ;;  %1590 = vmatprep.mubr.bf16.mxu1 %v3424_v20  ;;  %2909 = vmatpush1.bf16.msra.mxu1 %v3167_v56 }
 0x2b4   : > { %v2820_v27 = vadd.f32 %v2819_v26, %v2818_v25  ;;  %2894 = vmatprep.subr.bf16.mxu1 %v3172_v59  ;;  %v1300_v28 = vadd.f32 %v2817_v24, %v3834_v32 }
 0x2b6   : > { %v1303_v29 = vadd.f32 %v2820_v27, %v3834_v32 }
 0x2b7   : > { %2910 = vmatpush1.bf16.msra.mxu1 %v3170_v62 }
 0x2b8   : > { %v2821_v31 = vpop.f32.mrb[20].mxu1  ;;  %v1398_v33 = vpack.c.bf16 %v1303_v29, %v1300_v28  ;;  %2895 = vmatprep.subr.bf16.mxu1 %v3175_v1 }
 0x2b9   : > { %v2822_v34 = vpop.f32.mrb[21].mxu1 }
 0x2ba   : > { %v2823_v36 = vadd.f32 %v2822_v34, %v2821_v31  ;;  %v2824_v37 = vpop.f32.mrb[22].mxu1  ;;  %1591 = vmatmul.mubr.bf16.gmra.mrb[80].mxu1 %v1398_v33 }
 0x2bb   : > { %v2825_v39 = vpop.f32.mrb[23].mxu1  ;;  %1600 = vmatprep.mubr.bf16.mxu1 %v3424_v20  ;;  %2911 = vmatpush1.bf16.msra.mxu1 %v3173_v5 }
 0x2bc   : > { %v2826_v40 = vadd.f32 %v2825_v39, %v2824_v37  ;;  %2896 = vmatprep.subr.bf16.mxu1 %v3178_v8  ;;  %v1308_v42 = vadd.f32 %v2823_v36, %v3834_v32  ;;  %v3191_v39 = vld [vmem:[#allocation10 + $0xe0] ss:$8 sps:$4 sm:$0xff]  }
 0x2be   : > { %v1311_v43 = vadd.f32 %v2826_v40, %v3834_v32 }
 0x2bf   : > { %2912 = vmatpush1.bf16.msra.mxu1 %v3176_v11 }
 0x2c0   : > { %v2827_v44 = vpop.f32.mrb[24].mxu1  ;;  %v1399_v45 = vpack.c.bf16 %v1311_v43, %v1308_v42  ;;  %2897 = vmatprep.subr.bf16.mxu1 %v3181_v14 }
 0x2c1   : > { %v2828_v46 = vpop.f32.mrb[25].mxu1 }
 0x2c2   : > { %v2829_v47 = vadd.f32 %v2828_v46, %v2827_v44  ;;  %v2830_v48 = vpop.f32.mrb[26].mxu1  ;;  %1601 = vmatmul.mubr.bf16.gmra.mrb[84].mxu1 %v1399_v45  ;;  %v3196_v45 = vld [vmem:[#allocation10 + $0xf4] ss:$8 sps:$4 sm:$0xff]  }
 0x2c3   : > { %v2831_v49 = vpop.f32.mrb[27].mxu1  ;;  %1610 = vmatprep.mubr.bf16.mxu1 %v3424_v20  ;;  %2913 = vmatpush1.bf16.msra.mxu1 %v3179_v18 }
 0x2c4   : > { %v2832_v50 = vadd.f32 %v2831_v49, %v2830_v48  ;;  %2898 = vmatprep.subr.bf16.mxu1 %v3184_v22  ;;  %v1316_v51 = vadd.f32 %v2829_v47, %v3834_v32  ;;  %v3194_v47 = vld [vmem:[#allocation10 + $0xf0] ss:$8 sps:$4 sm:$0xff]  }
 0x2c6   : > { %v1319_v52 = vadd.f32 %v2832_v50, %v3834_v32 }
 0x2c7   : > { %2914 = vmatpush1.bf16.msra.mxu1 %v3182_v23 }
 0x2c8   : > { %v2833_v53 = vpop.f32.mrb[28].mxu1  ;;  %v1400_v54 = vpack.c.bf16 %v1319_v52, %v1316_v51  ;;  %2899 = vmatprep.subr.bf16.mxu1 %v3187_v30 }
 0x2c9   : > { %v2834_v55 = vpop.f32.mrb[29].mxu1 }
 0x2ca   : > { %v2835_v56 = vadd.f32 %v2834_v55, %v2833_v53  ;;  %v2836_v57 = vpop.f32.mrb[30].mxu1  ;;  %1611 = vmatmul.mubr.bf16.gmra.mrb[88].mxu1 %v1400_v54 }
 0x2cb   : > { %v2837_v58 = vpop.f32.mrb[31].mxu1  ;;  %1620 = vmatprep.mubr.bf16.mxu1 %v3424_v20  ;;  %2915 = vmatpush1.bf16.msra.mxu1 %v3185_v35 }
 0x2cc   : > { %v2838_v59 = vadd.f32 %v2837_v58, %v2836_v57  ;;  %2900 = vmatprep.subr.bf16.mxu1 %v3190_v38  ;;  %v1324_v60 = vadd.f32 %v2835_v56, %v3834_v32  ;;  %v3193_v38 = vld [vmem:[#allocation10 + $0xe4] ss:$8 sps:$4 sm:$0xff]  }
 0x2cd   : > { %2039 = vmatprep.subr.bf16.mxu0 %v3193_v38 }
 0x2ce   : > { %v1327_v61 = vadd.f32 %v2838_v59, %v3834_v32  ;;  %2040 = vmatpush1.bf16.msra.mxu0 %v3191_v39 }
 0x2cf   : > { %2916 = vmatpush1.bf16.msra.mxu1 %v3188_v41  ;;  %2041 = vmatprep.subr.bf16.mxu0 %v3196_v45 }
 0x2d0   : > { %v2839_v62 = vpop.f32.mrb[32].mxu1  ;;  %v1401_v63 = vpack.c.bf16 %v1327_v61, %v1324_v60  ;;  %2901 = vmatprep.subr.bf16.mxu1 %v3193_v38 }
 0x2d1   : > { %v2840_v0 = vpop.f32.mrb[33].mxu1 }
 0x2d2   : > { %v2841_v1 = vadd.f32 %v2840_v0, %v2839_v62  ;;  %v2842_v2 = vpop.f32.mrb[34].mxu1  ;;  %1621 = vmatmul.mubr.bf16.gmra.mrb[92].mxu1 %v1401_v63  ;;  %2042 = vmatpush1.bf16.msra.mxu0 %v3194_v47 }
 0x2d3   : > { %v2843_v3 = vpop.f32.mrb[35].mxu1  ;;  %1630 = vmatprep.mubr.bf16.mxu1 %v3424_v20  ;;  %2917 = vmatpush1.bf16.msra.mxu1 %v3191_v39 }
 0x2d4   : > { %v2844_v4 = vadd.f32 %v2843_v3, %v2842_v2  ;;  %v1332_v5 = vadd.f32 %v2841_v1, %v3834_v32  ;;  %2902 = vmatprep.subr.bf16.mxu1 %v3196_v45 }
 0x2d6   : > { %v1335_v6 = vadd.f32 %v2844_v4, %v3834_v32 }
 0x2d7   : > { %2918 = vmatpush1.bf16.msra.mxu1 %v3194_v47 }
 0x2d8   : > { %v2845_v7 = vpop.f32.mrb[36].mxu1  ;;  %v1402_v8 = vpack.c.bf16 %v1335_v6, %v1332_v5 }
 0x2d9   : > { %v2846_v9 = vpop.f32.mrb[37].mxu1 }
 0x2da   : > { %v2847_v10 = vadd.f32 %v2846_v9, %v2845_v7  ;;  %v2848_v11 = vpop.f32.mrb[38].mxu1  ;;  %1631 = vmatmul.mubr.bf16.gmra.mrb[96].mxu1 %v1402_v8 }
 0x2db   : > { %v2849_v12 = vpop.f32.mrb[39].mxu1  ;;  %1640 = vmatprep.mubr.bf16.mxu1 %v3424_v20 }
 0x2dc   : > { %v2850_v13 = vadd.f32 %v2849_v12, %v2848_v11  ;;  %v1340_v14 = vadd.f32 %v2847_v10, %v3834_v32 }
 0x2de   : > { %v1343_v15 = vadd.f32 %v2850_v13, %v3834_v32 }
 0x2e0   : > { %v2851_v16 = vpop.f32.mrb[40].mxu1  ;;  %v1403_v17 = vpack.c.bf16 %v1343_v15, %v1340_v14  ;;  %v1426_v15 = vld [vmem:[%s4122_s6] sm:$0x3] }
 0x2e1   : > { %v2852_v18 = vpop.f32.mrb[41].mxu1 }
 0x2e2   : > { %v2853_v24 = vadd.f32 %v2852_v18, %v2851_v16  ;;  %v2854_v25 = vpop.f32.mrb[42].mxu1  ;;  %1641 = vmatmul.mubr.bf16.gmra.mrb[100].mxu1 %v1403_v17  ;;  %v3887_v16 = vrot.slane %v1426_v15, %v3753_v19  ;;  %v3890_v17 = vrot.slane %v1426_v15, %v3758_v21 }
 0x2e3   : > { %v2855_v22 = vpop.f32.mrb[43].mxu1  ;;  %1650 = vmatprep.mubr.bf16.mxu1 %v3424_v20 }
 0x2e4   : > { %v2856_v26 = vadd.f32 %v2855_v22, %v2854_v25  ;;  %v1348_v27 = vadd.f32 %v2853_v24, %v3834_v32 }
 0x2e6   : > { %v1351_v23 = vadd.f32 %v2856_v26, %v3834_v32 }
 0x2e8   : > { %v2857_v28 = vpop.f32.mrb[44].mxu1  ;;  %v1404_v29 = vpack.c.bf16 %v1351_v23, %v1348_v27 }
 0x2e9   : > { %v2858_v30 = vpop.f32.mrb[45].mxu1 }
 0x2ea   : > { %v2859_v31 = vadd.f32 %v2858_v30, %v2857_v28  ;;  %v2860_v33 = vpop.f32.mrb[46].mxu1  ;;  %1651 = vmatmul.mubr.bf16.gmra.mrb[104].mxu1 %v1404_v29 }
 0x2eb   : > { %v2861_v34 = vpop.f32.mrb[47].mxu1  ;;  %1660 = vmatprep.mubr.bf16.mxu1 %v3424_v20 }
 0x2ec   : > { %v2862_v35 = vadd.f32 %v2861_v34, %v2860_v33  ;;  %v1356_v36 = vadd.f32 %v2859_v31, %v3834_v32 }
 0x2ee   : > { %v1359_v37 = vadd.f32 %v2862_v35, %v3834_v32 }
 0x2f0   : > { %v2863_v40 = vpop.f32.mrb[48].mxu1  ;;  %v1405_v41 = vpack.c.bf16 %v1359_v37, %v1356_v36 }
 0x2f1   : > { %v2864_v42 = vpop.f32.mrb[49].mxu1 }
 0x2f2   : > { %v2865_v43 = vadd.f32 %v2864_v42, %v2863_v40  ;;  %v2866_v44 = vpop.f32.mrb[50].mxu1  ;;  %1661 = vmatmul.mubr.bf16.gmra.mrb[108].mxu1 %v1405_v41 }
 0x2f3   : > { %v2867_v46 = vpop.f32.mrb[51].mxu1  ;;  %1670 = vmatprep.mubr.bf16.mxu1 %v3424_v20 }
 0x2f4   : > { %v2868_v48 = vadd.f32 %v2867_v46, %v2866_v44  ;;  %v1364_v49 = vadd.f32 %v2865_v43, %v3834_v32 }
 0x2f6   : > { %v1367_v50 = vadd.f32 %v2868_v48, %v3834_v32 }
 0x2f8   : > { %v2869_v51 = vpop.f32.mrb[52].mxu1  ;;  %v1406_v52 = vpack.c.bf16 %v1367_v50, %v1364_v49 }
 0x2f9   : > { %v2870_v53 = vpop.f32.mrb[53].mxu1 }
 0x2fa   : > { %v2871_v54 = vadd.f32 %v2870_v53, %v2869_v51  ;;  %v2872_v55 = vpop.f32.mrb[54].mxu1  ;;  %1671 = vmatmul.mubr.bf16.gmra.mrb[112].mxu1 %v1406_v52 }
 0x2fb   : > { %v2873_v56 = vpop.f32.mrb[55].mxu1  ;;  %1680 = vmatprep.mubr.bf16.mxu1 %v3424_v20 }
 0x2fc   : > { %v2874_v57 = vadd.f32 %v2873_v56, %v2872_v55  ;;  %v1372_v58 = vadd.f32 %v2871_v54, %v3834_v32 }
 0x2fe   : > { %v1375_v59 = vadd.f32 %v2874_v57, %v3834_v32 }
 0x300   : > { %v2875_v60 = vpop.f32.mrb[56].mxu1  ;;  %v1407_v61 = vpack.c.bf16 %v1375_v59, %v1372_v58 }
 0x301   : > { %v2876_v62 = vpop.f32.mrb[57].mxu1 }
 0x302   : > { %v2877_v63 = vadd.f32 %v2876_v62, %v2875_v60  ;;  %v2878_v0 = vpop.f32.mrb[58].mxu1  ;;  %1681 = vmatmul.mubr.bf16.gmra.mrb[116].mxu1 %v1407_v61 }
 0x303   : > { %v2879_v1 = vpop.f32.mrb[59].mxu1  ;;  %1690 = vmatprep.mubr.bf16.mxu1 %v3424_v20 }
 0x304   : > { %v2880_v2 = vadd.f32 %v2879_v1, %v2878_v0  ;;  %v1380_v3 = vadd.f32 %v2877_v63, %v3834_v32 }
 0x306   : > { %v1383_v4 = vadd.f32 %v2880_v2, %v3834_v32 }
 0x308   : > { %v2881_v5 = vpop.f32.mrb[60].mxu1  ;;  %v1408_v6 = vpack.c.bf16 %v1383_v4, %v1380_v3 }
 0x309   : > { %v2882_v7 = vpop.f32.mrb[61].mxu1 }
 0x30a   : > { %v2883_v8 = vadd.f32 %v2882_v7, %v2881_v5  ;;  %v2884_v9 = vpop.f32.mrb[62].mxu1  ;;  %1691 = vmatmul.mubr.bf16.gmra.mrb[120].mxu1 %v1408_v6 }
 0x30b   : > { %v2885_v10 = vpop.f32.mrb[63].mxu1  ;;  %1700 = vmatprep.mubr.bf16.mxu1 %v3424_v20 }
 0x30c   : > { %v2886_v11 = vadd.f32 %v2885_v10, %v2884_v9  ;;  %v1388_v12 = vadd.f32 %v2883_v8, %v3834_v32 }
 0x30e   : > { %v1391_v13 = vadd.f32 %v2886_v11, %v3834_v32 }
 0x310   : > { %v1409_v14 = vpack.c.bf16 %v1391_v13, %v1388_v12 }
 0x312   : > { %1701 = vmatmul.mubr.bf16.gmra.mrb[124].mxu1 %v1409_v14 }
 0x36d   : > { %v1552_v18 = vpop.f32.mrb[64].mxu1 }
 0x36e   : > { %v1553_v20 = vadd.f32 %v1552_v18, %v3887_v16  ;;  %v1554_v24 = vpop.f32.mrb[65].mxu1 }
 0x36f   : > { %v1555_v25 = vadd.f32 %v1554_v24, %v3890_v17  ;;  %v1556_v22 = vpop.f32.mrb[66].mxu1 }
 0x370   : > { %v1557_v32 = vadd.f32 %v1556_v22, %v3887_v16  ;;  %v1558_v26 = vpop.f32.mrb[67].mxu1  ;;  %v1711_v23 = vmax.f32 %v1553_v20, 0.0 }
 0x371   : > { %v1559_v27 = vadd.f32 %v1558_v26, %v3890_v17  ;;  %v1712_v29 = vmax.f32 %v1555_v25, 0.0 }
 0x372   : > { %v1713_v28 = vmax.f32 %v1557_v32, 0.0 }
 0x373   : > { %v1714_v30 = vmax.f32 %v1559_v27, 0.0 }
 0x374   : > { %v1775_v31 = vpack.c.bf16 %v1713_v28, %v1711_v23 }
 0x375   : > { %v1776_v33 = vpack.c.bf16 %v1714_v30, %v1712_v29  ;;  %v1562_v34 = vpop.f32.mrb[68].mxu1 }
 0x376   : > { %v1563_v35 = vadd.f32 %v1562_v34, %v3887_v16  ;;  %v1564_v36 = vpop.f32.mrb[69].mxu1 }
 0x377   : > { %v1565_v37 = vadd.f32 %v1564_v36, %v3890_v17  ;;  %v1566_v38 = vpop.f32.mrb[70].mxu1  ;;  %2043 = vmatprep.mubr.bf16.mxu0 %v1776_v33 }
 0x378   : > { %v1567_v39 = vadd.f32 %v1566_v38, %v3887_v16  ;;  %v1568_v40 = vpop.f32.mrb[71].mxu1  ;;  %2044 = vmatmul.mubr.bf16.vlgmr.msra.gmra.mrb[64].mxu0 %v1775_v31  ;;  %v1715_v42 = vmax.f32 %v1563_v35, 0.0 }
 0x379   : > { %v1569_v41 = vadd.f32 %v1568_v40, %v3890_v17  ;;  %v1716_v44 = vmax.f32 %v1565_v37, 0.0 }
 0x37a   : > { %v1717_v43 = vmax.f32 %v1567_v39, 0.0 }
 0x37b   : > { %v1718_v45 = vmax.f32 %v1569_v41, 0.0 }
 0x37c   : > { %v1777_v46 = vpack.c.bf16 %v1717_v43, %v1715_v42 }
 0x37d   : > { %v1778_v47 = vpack.c.bf16 %v1718_v45, %v1716_v44  ;;  %v1572_v48 = vpop.f32.mrb[72].mxu1 }
 0x37e   : > { %v1573_v49 = vadd.f32 %v1572_v48, %v3887_v16  ;;  %v1574_v50 = vpop.f32.mrb[73].mxu1 }
 0x37f   : > { %v1575_v51 = vadd.f32 %v1574_v50, %v3890_v17  ;;  %v1576_v52 = vpop.f32.mrb[74].mxu1  ;;  %2053 = vmatprep.mubr.bf16.mxu0 %v1778_v47 }
 0x380   : > { %v1577_v53 = vadd.f32 %v1576_v52, %v3887_v16  ;;  %v1578_v54 = vpop.f32.mrb[75].mxu1  ;;  %2054 = vmatmul.mubr.bf16.gmra.mrb[68].mxu0 %v1777_v46  ;;  %v1719_v56 = vmax.f32 %v1573_v49, 0.0 }
 0x381   : > { %v1579_v55 = vadd.f32 %v1578_v54, %v3890_v17  ;;  %v1720_v58 = vmax.f32 %v1575_v51, 0.0 }
 0x382   : > { %v1721_v57 = vmax.f32 %v1577_v53, 0.0 }
 0x383   : > { %v1722_v59 = vmax.f32 %v1579_v55, 0.0 }
 0x384   : > { %v1779_v60 = vpack.c.bf16 %v1721_v57, %v1719_v56 }
 0x385   : > { %v1780_v61 = vpack.c.bf16 %v1722_v59, %v1720_v58  ;;  %v1582_v62 = vpop.f32.mrb[76].mxu1 }
 0x386   : > { %v1583_v63 = vadd.f32 %v1582_v62, %v3887_v16  ;;  %v1584_v0 = vpop.f32.mrb[77].mxu1 }
 0x387   : > { %v1585_v1 = vadd.f32 %v1584_v0, %v3890_v17  ;;  %v1586_v2 = vpop.f32.mrb[78].mxu1  ;;  %2063 = vmatprep.mubr.bf16.mxu0 %v1780_v61 }
 0x388   : > { %v1587_v3 = vadd.f32 %v1586_v2, %v3887_v16  ;;  %v1588_v4 = vpop.f32.mrb[79].mxu1  ;;  %2064 = vmatmul.mubr.bf16.gmra.mrb[72].mxu0 %v1779_v60  ;;  %v1723_v6 = vmax.f32 %v1583_v63, 0.0 }
 0x389   : > { %v1589_v5 = vadd.f32 %v1588_v4, %v3890_v17  ;;  %v1724_v8 = vmax.f32 %v1585_v1, 0.0 }
 0x38a   : > { %v1725_v7 = vmax.f32 %v1587_v3, 0.0 }
 0x38b   : > { %v1726_v9 = vmax.f32 %v1589_v5, 0.0 }
 0x38c   : > { %v1781_v10 = vpack.c.bf16 %v1725_v7, %v1723_v6 }
 0x38d   : > { %v1782_v11 = vpack.c.bf16 %v1726_v9, %v1724_v8  ;;  %v1592_v12 = vpop.f32.mrb[80].mxu1 }
 0x38e   : > { %v1593_v13 = vadd.f32 %v1592_v12, %v3887_v16  ;;  %v1594_v14 = vpop.f32.mrb[81].mxu1 }
 0x38f   : > { %v1595_v15 = vadd.f32 %v1594_v14, %v3890_v17  ;;  %v1596_v18 = vpop.f32.mrb[82].mxu1  ;;  %2073 = vmatprep.mubr.bf16.mxu0 %v1782_v11 }
 0x390   : > { %v1597_v20 = vadd.f32 %v1596_v18, %v3887_v16  ;;  %v1598_v24 = vpop.f32.mrb[83].mxu1  ;;  %2074 = vmatmul.mubr.bf16.gmra.mrb[76].mxu0 %v1781_v10  ;;  %v1727_v22 = vmax.f32 %v1593_v13, 0.0 }
 0x391   : > { %v1599_v25 = vadd.f32 %v1598_v24, %v3890_v17  ;;  %v1728_v26 = vmax.f32 %v1595_v15, 0.0 }
 0x392   : > { %v1729_v32 = vmax.f32 %v1597_v20, 0.0 }
 0x393   : > { %v1730_v27 = vmax.f32 %v1599_v25, 0.0 }
 0x394   : > { %v1783_v23 = vpack.c.bf16 %v1729_v32, %v1727_v22 }
 0x395   : > { %v1784_v28 = vpack.c.bf16 %v1730_v27, %v1728_v26  ;;  %v1602_v29 = vpop.f32.mrb[84].mxu1 }
 0x396   : > { %v1603_v30 = vadd.f32 %v1602_v29, %v3887_v16  ;;  %v1604_v31 = vpop.f32.mrb[85].mxu1 }
 0x397   : > { %v1605_v33 = vadd.f32 %v1604_v31, %v3890_v17  ;;  %v1606_v34 = vpop.f32.mrb[86].mxu1  ;;  %2083 = vmatprep.mubr.bf16.mxu0 %v1784_v28 }
 0x398   : > { %v1607_v35 = vadd.f32 %v1606_v34, %v3887_v16  ;;  %v1608_v36 = vpop.f32.mrb[87].mxu1  ;;  %2084 = vmatmul.mubr.bf16.gmra.mrb[80].mxu0 %v1783_v23  ;;  %v1731_v38 = vmax.f32 %v1603_v30, 0.0 }
 0x399   : > { %v1609_v37 = vadd.f32 %v1608_v36, %v3890_v17  ;;  %v1732_v40 = vmax.f32 %v1605_v33, 0.0 }
 0x39a   : > { %v1733_v39 = vmax.f32 %v1607_v35, 0.0 }
 0x39b   : > { %v1734_v41 = vmax.f32 %v1609_v37, 0.0 }
 0x39c   : > { %v1785_v42 = vpack.c.bf16 %v1733_v39, %v1731_v38 }
 0x39d   : > { %v1786_v43 = vpack.c.bf16 %v1734_v41, %v1732_v40  ;;  %v1612_v44 = vpop.f32.mrb[88].mxu1 }
 0x39e   : > { %v1613_v45 = vadd.f32 %v1612_v44, %v3887_v16  ;;  %v1614_v46 = vpop.f32.mrb[89].mxu1 }
 0x39f   : > { %v1615_v47 = vadd.f32 %v1614_v46, %v3890_v17  ;;  %v1616_v48 = vpop.f32.mrb[90].mxu1  ;;  %2093 = vmatprep.mubr.bf16.mxu0 %v1786_v43 }
 0x3a0   : > { %v1617_v49 = vadd.f32 %v1616_v48, %v3887_v16  ;;  %v1618_v50 = vpop.f32.mrb[91].mxu1  ;;  %2094 = vmatmul.mubr.bf16.gmra.mrb[84].mxu0 %v1785_v42  ;;  %v1735_v52 = vmax.f32 %v1613_v45, 0.0 }
 0x3a1   : > { %v1619_v51 = vadd.f32 %v1618_v50, %v3890_v17  ;;  %v1736_v54 = vmax.f32 %v1615_v47, 0.0 }
 0x3a2   : > { %v1737_v53 = vmax.f32 %v1617_v49, 0.0 }
 0x3a3   : > { %v1738_v55 = vmax.f32 %v1619_v51, 0.0 }
 0x3a4   : > { %v1787_v56 = vpack.c.bf16 %v1737_v53, %v1735_v52 }
 0x3a5   : > { %v1788_v57 = vpack.c.bf16 %v1738_v55, %v1736_v54  ;;  %v1622_v58 = vpop.f32.mrb[92].mxu1 }
 0x3a6   : > { %v1623_v59 = vadd.f32 %v1622_v58, %v3887_v16  ;;  %v1624_v60 = vpop.f32.mrb[93].mxu1 }
 0x3a7   : > { %v1625_v61 = vadd.f32 %v1624_v60, %v3890_v17  ;;  %v1626_v62 = vpop.f32.mrb[94].mxu1  ;;  %2103 = vmatprep.mubr.bf16.mxu0 %v1788_v57 }
 0x3a8   : > { %v1627_v63 = vadd.f32 %v1626_v62, %v3887_v16  ;;  %v1628_v0 = vpop.f32.mrb[95].mxu1  ;;  %2104 = vmatmul.mubr.bf16.gmra.mrb[88].mxu0 %v1787_v56  ;;  %v1739_v2 = vmax.f32 %v1623_v59, 0.0 }
 0x3a9   : > { %v1629_v1 = vadd.f32 %v1628_v0, %v3890_v17  ;;  %v1740_v4 = vmax.f32 %v1625_v61, 0.0 }
 0x3aa   : > { %v1741_v3 = vmax.f32 %v1627_v63, 0.0 }
 0x3ab   : > { %v1742_v5 = vmax.f32 %v1629_v1, 0.0 }
 0x3ac   : > { %v1789_v6 = vpack.c.bf16 %v1741_v3, %v1739_v2 }
 0x3ad   : > { %v1790_v7 = vpack.c.bf16 %v1742_v5, %v1740_v4  ;;  %v1632_v8 = vpop.f32.mrb[96].mxu1 }
 0x3ae   : > { %v1633_v9 = vadd.f32 %v1632_v8, %v3887_v16  ;;  %v1634_v10 = vpop.f32.mrb[97].mxu1 }
 0x3af   : > { %v1635_v11 = vadd.f32 %v1634_v10, %v3890_v17  ;;  %v1636_v12 = vpop.f32.mrb[98].mxu1  ;;  %2113 = vmatprep.mubr.bf16.mxu0 %v1790_v7 }
 0x3b0   : > { %v1637_v13 = vadd.f32 %v1636_v12, %v3887_v16  ;;  %v1638_v14 = vpop.f32.mrb[99].mxu1  ;;  %2114 = vmatmul.mubr.bf16.gmra.mrb[92].mxu0 %v1789_v6  ;;  %v1743_v18 = vmax.f32 %v1633_v9, 0.0 }
 0x3b1   : > { %v1639_v15 = vadd.f32 %v1638_v14, %v3890_v17  ;;  %v1744_v24 = vmax.f32 %v1635_v11, 0.0 }
 0x3b2   : > { %v1745_v20 = vmax.f32 %v1637_v13, 0.0 }
 0x3b3   : > { %v1746_v25 = vmax.f32 %v1639_v15, 0.0 }
 0x3b4   : > { %v1791_v22 = vpack.c.bf16 %v1745_v20, %v1743_v18 }
 0x3b5   : > { %v1792_v32 = vpack.c.bf16 %v1746_v25, %v1744_v24  ;;  %v1642_v26 = vpop.f32.mrb[100].mxu1 }
 0x3b6   : > { %v1643_v27 = vadd.f32 %v1642_v26, %v3887_v16  ;;  %v1644_v23 = vpop.f32.mrb[101].mxu1 }
 0x3b7   : > { %v1645_v28 = vadd.f32 %v1644_v23, %v3890_v17  ;;  %v1646_v29 = vpop.f32.mrb[102].mxu1  ;;  %2123 = vmatprep.mubr.bf16.mxu0 %v1792_v32 }
 0x3b8   : > { %v1647_v30 = vadd.f32 %v1646_v29, %v3887_v16  ;;  %v1648_v31 = vpop.f32.mrb[103].mxu1  ;;  %2124 = vmatmul.mubr.bf16.gmra.mrb[96].mxu0 %v1791_v22  ;;  %v1747_v34 = vmax.f32 %v1643_v27, 0.0 }
 0x3b9   : > { %v1649_v33 = vadd.f32 %v1648_v31, %v3890_v17  ;;  %v1748_v36 = vmax.f32 %v1645_v28, 0.0 }
 0x3ba   : > { %v1749_v35 = vmax.f32 %v1647_v30, 0.0 }
 0x3bb   : > { %v1750_v37 = vmax.f32 %v1649_v33, 0.0 }
 0x3bc   : > { %v1793_v38 = vpack.c.bf16 %v1749_v35, %v1747_v34 }
 0x3bd   : > { %v1794_v39 = vpack.c.bf16 %v1750_v37, %v1748_v36  ;;  %v1652_v40 = vpop.f32.mrb[104].mxu1 }
 0x3be   : > { %v1653_v41 = vadd.f32 %v1652_v40, %v3887_v16  ;;  %v1654_v42 = vpop.f32.mrb[105].mxu1 }
 0x3bf   : > { %v1655_v43 = vadd.f32 %v1654_v42, %v3890_v17  ;;  %v1656_v44 = vpop.f32.mrb[106].mxu1  ;;  %2133 = vmatprep.mubr.bf16.mxu0 %v1794_v39 }
 0x3c0   : > { %v1657_v45 = vadd.f32 %v1656_v44, %v3887_v16  ;;  %v1658_v46 = vpop.f32.mrb[107].mxu1  ;;  %2134 = vmatmul.mubr.bf16.gmra.mrb[100].mxu0 %v1793_v38  ;;  %v1751_v48 = vmax.f32 %v1653_v41, 0.0 }
 0x3c1   : > { %v1659_v47 = vadd.f32 %v1658_v46, %v3890_v17  ;;  %v1752_v50 = vmax.f32 %v1655_v43, 0.0 }
 0x3c2   : > { %v1753_v49 = vmax.f32 %v1657_v45, 0.0 }
 0x3c3   : > { %v1754_v51 = vmax.f32 %v1659_v47, 0.0 }
 0x3c4   : > { %v1795_v52 = vpack.c.bf16 %v1753_v49, %v1751_v48 }
 0x3c5   : > { %v1796_v53 = vpack.c.bf16 %v1754_v51, %v1752_v50  ;;  %v1662_v54 = vpop.f32.mrb[108].mxu1 }
 0x3c6   : > { %v1663_v55 = vadd.f32 %v1662_v54, %v3887_v16  ;;  %v1664_v56 = vpop.f32.mrb[109].mxu1 }
 0x3c7   : > { %v1665_v57 = vadd.f32 %v1664_v56, %v3890_v17  ;;  %v1666_v58 = vpop.f32.mrb[110].mxu1  ;;  %2143 = vmatprep.mubr.bf16.mxu0 %v1796_v53 }
 0x3c8   : > { %v1667_v59 = vadd.f32 %v1666_v58, %v3887_v16  ;;  %v1668_v60 = vpop.f32.mrb[111].mxu1  ;;  %2144 = vmatmul.mubr.bf16.gmra.mrb[104].mxu0 %v1795_v52  ;;  %v1755_v62 = vmax.f32 %v1663_v55, 0.0 }
 0x3c9   : > { %v1669_v61 = vadd.f32 %v1668_v60, %v3890_v17  ;;  %v1756_v0 = vmax.f32 %v1665_v57, 0.0 }
 0x3ca   : > { %v1757_v63 = vmax.f32 %v1667_v59, 0.0 }
 0x3cb   : > { %v1758_v1 = vmax.f32 %v1669_v61, 0.0 }
 0x3cc   : > { %v1797_v2 = vpack.c.bf16 %v1757_v63, %v1755_v62 }
 0x3cd   : > { %v1798_v3 = vpack.c.bf16 %v1758_v1, %v1756_v0  ;;  %v1672_v4 = vpop.f32.mrb[112].mxu1  ;;  %v1839_v0 = vld [vmem:[%s4124_s8] sm:$0x3] }
 0x3ce   : > { %v1673_v5 = vadd.f32 %v1672_v4, %v3887_v16  ;;  %v1674_v6 = vpop.f32.mrb[113].mxu1  ;;  %v3960_v1 = vrot.slane %v1839_v0, %v3753_v19 }
 0x3cf   : > { %v1675_v7 = vadd.f32 %v1674_v6, %v3890_v17  ;;  %v1676_v8 = vpop.f32.mrb[114].mxu1  ;;  %2153 = vmatprep.mubr.bf16.mxu0 %v1798_v3 }
 0x3d0   : > { %v1677_v9 = vadd.f32 %v1676_v8, %v3887_v16  ;;  %v1678_v10 = vpop.f32.mrb[115].mxu1  ;;  %2154 = vmatmul.mubr.bf16.gmra.mrb[108].mxu0 %v1797_v2  ;;  %v1759_v12 = vmax.f32 %v1673_v5, 0.0 }
 0x3d1   : > { %v1679_v11 = vadd.f32 %v1678_v10, %v3890_v17  ;;  %v1760_v14 = vmax.f32 %v1675_v7, 0.0 }
 0x3d2   : > { %v1761_v13 = vmax.f32 %v1677_v9, 0.0 }
 0x3d3   : > { %v1762_v15 = vmax.f32 %v1679_v11, 0.0 }
 0x3d4   : > { %v1799_v18 = vpack.c.bf16 %v1761_v13, %v1759_v12 }
 0x3d5   : > { %v1800_v20 = vpack.c.bf16 %v1762_v15, %v1760_v14  ;;  %v1682_v24 = vpop.f32.mrb[116].mxu1 }
 0x3d6   : > { %v1683_v25 = vadd.f32 %v1682_v24, %v3887_v16  ;;  %v1684_v22 = vpop.f32.mrb[117].mxu1 }
 0x3d7   : > { %v1685_v32 = vadd.f32 %v1684_v22, %v3890_v17  ;;  %v1686_v26 = vpop.f32.mrb[118].mxu1  ;;  %2163 = vmatprep.mubr.bf16.mxu0 %v1800_v20 }
 0x3d8   : > { %v1687_v27 = vadd.f32 %v1686_v26, %v3887_v16  ;;  %v1688_v23 = vpop.f32.mrb[119].mxu1  ;;  %2164 = vmatmul.mubr.bf16.gmra.mrb[112].mxu0 %v1799_v18  ;;  %v1763_v29 = vmax.f32 %v1683_v25, 0.0 }
 0x3d9   : > { %v1689_v28 = vadd.f32 %v1688_v23, %v3890_v17  ;;  %v1764_v31 = vmax.f32 %v1685_v32, 0.0 }
 0x3da   : > { %v1765_v30 = vmax.f32 %v1687_v27, 0.0 }
 0x3db   : > { %v1766_v33 = vmax.f32 %v1689_v28, 0.0 }
 0x3dc   : > { %v1801_v34 = vpack.c.bf16 %v1765_v30, %v1763_v29 }
 0x3dd   : > { %v1802_v35 = vpack.c.bf16 %v1766_v33, %v1764_v31  ;;  %v1692_v36 = vpop.f32.mrb[120].mxu1 }
 0x3de   : > { %v1693_v37 = vadd.f32 %v1692_v36, %v3887_v16  ;;  %v1694_v38 = vpop.f32.mrb[121].mxu1 }
 0x3df   : > { %v1695_v39 = vadd.f32 %v1694_v38, %v3890_v17  ;;  %v1696_v40 = vpop.f32.mrb[122].mxu1  ;;  %2173 = vmatprep.mubr.bf16.mxu0 %v1802_v35 }
 0x3e0   : > { %v1697_v41 = vadd.f32 %v1696_v40, %v3887_v16  ;;  %v1698_v42 = vpop.f32.mrb[123].mxu1  ;;  %2174 = vmatmul.mubr.bf16.gmra.mrb[116].mxu0 %v1801_v34  ;;  %v1767_v44 = vmax.f32 %v1693_v37, 0.0 }
 0x3e1   : > { %v1699_v43 = vadd.f32 %v1698_v42, %v3890_v17  ;;  %v1768_v46 = vmax.f32 %v1695_v39, 0.0 }
 0x3e2   : > { %v1769_v45 = vmax.f32 %v1697_v41, 0.0 }
 0x3e3   : > { %v1770_v47 = vmax.f32 %v1699_v43, 0.0 }
 0x3e4   : > { %v1803_v48 = vpack.c.bf16 %v1769_v45, %v1767_v44 }
 0x3e5   : > { %v1804_v49 = vpack.c.bf16 %v1770_v47, %v1768_v46  ;;  %v1702_v50 = vpop.f32.mrb[124].mxu1 }
 0x3e6   : > { %v1703_v51 = vadd.f32 %v1702_v50, %v3887_v16  ;;  %v1704_v52 = vpop.f32.mrb[125].mxu1 }
 0x3e7   : > { %v1705_v53 = vadd.f32 %v1704_v52, %v3890_v17  ;;  %v1706_v54 = vpop.f32.mrb[126].mxu1  ;;  %2183 = vmatprep.mubr.bf16.mxu1 %v1804_v49 }
 0x3e8   : > { %v1707_v55 = vadd.f32 %v1706_v54, %v3887_v16  ;;  %v1708_v56 = vpop.f32.mrb[127].mxu1  ;;  %2184 = vmatmul.mubr.bf16.vlgmr.msra.gmra.mrb[128].mxu1 %v1803_v48  ;;  %v1771_v58 = vmax.f32 %v1703_v51, 0.0  ;;  %v3963_v16 = vrot.slane %v1839_v0, %v3758_v21 }
 0x3e9   : > { %v1709_v57 = vadd.f32 %v1708_v56, %v3890_v17  ;;  %v1772_v60 = vmax.f32 %v1705_v53, 0.0 }
 0x3ea   : > { %v1773_v59 = vmax.f32 %v1707_v55, 0.0 }
 0x3eb   : > { %v1774_v61 = vmax.f32 %v1709_v57, 0.0 }
 0x3ec   : > { %v1805_v62 = vpack.c.bf16 %v1773_v59, %v1771_v58 }
 0x3ed   : > { %v1806_v63 = vpack.c.bf16 %v1774_v61, %v1772_v60 }
 0x3ef   : > { %2193 = vmatprep.mubr.bf16.mxu1 %v1806_v63 }
 0x3f0   : > { %2194 = vmatmul.mubr.bf16.gmra.mrb[132].mxu1 %v1805_v62 }
 0x44b   : > { %v2045_v17 = vpop.f32.mrb[64].mxu0 }
 0x44c   : > { %v2046_v2 = vadd.f32 %v2045_v17, %v3960_v1  ;;  %v2047_v3 = vpop.f32.mrb[65].mxu0 }
 0x44d   : > { %v2048_v4 = vadd.f32 %v2047_v3, %v3963_v16  ;;  %v2049_v5 = vpop.f32.mrb[66].mxu0 }
 0x44e   : > { %v2050_v6 = vadd.f32 %v2049_v5, %v3960_v1  ;;  %v2051_v7 = vpop.f32.mrb[67].mxu0 }
 0x44f   : > { %v2741_v8 = vpack.c.bf16 %v2048_v4, %v2046_v2  ;;  %v2052_v9 = vadd.f32 %v2051_v7, %v3963_v16 }
 0x451   : > { %2396 = vst [vmem:[%s3971_s18] sm:$0xff] %v2741_v8  ;;  %v2742_v19 = vpack.c.bf16 %v2052_v9, %v2050_v6 }
 0x453   : > { %2397 = vst [vmem:[%s3971_s18 + $0x8] sm:$0xff] %v2742_v19  ;;  %v2055_v21 = vpop.f32.mrb[68].mxu0 }
 0x454   : > { %v2056_v10 = vadd.f32 %v2055_v21, %v3960_v1  ;;  %v2057_v11 = vpop.f32.mrb[69].mxu0 }
 0x455   : > { %v2058_v12 = vadd.f32 %v2057_v11, %v3963_v16  ;;  %v2059_v13 = vpop.f32.mrb[70].mxu0 }
 0x456   : > { %v2060_v14 = vadd.f32 %v2059_v13, %v3960_v1  ;;  %v2061_v15 = vpop.f32.mrb[71].mxu0 }
 0x457   : > { %v2743_v18 = vpack.c.bf16 %v2058_v12, %v2056_v10  ;;  %v2062_v20 = vadd.f32 %v2061_v15, %v3963_v16 }
 0x459   : > { %2398 = vst [vmem:[%s3971_s18 + $0x10] sm:$0xff] %v2743_v18  ;;  %v2744_v24 = vpack.c.bf16 %v2062_v20, %v2060_v14 }
 0x45b   : > { %2399 = vst [vmem:[%s3971_s18 + $0x18] sm:$0xff] %v2744_v24  ;;  %v2065_v25 = vpop.f32.mrb[72].mxu0 }
 0x45c   : > { %v2066_v22 = vadd.f32 %v2065_v25, %v3960_v1  ;;  %v2067_v32 = vpop.f32.mrb[73].mxu0 }
 0x45d   : > { %v2068_v26 = vadd.f32 %v2067_v32, %v3963_v16  ;;  %v2069_v27 = vpop.f32.mrb[74].mxu0 }
 0x45e   : > { %v2070_v23 = vadd.f32 %v2069_v27, %v3960_v1  ;;  %v2071_v28 = vpop.f32.mrb[75].mxu0 }
 0x45f   : > { %v2745_v29 = vpack.c.bf16 %v2068_v26, %v2066_v22  ;;  %v2072_v30 = vadd.f32 %v2071_v28, %v3963_v16 }
 0x461   : > { %2400 = vst [vmem:[%s3971_s18 + $0x20] sm:$0xff] %v2745_v29  ;;  %v2746_v31 = vpack.c.bf16 %v2072_v30, %v2070_v23 }
 0x463   : > { %2401 = vst [vmem:[%s3971_s18 + $0x28] sm:$0xff] %v2746_v31  ;;  %v2075_v33 = vpop.f32.mrb[76].mxu0 }
 0x464   : > { %v2076_v34 = vadd.f32 %v2075_v33, %v3960_v1  ;;  %v2077_v35 = vpop.f32.mrb[77].mxu0 }
 0x465   : > { %v2078_v36 = vadd.f32 %v2077_v35, %v3963_v16  ;;  %v2079_v37 = vpop.f32.mrb[78].mxu0 }
 0x466   : > { %v2080_v38 = vadd.f32 %v2079_v37, %v3960_v1  ;;  %v2081_v39 = vpop.f32.mrb[79].mxu0 }
 0x467   : > { %v2747_v40 = vpack.c.bf16 %v2078_v36, %v2076_v34  ;;  %v2082_v41 = vadd.f32 %v2081_v39, %v3963_v16 }
 0x469   : > { %2402 = vst [vmem:[%s3971_s18 + $0x30] sm:$0xff] %v2747_v40  ;;  %v2748_v42 = vpack.c.bf16 %v2082_v41, %v2080_v38 }
 0x46b   : > { %2403 = vst [vmem:[%s3971_s18 + $0x38] sm:$0xff] %v2748_v42  ;;  %v2085_v43 = vpop.f32.mrb[80].mxu0 }
 0x46c   : > { %v2086_v44 = vadd.f32 %v2085_v43, %v3960_v1  ;;  %v2087_v45 = vpop.f32.mrb[81].mxu0 }
 0x46d   : > { %v2088_v46 = vadd.f32 %v2087_v45, %v3963_v16  ;;  %v2089_v47 = vpop.f32.mrb[82].mxu0 }
 0x46e   : > { %v2090_v48 = vadd.f32 %v2089_v47, %v3960_v1  ;;  %v2091_v49 = vpop.f32.mrb[83].mxu0 }
 0x46f   : > { %v2749_v50 = vpack.c.bf16 %v2088_v46, %v2086_v44  ;;  %v2092_v51 = vadd.f32 %v2091_v49, %v3963_v16 }
 0x471   : > { %2404 = vst [vmem:[%s3971_s18 + $0x40] sm:$0xff] %v2749_v50  ;;  %v2750_v52 = vpack.c.bf16 %v2092_v51, %v2090_v48 }
 0x473   : > { %2405 = vst [vmem:[%s3971_s18 + $0x48] sm:$0xff] %v2750_v52  ;;  %v2095_v53 = vpop.f32.mrb[84].mxu0 }
 0x474   : > { %v2096_v54 = vadd.f32 %v2095_v53, %v3960_v1  ;;  %v2097_v55 = vpop.f32.mrb[85].mxu0 }
 0x475   : > { %v2098_v56 = vadd.f32 %v2097_v55, %v3963_v16  ;;  %v2099_v57 = vpop.f32.mrb[86].mxu0 }
 0x476   : > { %v2100_v58 = vadd.f32 %v2099_v57, %v3960_v1  ;;  %v2101_v59 = vpop.f32.mrb[87].mxu0 }
 0x477   : > { %v2751_v60 = vpack.c.bf16 %v2098_v56, %v2096_v54  ;;  %v2102_v61 = vadd.f32 %v2101_v59, %v3963_v16 }
 0x479   : > { %2406 = vst [vmem:[%s3971_s18 + $0x50] sm:$0xff] %v2751_v60  ;;  %v2752_v62 = vpack.c.bf16 %v2102_v61, %v2100_v58 }
 0x47b   : > { %2407 = vst [vmem:[%s3971_s18 + $0x58] sm:$0xff] %v2752_v62  ;;  %v2105_v63 = vpop.f32.mrb[88].mxu0 }
 0x47c   : > { %v2106_v0 = vadd.f32 %v2105_v63, %v3960_v1  ;;  %v2107_v17 = vpop.f32.mrb[89].mxu0 }
 0x47d   : > { %v2108_v2 = vadd.f32 %v2107_v17, %v3963_v16  ;;  %v2109_v3 = vpop.f32.mrb[90].mxu0 }
 0x47e   : > { %v2110_v4 = vadd.f32 %v2109_v3, %v3960_v1  ;;  %v2111_v5 = vpop.f32.mrb[91].mxu0 }
 0x47f   : > { %v2753_v6 = vpack.c.bf16 %v2108_v2, %v2106_v0  ;;  %v2112_v7 = vadd.f32 %v2111_v5, %v3963_v16 }
 0x481   : > { %2408 = vst [vmem:[%s3971_s18 + $0x60] sm:$0xff] %v2753_v6  ;;  %v2754_v8 = vpack.c.bf16 %v2112_v7, %v2110_v4 }
 0x483   : > { %2409 = vst [vmem:[%s3971_s18 + $0x68] sm:$0xff] %v2754_v8  ;;  %v2115_v9 = vpop.f32.mrb[92].mxu0 }
 0x484   : > { %v2116_v19 = vadd.f32 %v2115_v9, %v3960_v1  ;;  %v2117_v21 = vpop.f32.mrb[93].mxu0 }
 0x485   : > { %v2118_v10 = vadd.f32 %v2117_v21, %v3963_v16  ;;  %v2119_v11 = vpop.f32.mrb[94].mxu0 }
 0x486   : > { %v2120_v12 = vadd.f32 %v2119_v11, %v3960_v1  ;;  %v2121_v13 = vpop.f32.mrb[95].mxu0 }
 0x487   : > { %v2755_v14 = vpack.c.bf16 %v2118_v10, %v2116_v19  ;;  %v2122_v15 = vadd.f32 %v2121_v13, %v3963_v16 }
 0x489   : > { %2410 = vst [vmem:[%s3971_s18 + $0x70] sm:$0xff] %v2755_v14  ;;  %v2756_v18 = vpack.c.bf16 %v2122_v15, %v2120_v12 }
 0x48b   : > { %2411 = vst [vmem:[%s3971_s18 + $0x78] sm:$0xff] %v2756_v18  ;;  %v2125_v20 = vpop.f32.mrb[96].mxu0 }
 0x48c   : > { %v2126_v24 = vadd.f32 %v2125_v20, %v3960_v1  ;;  %v2127_v25 = vpop.f32.mrb[97].mxu0 }
 0x48d   : > { %v2128_v22 = vadd.f32 %v2127_v25, %v3963_v16  ;;  %v2129_v32 = vpop.f32.mrb[98].mxu0 }
 0x48e   : > { %v2130_v26 = vadd.f32 %v2129_v32, %v3960_v1  ;;  %v2131_v27 = vpop.f32.mrb[99].mxu0 }
 0x48f   : > { %v2757_v23 = vpack.c.bf16 %v2128_v22, %v2126_v24  ;;  %v2132_v28 = vadd.f32 %v2131_v27, %v3963_v16 }
 0x491   : > { %2412 = vst [vmem:[%s3971_s18 + $0x80] sm:$0xff] %v2757_v23  ;;  %v2758_v29 = vpack.c.bf16 %v2132_v28, %v2130_v26 }
 0x493   : > { %2413 = vst [vmem:[%s3971_s18 + $0x88] sm:$0xff] %v2758_v29  ;;  %v2135_v30 = vpop.f32.mrb[100].mxu0 }
 0x494   : > { %v2136_v31 = vadd.f32 %v2135_v30, %v3960_v1  ;;  %v2137_v33 = vpop.f32.mrb[101].mxu0 }
 0x495   : > { %v2138_v34 = vadd.f32 %v2137_v33, %v3963_v16  ;;  %v2139_v35 = vpop.f32.mrb[102].mxu0 }
 0x496   : > { %v2140_v36 = vadd.f32 %v2139_v35, %v3960_v1  ;;  %v2141_v37 = vpop.f32.mrb[103].mxu0 }
 0x497   : > { %v2759_v38 = vpack.c.bf16 %v2138_v34, %v2136_v31  ;;  %v2142_v39 = vadd.f32 %v2141_v37, %v3963_v16 }
 0x499   : > { %2414 = vst [vmem:[%s3971_s18 + $0x90] sm:$0xff] %v2759_v38  ;;  %v2760_v40 = vpack.c.bf16 %v2142_v39, %v2140_v36 }
 0x49b   : > { %2415 = vst [vmem:[%s3971_s18 + $0x98] sm:$0xff] %v2760_v40  ;;  %v2145_v41 = vpop.f32.mrb[104].mxu0 }
 0x49c   : > { %v2146_v42 = vadd.f32 %v2145_v41, %v3960_v1  ;;  %v2147_v43 = vpop.f32.mrb[105].mxu0 }
 0x49d   : > { %v2148_v44 = vadd.f32 %v2147_v43, %v3963_v16  ;;  %v2149_v45 = vpop.f32.mrb[106].mxu0 }
 0x49e   : > { %v2150_v46 = vadd.f32 %v2149_v45, %v3960_v1  ;;  %v2151_v47 = vpop.f32.mrb[107].mxu0 }
 0x49f   : > { %v2761_v48 = vpack.c.bf16 %v2148_v44, %v2146_v42  ;;  %v2152_v49 = vadd.f32 %v2151_v47, %v3963_v16 }
 0x4a1   : > { %2416 = vst [vmem:[%s3971_s18 + $0xa0] sm:$0xff] %v2761_v48  ;;  %v2762_v50 = vpack.c.bf16 %v2152_v49, %v2150_v46 }
 0x4a3   : > { %2417 = vst [vmem:[%s3971_s18 + $0xa8] sm:$0xff] %v2762_v50  ;;  %v2155_v51 = vpop.f32.mrb[108].mxu0 }
 0x4a4   : > { %v2156_v52 = vadd.f32 %v2155_v51, %v3960_v1  ;;  %v2157_v53 = vpop.f32.mrb[109].mxu0 }
 0x4a5   : > { %v2158_v54 = vadd.f32 %v2157_v53, %v3963_v16  ;;  %v2159_v55 = vpop.f32.mrb[110].mxu0 }
 0x4a6   : > { %v2160_v56 = vadd.f32 %v2159_v55, %v3960_v1  ;;  %v2161_v57 = vpop.f32.mrb[111].mxu0 }
 0x4a7   : > { %v2763_v58 = vpack.c.bf16 %v2158_v54, %v2156_v52  ;;  %v2162_v59 = vadd.f32 %v2161_v57, %v3963_v16 }
 0x4a9   : > { %2418 = vst [vmem:[%s3971_s18 + $0xb0] sm:$0xff] %v2763_v58  ;;  %v2764_v60 = vpack.c.bf16 %v2162_v59, %v2160_v56 }
 0x4ab   : > { %2419 = vst [vmem:[%s3971_s18 + $0xb8] sm:$0xff] %v2764_v60  ;;  %v2165_v61 = vpop.f32.mrb[112].mxu0 }
 0x4ac   : > { %v2166_v62 = vadd.f32 %v2165_v61, %v3960_v1  ;;  %v2167_v63 = vpop.f32.mrb[113].mxu0 }
 0x4ad   : > { %v2168_v0 = vadd.f32 %v2167_v63, %v3963_v16  ;;  %v2169_v17 = vpop.f32.mrb[114].mxu0 }
 0x4ae   : > { %v2170_v2 = vadd.f32 %v2169_v17, %v3960_v1  ;;  %v2171_v3 = vpop.f32.mrb[115].mxu0 }
 0x4af   : > { %v2765_v4 = vpack.c.bf16 %v2168_v0, %v2166_v62  ;;  %v2172_v5 = vadd.f32 %v2171_v3, %v3963_v16 }
 0x4b1   : > { %2420 = vst [vmem:[%s3971_s18 + $0xc0] sm:$0xff] %v2765_v4  ;;  %v2766_v6 = vpack.c.bf16 %v2172_v5, %v2170_v2 }
 0x4b3   : > { %2421 = vst [vmem:[%s3971_s18 + $0xc8] sm:$0xff] %v2766_v6  ;;  %v2175_v7 = vpop.f32.mrb[116].mxu0 }
 0x4b4   : > { %v2176_v8 = vadd.f32 %v2175_v7, %v3960_v1  ;;  %v2177_v9 = vpop.f32.mrb[117].mxu0 }
 0x4b5   : > { %v2178_v19 = vadd.f32 %v2177_v9, %v3963_v16  ;;  %v2179_v21 = vpop.f32.mrb[118].mxu0 }
 0x4b6   : > { %v2180_v10 = vadd.f32 %v2179_v21, %v3960_v1  ;;  %v2181_v11 = vpop.f32.mrb[119].mxu0 }
 0x4b7   : > { %v2767_v12 = vpack.c.bf16 %v2178_v19, %v2176_v8  ;;  %v2182_v13 = vadd.f32 %v2181_v11, %v3963_v16 }
 0x4b9   : > { %2422 = vst [vmem:[%s3971_s18 + $0xd0] sm:$0xff] %v2767_v12  ;;  %v2768_v14 = vpack.c.bf16 %v2182_v13, %v2180_v10 }
 0x4bb   : > { %2423 = vst [vmem:[%s3971_s18 + $0xd8] sm:$0xff] %v2768_v14  ;;  %v2185_v15 = vpop.f32.mrb[128].mxu1 }
 0x4bc   : > { %v2186_v18 = vadd.f32 %v2185_v15, %v3960_v1  ;;  %v2187_v20 = vpop.f32.mrb[129].mxu1 }
 0x4bd   : > { %v2188_v24 = vadd.f32 %v2187_v20, %v3963_v16  ;;  %v2189_v25 = vpop.f32.mrb[130].mxu1 }
 0x4be   : > { %v2190_v22 = vadd.f32 %v2189_v25, %v3960_v1  ;;  %v2191_v32 = vpop.f32.mrb[131].mxu1 }
 0x4bf   : > { %v2769_v26 = vpack.c.bf16 %v2188_v24, %v2186_v18  ;;  %v2192_v27 = vadd.f32 %v2191_v32, %v3963_v16 }
 0x4c1   : > { %2424 = vst [vmem:[%s3971_s18 + $0xe0] sm:$0xff] %v2769_v26  ;;  %v2770_v23 = vpack.c.bf16 %v2192_v27, %v2190_v22 }
 0x4c3   : > { %2425 = vst [vmem:[%s3971_s18 + $0xe8] sm:$0xff] %v2770_v23  ;;  %v2195_v28 = vpop.f32.mrb[132].mxu1 }
 0x4c4   : > { %v2196_v29 = vadd.f32 %v2195_v28, %v3960_v1  ;;  %v2197_v30 = vpop.f32.mrb[133].mxu1 }
 0x4c5   : > { %v2198_v31 = vadd.f32 %v2197_v30, %v3963_v16  ;;  %v2199_v33 = vpop.f32.mrb[134].mxu1 }
 0x4c6   : > { %v2200_v34 = vadd.f32 %v2199_v33, %v3960_v1  ;;  %v2201_v35 = vpop.f32.mrb[135].mxu1 }
 0x4c7   : > { %v2771_v36 = vpack.c.bf16 %v2198_v31, %v2196_v29  ;;  %v2202_v37 = vadd.f32 %v2201_v35, %v3963_v16 }
 0x4c9   : > { %2426 = vst [vmem:[%s3971_s18 + $0xf0] sm:$0xff] %v2771_v36  ;;  %v2772_v38 = vpack.c.bf16 %v2202_v37, %v2200_v34 }
 0x4cb   : > { %2427 = vst [vmem:[%s3971_s18 + $0xf8] sm:$0xff] %v2772_v38 }
 0x4cc   : > { %3352 = shalt.err (!%p3349_p13)
}
 0x4cd   : > { %s3353_s25 = scalar_lea.hbm %s4068_s15, 4096  ;;  %s3357_s18 = scalar_lea.hbm %s4155_s26, 8192 }
 0x4ce   : > { %p3354_p9 = scmp.ne.s32.totalorder %s4068_s15, %s3353_s25  ;;  %p3358_p4 = scmp.lt.u32.totalorder %s4068_s15, %s4155_s26 }
 0x4cf   : > { %p3359_p8 = scmp.lt.u32.totalorder %s3357_s18, %s3353_s25  ;;  %p3361_p3 = scmp.lt.u32.totalorder %s3353_s25, %s4068_s15 }
 0x4d0   : > { %p3355_p0 = pnand %p3354_p9, %p3646_p10 }
 0x4d1   : > { %p3360_p6 = por %p3359_p8, %p3358_p4 }
 0x4d2   : > { %p3356_p11 = pneg %p3355_p0 }
 0x4d3   : > { %p3362_p5 = por %p3361_p3, %p3360_p6 }
 0x4d5   : > { %p3363_p7 = pnand %p3362_p5, %p3356_p11 }
 0x4d7   : > { %3366 = shalt.err (!%p3363_p7)
}
 0x4d8   : > { %s3426_s24 = smov 128   ;;  %s3427_s17 = smov 8  }
 0x4d9   : > { %2937 = dma.vmem_to_hbm [thread:$0]  (%p3646_p10), %s4070_s23, 4096, %s4068_s15, %s2429_s13, %s3426_s24, %s3426_s24, %s3427_s17  }
 0x4da PF: > { %s4156_s22 = sld [smem:[#allocation16_spill]]  ;;  %s4157_s9 = sld [smem:[#allocation17_spill]] }
 0x4db   : > { %p4159_p1 = scmp.ge.s32.totalorder %s3413_s12, 2 }
 0x4e0   : > { %s2458_s19 = sand.u32 1, %s4156_s22   ;;  %p4158_p12 = scmp.ne.s32.totalorder %s4157_s9, 0 }
 0x4e1   : > { %s2459_s25 = scalar_lea.sflag [#allocation4], %s2458_s19 }
 0x4e2   : > { %p2957_p2 = pnand %p4159_p1, %p4158_p12 }
 0x4e4   : > { %3396 = dma.done.wait (!%p2957_p2), %s2459_s25, 4096  }
 0x4e5   : > { %3398 = vsyncadd (!%p2957_p2), %s2459_s25, 4294963200  ;;  %p24_p13 = scmp.ge.s32.totalorder %s3636_s14, 4   ;;  %s4160_s30 = smov %s3405_s10 }
 0x4e6   : > { %s4161_s10 = smov %s3409_s11  ;;  %s4162_s11 = smov %s3652_s27 }
 0x4e7   : > { %s4163_s12 = smov %s3636_s14  ;;  %26 = sbr.rel (!%p24_p13) target bundleno = 9 (0x9), region = 117 }
 0x4ee   :  { %2464 = vsyncpa [#allocation3], 1 }
 0x4ef   :  { %2466 = vsyncpa [#allocation3 + $0x1], 1 }
 0x4f0   :  { %2467 = vsyncpa [#allocation6], 1 }
 0x4f1   :  { %2468 = vsyncpa [#allocation9], 1 }
 0x4f2   :  { %2469 = vsyncpa [#allocation4], 1 }
 0x4f3   :  { %2471 = vsyncpa [#allocation4 + $0x1], 1 }

</bundles_post_ra>
